<compile_context>
chip_gen: v7x
topology: tpu7x:2x2x1
jax: 0.10.0
libtpu: 0.0.40
codegen_flags: <defaults>
</compile_context>

<pallas_src>
import functools
import math

import jax
import jax.numpy as jnp
from jax import lax
from jax.experimental import pallas as pl
from jax.experimental.pallas import tpu as pltpu


# Hash constants (kept in int32 two's-complement form so all kernel integer
# math stays in int32, which lowers cleanly on both Mosaic and interpret mode).
_C_WEYL = 0x9E3779B1   # golden-ratio Weyl increment
_C_KEY = 0x632BE59B    # per-sample key stride
_C_M1 = 0x85EBCA6B     # murmur3 finalizer constants
_C_M2 = 0xC2B2AE35


def _i32(v):
    """Python int -> int32 constant (two's-complement wrap for >= 2**31)."""
    return jnp.int32(v - (1 << 32) if v >= (1 << 31) else v)


def _std_laplace(counter, key):
    """Standard Laplace(0,1) draws from a stateless counter-based hash PRNG.

    counter : int32 array of per-element counters (unique within one draw)
    key     : int32 scalar (unique per (sample, O-tile, seed))

    Plain int32 VPU ops + one EUP log per element; no pltpu PRNG primitives,
    so it runs identically under Mosaic and interpret mode. Statistical
    quality (murmur3-style finalizer over a Weyl stream) is ample for
    memristor read-noise simulation.
    """
    x = counter * _i32(_C_WEYL) + key
    x = x ^ lax.shift_right_logical(x, 16)
    x = x * _i32(_C_M1)
    x = x ^ lax.shift_right_logical(x, 13)
    x = x * _i32(_C_M2)
    x = x ^ lax.shift_right_logical(x, 16)
    # low 24 bits -> uniform [0, 1)
    u = jnp.bitwise_and(x, jnp.int32(0x00FFFFFF)).astype(jnp.float32)
    u = u * (1.0 / float(1 << 24))
    v = u - 0.5                                       # [-0.5, 0.5)
    t = jnp.maximum(1.0 - 2.0 * jnp.abs(v), 1e-12)    # guard log(0)
    log_t = jnp.log(t)                                # EUP
    return jnp.where(v >= 0.0, -log_t, log_t)         # inverse-CDF Laplace


def _fused_kernel(offset, scale, bias, no_sample, n_dev, in_raw, t_o,
                  prior_mu, prior_sigma,
                  seed_ref, x_ref, state_ref, out_ref, kl_ref, w_ref):
    """Fused memristor sampling + batched matmul + per-tile KL.

    seed_ref : SMEM (1,) int32                        (scalar prefetch)
    x_ref    : VMEM (B, in_raw)                       raw input, no bias column
    state_ref: VMEM (n_dev*in_dim, t_o)               device-packed states
    out_ref  : VMEM (no_sample, B, t_o)               output in (S, B, O) layout
    kl_ref   : VMEM (1, 8, 128)                       per-tile KL (broadcast)
    w_ref    : VMEM (in_dim, no_sample*t_o) scratch   lane-packed weight samples
    """
    in_dim = in_raw + 1
    n_rows = n_dev * in_dim
    inv_scale = 1.0 / scale
    inv_s = 1.0 / no_sample
    o_tile = pl.program_id(0)

    # ---- sample-independent quantities (hoisted out of the sample loop) ----
    st_packed = state_ref[...]                                   # (N*I, tO)
    # Laplace read-noise scale, memristor_paras.read_paras, on the packed view.
    lsc_packed = (-0.0058 * st_packed * st_packed
                  + 0.0324 * st_packed + 0.0141)
    # sum over devices of the state (static, sublane-contiguous slices).
    base = st_packed[0:in_dim, :]
    for n in range(1, n_dev):
        base = base + st_packed[n * in_dim:(n + 1) * in_dim, :]
    base = base - offset                                         # sum(state)-offset

    # Per-element counters for the hash PRNG (only the key changes per sample).
    row = lax.broadcasted_iota(jnp.int32, (n_rows, t_o), 0)
    col = lax.broadcasted_iota(jnp.int32, (n_rows, t_o), 1)
    counter = row * t_o + col

    # ---- per-sample weights + single-pass NOISE moments ---------------------
    noise_sum = None
    noise_sumsq = None
    for s in range(no_sample):
        key = seed_ref[0] + (o_tile * no_sample + s) * _i32(_C_KEY)
        lap = _std_laplace(counter, key)                         # one batched draw
        noise_packed = lsc_packed * lap                          # (N*I, tO)
        noise = noise_packed[0:in_dim, :]
        for n in range(1, n_dev):
            noise = noise + noise_packed[n * in_dim:(n + 1) * in_dim, :]
        # weight sample, lane-packed by sample for the single MXU pass.
        w_ref[:, s * t_o:(s + 1) * t_o] = (base + noise) * inv_scale
        noise_sum = noise if s == 0 else noise_sum + noise
        noise_sumsq = (noise * noise if s == 0
                       else noise_sumsq + noise * noise)

    # weight_mus / weight_stds (unbiased, ddof=1) from the noise moments only
    # (base is constant over samples -> no cancellation on the variance path).
    noise_mean = noise_sum * inv_s
    var_noise = jnp.maximum(
        (noise_sumsq - noise_sum * noise_mean) * (1.0 / (no_sample - 1)), 0.0)
    mu = (base + noise_mean) * inv_scale                         # weight_mus
    varpost = var_noise * (inv_scale * inv_scale)                # weight_stds**2
    vp = varpost + 1e-20                                         # guard log(0)

    # Per-tile KL vs the Gaussian prior:
    #   0.5*(numel*log(pc) - sum(log vp)) - 0.5*numel + 0.5*sum(vp+(mu-pm)^2)/pc
    prior_cov = prior_sigma * prior_sigma
    numel = float(in_dim * t_o)
    quad = jnp.sum(vp + (mu - prior_mu) ** 2)                    # one fused reduction
    kl_tile = (0.5 * (numel * math.log(prior_cov) - jnp.sum(jnp.log(vp)))
               - 0.5 * numel
               + (0.5 / prior_cov) * quad)
    kl_ref[...] = jnp.full((1, 8, 128), kl_tile, dtype=jnp.float32)

    # ---- batched-over-samples matmul: ONE lane-dense MXU pass ---------------
    #   (B, in_raw) @ (in_raw, S*tO) + bias * (bias row)  ==  [x, bias] @ W
    xw = jnp.dot(x_ref[...], w_ref[:in_raw, :],
                 preferred_element_type=jnp.float32)
    xw = xw + bias * w_ref[in_raw:in_raw + 1, :]
    # Write directly in (S, B, O) layout (per-sample lane slabs; 128-aligned
    # whenever t_o is a multiple of 128).
    for s in range(no_sample):
        out_ref[s, :, :] = xw[:, s * t_o:(s + 1) * t_o]


def bayes_linear_memristor_forward(x, current_state, noise_key, *,
                                   offset=7.2, scale=1.0, no_sample=5,
                                   prior_mu=0.0, prior_sigma=0.1,
                                   pre_scale_factor=1.0):
    """Returns (output, KL_loss, acc_scale, ave_fly_time).

    x             : (batch, input_dim_raw)                 float32
    current_state : (N, input_dim_raw + 1, output_dim)     float32
    """
    if no_sample < 2:
        raise ValueError("no_sample must be >= 2 (unbiased std over samples).")
    n_dev, in_dim, out_dim = current_state.shape
    batch, in_raw = x.shape
    assert in_dim == in_raw + 1, "state must include the bias row"

    # Training-mode quant(): identity; bias column 1.0, acc_scale = pre * 1.0.
    bias = 1.0
    acc_scale = pre_scale_factor * 1.0

    # ---- output-dim tiling + exact VMEM budget ------------------------------
    def _est_bytes(t):
        return 4 * (2 * batch * in_raw                 # x block (double-buffered)
                    + 2 * n_dev * in_dim * t           # state block
                    + 2 * no_sample * batch * t        # output block
                    + 2 * 8 * 128                      # per-tile KL block
                    + no_sample * in_dim * t           # w_ref scratch
                    + 3 * n_dev * in_dim * t           # lsc / counter / noise temps
                    + 4 * in_dim * t                   # base / moments / mu / var
                    + no_sample * batch * t)           # xw

    if out_dim % 128 == 0:
        t_o = 128
        for cand in (512, 256):                        # amortize grid-step cost
            if out_dim % cand == 0 and _est_bytes(cand) <= (24 << 20):
                t_o = cand
                break
    else:
        # Single full-width tile (block == full dim satisfies the layout rule).
        # TODO(synk): pad out_dim up to a 128 multiple for lane-dense stores
        #             when the padding fraction is small.
        t_o = out_dim
    num_o_tiles = out_dim // t_o

    # Exact bytes + headroom, capped at 56 MiB (safe within v7x's 64 MiB VMEM,
    # well under v5e/v6e's 128 MiB).
    vmem_limit = int(min(max(2 * _est_bytes(t_o) + (4 << 20), 16 << 20),
                         56 << 20))

    # One non-negative int32 seed for the in-kernel hash PRNG (scalar prefetch).
    seed = jax.random.randint(noise_key, (1,), 0, jnp.iinfo(jnp.int32).max,
                              dtype=jnp.int32)

    # Device-packed state (N*in_dim, out_dim): free contiguous reshape, lets the
    # kernel draw all devices' noise in one batched call per sample.
    state_packed = current_state.reshape(n_dev * in_dim, out_dim)

    kernel = functools.partial(
        _fused_kernel, float(offset), float(scale), float(bias),
        int(no_sample), int(n_dev), int(in_raw), int(t_o),
        float(prior_mu), float(prior_sigma))

    output, kl_tiles = pl.pallas_call(
        kernel,
        out_shape=(
            jax.ShapeDtypeStruct((no_sample, batch, out_dim), jnp.float32),
            jax.ShapeDtypeStruct((num_o_tiles, 8, 128), jnp.float32),
        ),
        grid_spec=pltpu.PrefetchScalarGridSpec(
            num_scalar_prefetch=1,
            grid=(num_o_tiles,),
            in_specs=[
                pl.BlockSpec((batch, in_raw), lambda o, sd: (0, 0)),
                pl.BlockSpec((n_dev * in_dim, t_o), lambda o, sd: (0, o)),
            ],
            out_specs=(
                pl.BlockSpec((no_sample, batch, t_o), lambda o, sd: (0, 0, o)),
                pl.BlockSpec((1, 8, 128), lambda o, sd: (o, 0, 0)),
            ),
            scratch_shapes=[pltpu.VMEM((in_dim, no_sample * t_o), jnp.float32)],
        ),
        compiler_params=pltpu.CompilerParams(
            # Fully stateless per O-tile (per-tile KL, stateless PRNG), so the
            # grid axis is megacore-parallel (matters on v7x's 2 TensorCores).
            dimension_semantics=("parallel",),
            vmem_limit_bytes=vmem_limit),
    )(seed, x, state_packed)

    kl_loss = jnp.sum(kl_tiles[:, 0, 0])
    ave_fly_time = 0.0
    return output, kl_loss, acc_scale, ave_fly_time


if __name__ == "__main__":
    key = jax.random.PRNGKey(0)
    k_x, k_state, k_noise = jax.random.split(key, 3)

    # Small shapes consistent with the module: input_dim_raw=31 (module appends
    # the bias column -> 32), output_dim=16, N=3 devices, no_sample=5, batch=8.
    BATCH, IN_RAW, OUT_DIM, N_DEV, NO_SAMPLE = 8, 31, 16, 3, 5
    IN_DIM = IN_RAW + 1
    init_states = [1.4, 2.4, 3.2]

    # current_state init: uniform(init_state - 0.7, init_state + 0.7) per device
    # slice (matches memristor_device.__init__), stored as (N, IN_DIM, OUT_DIM).
    state_keys = jax.random.split(k_state, N_DEV)
    current_state = jnp.stack(
        [jax.random.uniform(state_keys[n], (IN_DIM, OUT_DIM), jnp.float32,
                            init_states[n] - 0.7, init_states[n] + 0.7)
         for n in range(N_DEV)], axis=0)

    x = jax.random.normal(k_x, (BATCH, IN_RAW), jnp.float32)

    output, kl_loss, acc_scale, ave_fly_time = bayes_linear_memristor_forward(
        x, current_state, k_noise,
        offset=7.2, scale=1.0, no_sample=NO_SAMPLE,
        prior_mu=0.0, prior_sigma=0.1)

    jax.block_until_ready((output, kl_loss))
    assert output.shape == (NO_SAMPLE, BATCH, OUT_DIM)
    assert output.dtype == jnp.float32
    assert kl_loss.shape == ()
    assert bool(jnp.all(jnp.isfinite(output)))
    assert bool(jnp.isfinite(kl_loss))
    print("KERNEL_OK")
</pallas_src>

<mosaic_0001>
module attributes {stable_mosaic.version = 11 : i64} {
  func.func @_fused_kernel(%arg0: i32, %arg1: memref<1xi32, #tpu.memory_space<smem>>, %arg2: memref<8x31xf32, #tpu.memory_space<vmem>>, %arg3: memref<96x16xf32, #tpu.memory_space<vmem>>, %arg4: memref<5x8x16xf32, #tpu.memory_space<vmem>>, %arg5: memref<1x8x128xf32, #tpu.memory_space<vmem>>, %arg6: memref<32x80xf32, #tpu.memory_space<vmem>>) attributes {dimension_semantics = [#tpu.dimension_semantics<parallel>], iteration_bounds = array<i64: 1>, scalar_prefetch = 1 : i64, scratch_operands = 1 : i64, tpu.core_type = #tpu.core_type<tc>, window_params = [{pipeline_mode = #tpu.pipeline_mode<synchronous>, transform_indices = @transform_0, window_bounds = array<i64: 8, 31>}, {transform_indices = @transform_1, window_bounds = array<i64: 96, 16>}, {transform_indices = @transform_2, window_bounds = array<i64: 5, 8, 16>}, {transform_indices = @transform_3, window_bounds = array<i64: 1, 8, 128>}]} {
    %c0 = arith.constant 0 : index
    %c0_0 = arith.constant 0 : index
    %0 = vector.load %arg3[%c0, %c0_0] : memref<96x16xf32, #tpu.memory_space<vmem>>, vector<96x16xf32>
    %cst = arith.constant -5.800000e-03 : f32
    %1 = vector.broadcast %cst : f32 to vector<96x16xf32>
    %2 = arith.mulf %1, %0 : vector<96x16xf32>
    %3 = arith.mulf %2, %0 : vector<96x16xf32>
    %cst_1 = arith.constant 3.240000e-02 : f32
    %4 = vector.broadcast %cst_1 : f32 to vector<96x16xf32>
    %5 = arith.mulf %4, %0 : vector<96x16xf32>
    %6 = arith.addf %3, %5 : vector<96x16xf32>
    %cst_2 = arith.constant 1.410000e-02 : f32
    %7 = vector.broadcast %cst_2 : f32 to vector<96x16xf32>
    %8 = arith.addf %6, %7 : vector<96x16xf32>
    %9 = vector.extract_strided_slice %0 {offsets = [0, 0], sizes = [32, 16], strides = [1, 1]} : vector<96x16xf32> to vector<32x16xf32>
    %10 = vector.extract_strided_slice %0 {offsets = [32, 0], sizes = [32, 16], strides = [1, 1]} : vector<96x16xf32> to vector<32x16xf32>
    %11 = arith.addf %9, %10 : vector<32x16xf32>
    %12 = vector.extract_strided_slice %0 {offsets = [64, 0], sizes = [32, 16], strides = [1, 1]} : vector<96x16xf32> to vector<32x16xf32>
    %13 = arith.addf %11, %12 : vector<32x16xf32>
    %cst_3 = arith.constant 7.1999998 : f32
    %14 = vector.broadcast %cst_3 : f32 to vector<32x16xf32>
    %15 = arith.subf %13, %14 : vector<32x16xf32>
    %16 = tpu.iota {dimensions = array<i32: 0>} : vector<96x16xi32>
    %17 = tpu.iota {dimensions = array<i32: 1>} : vector<96x16xi32>
    %c16_i32 = arith.constant 16 : i32
    %18 = vector.broadcast %c16_i32 : i32 to vector<96x16xi32>
    %19 = arith.muli %16, %18 : vector<96x16xi32>
    %20 = arith.addi %19, %17 : vector<96x16xi32>
    %c0_4 = arith.constant 0 : index
    %21 = memref.load %arg1[%c0_4] : memref<1xi32, #tpu.memory_space<smem>>
    %c5_i32 = arith.constant 5 : i32
    %22 = arith.muli %arg0, %c5_i32 : i32
    %c0_i32 = arith.constant 0 : i32
    %23 = arith.addi %22, %c0_i32 : i32
    %c1663821211_i32 = arith.constant 1663821211 : i32
    %24 = arith.muli %23, %c1663821211_i32 : i32
    %25 = arith.addi %21, %24 : i32
    %c-1640531535_i32 = arith.constant -1640531535 : i32
    %26 = vector.broadcast %c-1640531535_i32 : i32 to vector<96x16xi32>
    %27 = arith.muli %20, %26 : vector<96x16xi32>
    %28 = vector.broadcast %25 : i32 to vector<96x16xi32>
    %29 = arith.addi %27, %28 : vector<96x16xi32>
    %c16_i32_5 = arith.constant 16 : i32
    %30 = vector.broadcast %c16_i32_5 : i32 to vector<96x16xi32>
    %31 = arith.shrui %29, %30 : vector<96x16xi32>
    %32 = arith.xori %29, %31 : vector<96x16xi32>
    %c-2048144789_i32 = arith.constant -2048144789 : i32
    %33 = vector.broadcast %c-2048144789_i32 : i32 to vector<96x16xi32>
    %34 = arith.muli %32, %33 : vector<96x16xi32>
    %c13_i32 = arith.constant 13 : i32
    %35 = vector.broadcast %c13_i32 : i32 to vector<96x16xi32>
    %36 = arith.shrui %34, %35 : vector<96x16xi32>
    %37 = arith.xori %34, %36 : vector<96x16xi32>
    %c-1028477387_i32 = arith.constant -1028477387 : i32
    %38 = vector.broadcast %c-1028477387_i32 : i32 to vector<96x16xi32>
    %39 = arith.muli %37, %38 : vector<96x16xi32>
    %c16_i32_6 = arith.constant 16 : i32
    %40 = vector.broadcast %c16_i32_6 : i32 to vector<96x16xi32>
    %41 = arith.shrui %39, %40 : vector<96x16xi32>
    %42 = arith.xori %39, %41 : vector<96x16xi32>
    %c16777215_i32 = arith.constant 16777215 : i32
    %43 = vector.broadcast %c16777215_i32 : i32 to vector<96x16xi32>
    %44 = arith.andi %42, %43 : vector<96x16xi32>
    %45 = arith.sitofp %44 : vector<96x16xi32> to vector<96x16xf32>
    %cst_7 = arith.constant 5.96046448E-8 : f32
    %46 = vector.broadcast %cst_7 : f32 to vector<96x16xf32>
    %47 = arith.mulf %45, %46 : vector<96x16xf32>
    %cst_8 = arith.constant 5.000000e-01 : f32
    %48 = vector.broadcast %cst_8 : f32 to vector<96x16xf32>
    %49 = arith.subf %47, %48 : vector<96x16xf32>
    %50 = math.absf %49 : vector<96x16xf32>
    %cst_9 = arith.constant 2.000000e+00 : f32
    %51 = vector.broadcast %cst_9 : f32 to vector<96x16xf32>
    %52 = arith.mulf %51, %50 : vector<96x16xf32>
    %cst_10 = arith.constant 1.000000e+00 : f32
    %53 = vector.broadcast %cst_10 : f32 to vector<96x16xf32>
    %54 = arith.subf %53, %52 : vector<96x16xf32>
    %cst_11 = arith.constant 9.99999996E-13 : f32
    %55 = vector.broadcast %cst_11 : f32 to vector<96x16xf32>
    %56 = arith.maximumf %54, %55 : vector<96x16xf32>
    %57 = math.log %56 : vector<96x16xf32>
    %cst_12 = arith.constant 0.000000e+00 : f32
    %58 = vector.broadcast %cst_12 : f32 to vector<96x16xf32>
    %59 = arith.cmpf oge, %49, %58 : vector<96x16xf32>
    %cst_13 = arith.constant 0.000000e+00 : f32
    %60 = vector.broadcast %cst_13 : f32 to vector<96x16xf32>
    %61 = arith.subf %60, %57 : vector<96x16xf32>
    %62 = arith.select %59, %61, %57 : vector<96x16xi1>, vector<96x16xf32>
    %63 = arith.mulf %8, %62 : vector<96x16xf32>
    %64 = vector.extract_strided_slice %63 {offsets = [0, 0], sizes = [32, 16], strides = [1, 1]} : vector<96x16xf32> to vector<32x16xf32>
    %65 = vector.extract_strided_slice %63 {offsets = [32, 0], sizes = [32, 16], strides = [1, 1]} : vector<96x16xf32> to vector<32x16xf32>
    %66 = arith.addf %64, %65 : vector<32x16xf32>
    %67 = vector.extract_strided_slice %63 {offsets = [64, 0], sizes = [32, 16], strides = [1, 1]} : vector<96x16xf32> to vector<32x16xf32>
    %68 = arith.addf %66, %67 : vector<32x16xf32>
    %69 = arith.addf %15, %68 : vector<32x16xf32>
    %cst_14 = arith.constant 1.000000e+00 : f32
    %70 = vector.broadcast %cst_14 : f32 to vector<32x16xf32>
    %71 = arith.mulf %69, %70 : vector<32x16xf32>
    %c0_15 = arith.constant 0 : index
    %c0_16 = arith.constant 0 : index
    %72 = vector.load %arg6[%c0_15, %c0_16] : memref<32x80xf32, #tpu.memory_space<vmem>>, vector<32x16xf32>
    tpu.vector_store %arg6[%c0_15, %c0_16], %71 {strides = array<i32>} : memref<32x80xf32, #tpu.memory_space<vmem>>, vector<32x16xf32>,
    %73 = arith.mulf %68, %68 : vector<32x16xf32>
    %c0_17 = arith.constant 0 : index
    %74 = memref.load %arg1[%c0_17] : memref<1xi32, #tpu.memory_space<smem>>
    %c5_i32_18 = arith.constant 5 : i32
    %75 = arith.muli %arg0, %c5_i32_18 : i32
    %c1_i32 = arith.constant 1 : i32
    %76 = arith.addi %75, %c1_i32 : i32
    %c1663821211_i32_19 = arith.constant 1663821211 : i32
    %77 = arith.muli %76, %c1663821211_i32_19 : i32
    %78 = arith.addi %74, %77 : i32
    %c-1640531535_i32_20 = arith.constant -1640531535 : i32
    %79 = vector.broadcast %c-1640531535_i32_20 : i32 to vector<96x16xi32>
    %80 = arith.muli %20, %79 : vector<96x16xi32>
    %81 = vector.broadcast %78 : i32 to vector<96x16xi32>
    %82 = arith.addi %80, %81 : vector<96x16xi32>
    %c16_i32_21 = arith.constant 16 : i32
    %83 = vector.broadcast %c16_i32_21 : i32 to vector<96x16xi32>
    %84 = arith.shrui %82, %83 : vector<96x16xi32>
    %85 = arith.xori %82, %84 : vector<96x16xi32>
    %c-2048144789_i32_22 = arith.constant -2048144789 : i32
    %86 = vector.broadcast %c-2048144789_i32_22 : i32 to vector<96x16xi32>
    %87 = arith.muli %85, %86 : vector<96x16xi32>
    %c13_i32_23 = arith.constant 13 : i32
    %88 = vector.broadcast %c13_i32_23 : i32 to vector<96x16xi32>
    %89 = arith.shrui %87, %88 : vector<96x16xi32>
    %90 = arith.xori %87, %89 : vector<96x16xi32>
    %c-1028477387_i32_24 = arith.constant -1028477387 : i32
    %91 = vector.broadcast %c-1028477387_i32_24 : i32 to vector<96x16xi32>
    %92 = arith.muli %90, %91 : vector<96x16xi32>
    %c16_i32_25 = arith.constant 16 : i32
    %93 = vector.broadcast %c16_i32_25 : i32 to vector<96x16xi32>
    %94 = arith.shrui %92, %93 : vector<96x16xi32>
    %95 = arith.xori %92, %94 : vector<96x16xi32>
    %c16777215_i32_26 = arith.constant 16777215 : i32
    %96 = vector.broadcast %c16777215_i32_26 : i32 to vector<96x16xi32>
    %97 = arith.andi %95, %96 : vector<96x16xi32>
    %98 = arith.sitofp %97 : vector<96x16xi32> to vector<96x16xf32>
    %cst_27 = arith.constant 5.96046448E-8 : f32
    %99 = vector.broadcast %cst_27 : f32 to vector<96x16xf32>
    %100 = arith.mulf %98, %99 : vector<96x16xf32>
    %cst_28 = arith.constant 5.000000e-01 : f32
    %101 = vector.broadcast %cst_28 : f32 to vector<96x16xf32>
    %102 = arith.subf %100, %101 : vector<96x16xf32>
    %103 = math.absf %102 : vector<96x16xf32>
    %cst_29 = arith.constant 2.000000e+00 : f32
    %104 = vector.broadcast %cst_29 : f32 to vector<96x16xf32>
    %105 = arith.mulf %104, %103 : vector<96x16xf32>
    %cst_30 = arith.constant 1.000000e+00 : f32
    %106 = vector.broadcast %cst_30 : f32 to vector<96x16xf32>
    %107 = arith.subf %106, %105 : vector<96x16xf32>
    %cst_31 = arith.constant 9.99999996E-13 : f32
    %108 = vector.broadcast %cst_31 : f32 to vector<96x16xf32>
    %109 = arith.maximumf %107, %108 : vector<96x16xf32>
    %110 = math.log %109 : vector<96x16xf32>
    %cst_32 = arith.constant 0.000000e+00 : f32
    %111 = vector.broadcast %cst_32 : f32 to vector<96x16xf32>
    %112 = arith.cmpf oge, %102, %111 : vector<96x16xf32>
    %cst_33 = arith.constant 0.000000e+00 : f32
    %113 = vector.broadcast %cst_33 : f32 to vector<96x16xf32>
    %114 = arith.subf %113, %110 : vector<96x16xf32>
    %115 = arith.select %112, %114, %110 : vector<96x16xi1>, vector<96x16xf32>
    %116 = arith.mulf %8, %115 : vector<96x16xf32>
    %117 = vector.extract_strided_slice %116 {offsets = [0, 0], sizes = [32, 16], strides = [1, 1]} : vector<96x16xf32> to vector<32x16xf32>
    %118 = vector.extract_strided_slice %116 {offsets = [32, 0], sizes = [32, 16], strides = [1, 1]} : vector<96x16xf32> to vector<32x16xf32>
    %119 = arith.addf %117, %118 : vector<32x16xf32>
    %120 = vector.extract_strided_slice %116 {offsets = [64, 0], sizes = [32, 16], strides = [1, 1]} : vector<96x16xf32> to vector<32x16xf32>
    %121 = arith.addf %119, %120 : vector<32x16xf32>
    %122 = arith.addf %15, %121 : vector<32x16xf32>
    %cst_34 = arith.constant 1.000000e+00 : f32
    %123 = vector.broadcast %cst_34 : f32 to vector<32x16xf32>
    %124 = arith.mulf %122, %123 : vector<32x16xf32>
    %c0_35 = arith.constant 0 : index
    %c16 = arith.constant 16 : index
    %125 = vector.load %arg6[%c0_35, %c16] : memref<32x80xf32, #tpu.memory_space<vmem>>, vector<32x16xf32>
    tpu.vector_store %arg6[%c0_35, %c16], %124 {strides = array<i32>} : memref<32x80xf32, #tpu.memory_space<vmem>>, vector<32x16xf32>,
    %126 = arith.addf %68, %121 : vector<32x16xf32>
    %127 = arith.mulf %121, %121 : vector<32x16xf32>
    %128 = arith.addf %73, %127 : vector<32x16xf32>
    %c0_36 = arith.constant 0 : index
    %129 = memref.load %arg1[%c0_36] : memref<1xi32, #tpu.memory_space<smem>>
    %c5_i32_37 = arith.constant 5 : i32
    %130 = arith.muli %arg0, %c5_i32_37 : i32
    %c2_i32 = arith.constant 2 : i32
    %131 = arith.addi %130, %c2_i32 : i32
    %c1663821211_i32_38 = arith.constant 1663821211 : i32
    %132 = arith.muli %131, %c1663821211_i32_38 : i32
    %133 = arith.addi %129, %132 : i32
    %c-1640531535_i32_39 = arith.constant -1640531535 : i32
    %134 = vector.broadcast %c-1640531535_i32_39 : i32 to vector<96x16xi32>
    %135 = arith.muli %20, %134 : vector<96x16xi32>
    %136 = vector.broadcast %133 : i32 to vector<96x16xi32>
    %137 = arith.addi %135, %136 : vector<96x16xi32>
    %c16_i32_40 = arith.constant 16 : i32
    %138 = vector.broadcast %c16_i32_40 : i32 to vector<96x16xi32>
    %139 = arith.shrui %137, %138 : vector<96x16xi32>
    %140 = arith.xori %137, %139 : vector<96x16xi32>
    %c-2048144789_i32_41 = arith.constant -2048144789 : i32
    %141 = vector.broadcast %c-2048144789_i32_41 : i32 to vector<96x16xi32>
    %142 = arith.muli %140, %141 : vector<96x16xi32>
    %c13_i32_42 = arith.constant 13 : i32
    %143 = vector.broadcast %c13_i32_42 : i32 to vector<96x16xi32>
    %144 = arith.shrui %142, %143 : vector<96x16xi32>
    %145 = arith.xori %142, %144 : vector<96x16xi32>
    %c-1028477387_i32_43 = arith.constant -1028477387 : i32
    %146 = vector.broadcast %c-1028477387_i32_43 : i32 to vector<96x16xi32>
    %147 = arith.muli %145, %146 : vector<96x16xi32>
    %c16_i32_44 = arith.constant 16 : i32
    %148 = vector.broadcast %c16_i32_44 : i32 to vector<96x16xi32>
    %149 = arith.shrui %147, %148 : vector<96x16xi32>
    %150 = arith.xori %147, %149 : vector<96x16xi32>
    %c16777215_i32_45 = arith.constant 16777215 : i32
    %151 = vector.broadcast %c16777215_i32_45 : i32 to vector<96x16xi32>
    %152 = arith.andi %150, %151 : vector<96x16xi32>
    %153 = arith.sitofp %152 : vector<96x16xi32> to vector<96x16xf32>
    %cst_46 = arith.constant 5.96046448E-8 : f32
    %154 = vector.broadcast %cst_46 : f32 to vector<96x16xf32>
    %155 = arith.mulf %153, %154 : vector<96x16xf32>
    %cst_47 = arith.constant 5.000000e-01 : f32
    %156 = vector.broadcast %cst_47 : f32 to vector<96x16xf32>
    %157 = arith.subf %155, %156 : vector<96x16xf32>
    %158 = math.absf %157 : vector<96x16xf32>
    %cst_48 = arith.constant 2.000000e+00 : f32
    %159 = vector.broadcast %cst_48 : f32 to vector<96x16xf32>
    %160 = arith.mulf %159, %158 : vector<96x16xf32>
    %cst_49 = arith.constant 1.000000e+00 : f32
    %161 = vector.broadcast %cst_49 : f32 to vector<96x16xf32>
    %162 = arith.subf %161, %160 : vector<96x16xf32>
    %cst_50 = arith.constant 9.99999996E-13 : f32
    %163 = vector.broadcast %cst_50 : f32 to vector<96x16xf32>
    %164 = arith.maximumf %162, %163 : vector<96x16xf32>
    %165 = math.log %164 : vector<96x16xf32>
    %cst_51 = arith.constant 0.000000e+00 : f32
    %166 = vector.broadcast %cst_51 : f32 to vector<96x16xf32>
    %167 = arith.cmpf oge, %157, %166 : vector<96x16xf32>
    %cst_52 = arith.constant 0.000000e+00 : f32
    %168 = vector.broadcast %cst_52 : f32 to vector<96x16xf32>
    %169 = arith.subf %168, %165 : vector<96x16xf32>
    %170 = arith.select %167, %169, %165 : vector<96x16xi1>, vector<96x16xf32>
    %171 = arith.mulf %8, %170 : vector<96x16xf32>
    %172 = vector.extract_strided_slice %171 {offsets = [0, 0], sizes = [32, 16], strides = [1, 1]} : vector<96x16xf32> to vector<32x16xf32>
    %173 = vector.extract_strided_slice %171 {offsets = [32, 0], sizes = [32, 16], strides = [1, 1]} : vector<96x16xf32> to vector<32x16xf32>
    %174 = arith.addf %172, %173 : vector<32x16xf32>
    %175 = vector.extract_strided_slice %171 {offsets = [64, 0], sizes = [32, 16], strides = [1, 1]} : vector<96x16xf32> to vector<32x16xf32>
    %176 = arith.addf %174, %175 : vector<32x16xf32>
    %177 = arith.addf %15, %176 : vector<32x16xf32>
    %cst_53 = arith.constant 1.000000e+00 : f32
    %178 = vector.broadcast %cst_53 : f32 to vector<32x16xf32>
    %179 = arith.mulf %177, %178 : vector<32x16xf32>
    %c0_54 = arith.constant 0 : index
    %c32 = arith.constant 32 : index
    %180 = vector.load %arg6[%c0_54, %c32] : memref<32x80xf32, #tpu.memory_space<vmem>>, vector<32x16xf32>
    tpu.vector_store %arg6[%c0_54, %c32], %179 {strides = array<i32>} : memref<32x80xf32, #tpu.memory_space<vmem>>, vector<32x16xf32>,
    %181 = arith.addf %126, %176 : vector<32x16xf32>
    %182 = arith.mulf %176, %176 : vector<32x16xf32>
    %183 = arith.addf %128, %182 : vector<32x16xf32>
    %c0_55 = arith.constant 0 : index
    %184 = memref.load %arg1[%c0_55] : memref<1xi32, #tpu.memory_space<smem>>
    %c5_i32_56 = arith.constant 5 : i32
    %185 = arith.muli %arg0, %c5_i32_56 : i32
    %c3_i32 = arith.constant 3 : i32
    %186 = arith.addi %185, %c3_i32 : i32
    %c1663821211_i32_57 = arith.constant 1663821211 : i32
    %187 = arith.muli %186, %c1663821211_i32_57 : i32
    %188 = arith.addi %184, %187 : i32
    %c-1640531535_i32_58 = arith.constant -1640531535 : i32
    %189 = vector.broadcast %c-1640531535_i32_58 : i32 to vector<96x16xi32>
    %190 = arith.muli %20, %189 : vector<96x16xi32>
    %191 = vector.broadcast %188 : i32 to vector<96x16xi32>
    %192 = arith.addi %190, %191 : vector<96x16xi32>
    %c16_i32_59 = arith.constant 16 : i32
    %193 = vector.broadcast %c16_i32_59 : i32 to vector<96x16xi32>
    %194 = arith.shrui %192, %193 : vector<96x16xi32>
    %195 = arith.xori %192, %194 : vector<96x16xi32>
    %c-2048144789_i32_60 = arith.constant -2048144789 : i32
    %196 = vector.broadcast %c-2048144789_i32_60 : i32 to vector<96x16xi32>
    %197 = arith.muli %195, %196 : vector<96x16xi32>
    %c13_i32_61 = arith.constant 13 : i32
    %198 = vector.broadcast %c13_i32_61 : i32 to vector<96x16xi32>
    %199 = arith.shrui %197, %198 : vector<96x16xi32>
    %200 = arith.xori %197, %199 : vector<96x16xi32>
    %c-1028477387_i32_62 = arith.constant -1028477387 : i32
    %201 = vector.broadcast %c-1028477387_i32_62 : i32 to vector<96x16xi32>
    %202 = arith.muli %200, %201 : vector<96x16xi32>
    %c16_i32_63 = arith.constant 16 : i32
    %203 = vector.broadcast %c16_i32_63 : i32 to vector<96x16xi32>
    %204 = arith.shrui %202, %203 : vector<96x16xi32>
    %205 = arith.xori %202, %204 : vector<96x16xi32>
    %c16777215_i32_64 = arith.constant 16777215 : i32
    %206 = vector.broadcast %c16777215_i32_64 : i32 to vector<96x16xi32>
    %207 = arith.andi %205, %206 : vector<96x16xi32>
    %208 = arith.sitofp %207 : vector<96x16xi32> to vector<96x16xf32>
    %cst_65 = arith.constant 5.96046448E-8 : f32
    %209 = vector.broadcast %cst_65 : f32 to vector<96x16xf32>
    %210 = arith.mulf %208, %209 : vector<96x16xf32>
    %cst_66 = arith.constant 5.000000e-01 : f32
    %211 = vector.broadcast %cst_66 : f32 to vector<96x16xf32>
    %212 = arith.subf %210, %211 : vector<96x16xf32>
    %213 = math.absf %212 : vector<96x16xf32>
    %cst_67 = arith.constant 2.000000e+00 : f32
    %214 = vector.broadcast %cst_67 : f32 to vector<96x16xf32>
    %215 = arith.mulf %214, %213 : vector<96x16xf32>
    %cst_68 = arith.constant 1.000000e+00 : f32
    %216 = vector.broadcast %cst_68 : f32 to vector<96x16xf32>
    %217 = arith.subf %216, %215 : vector<96x16xf32>
    %cst_69 = arith.constant 9.99999996E-13 : f32
    %218 = vector.broadcast %cst_69 : f32 to vector<96x16xf32>
    %219 = arith.maximumf %217, %218 : vector<96x16xf32>
    %220 = math.log %219 : vector<96x16xf32>
    %cst_70 = arith.constant 0.000000e+00 : f32
    %221 = vector.broadcast %cst_70 : f32 to vector<96x16xf32>
    %222 = arith.cmpf oge, %212, %221 : vector<96x16xf32>
    %cst_71 = arith.constant 0.000000e+00 : f32
    %223 = vector.broadcast %cst_71 : f32 to vector<96x16xf32>
    %224 = arith.subf %223, %220 : vector<96x16xf32>
    %225 = arith.select %222, %224, %220 : vector<96x16xi1>, vector<96x16xf32>
    %226 = arith.mulf %8, %225 : vector<96x16xf32>
    %227 = vector.extract_strided_slice %226 {offsets = [0, 0], sizes = [32, 16], strides = [1, 1]} : vector<96x16xf32> to vector<32x16xf32>
    %228 = vector.extract_strided_slice %226 {offsets = [32, 0], sizes = [32, 16], strides = [1, 1]} : vector<96x16xf32> to vector<32x16xf32>
    %229 = arith.addf %227, %228 : vector<32x16xf32>
    %230 = vector.extract_strided_slice %226 {offsets = [64, 0], sizes = [32, 16], strides = [1, 1]} : vector<96x16xf32> to vector<32x16xf32>
    %231 = arith.addf %229, %230 : vector<32x16xf32>
    %232 = arith.addf %15, %231 : vector<32x16xf32>
    %cst_72 = arith.constant 1.000000e+00 : f32
    %233 = vector.broadcast %cst_72 : f32 to vector<32x16xf32>
    %234 = arith.mulf %232, %233 : vector<32x16xf32>
    %c0_73 = arith.constant 0 : index
    %c48 = arith.constant 48 : index
    %235 = vector.load %arg6[%c0_73, %c48] : memref<32x80xf32, #tpu.memory_space<vmem>>, vector<32x16xf32>
    tpu.vector_store %arg6[%c0_73, %c48], %234 {strides = array<i32>} : memref<32x80xf32, #tpu.memory_space<vmem>>, vector<32x16xf32>,
    %236 = arith.addf %181, %231 : vector<32x16xf32>
    %237 = arith.mulf %231, %231 : vector<32x16xf32>
    %238 = arith.addf %183, %237 : vector<32x16xf32>
    %c0_74 = arith.constant 0 : index
    %239 = memref.load %arg1[%c0_74] : memref<1xi32, #tpu.memory_space<smem>>
    %c5_i32_75 = arith.constant 5 : i32
    %240 = arith.muli %arg0, %c5_i32_75 : i32
    %c4_i32 = arith.constant 4 : i32
    %241 = arith.addi %240, %c4_i32 : i32
    %c1663821211_i32_76 = arith.constant 1663821211 : i32
    %242 = arith.muli %241, %c1663821211_i32_76 : i32
    %243 = arith.addi %239, %242 : i32
    %c-1640531535_i32_77 = arith.constant -1640531535 : i32
    %244 = vector.broadcast %c-1640531535_i32_77 : i32 to vector<96x16xi32>
    %245 = arith.muli %20, %244 : vector<96x16xi32>
    %246 = vector.broadcast %243 : i32 to vector<96x16xi32>
    %247 = arith.addi %245, %246 : vector<96x16xi32>
    %c16_i32_78 = arith.constant 16 : i32
    %248 = vector.broadcast %c16_i32_78 : i32 to vector<96x16xi32>
    %249 = arith.shrui %247, %248 : vector<96x16xi32>
    %250 = arith.xori %247, %249 : vector<96x16xi32>
    %c-2048144789_i32_79 = arith.constant -2048144789 : i32
    %251 = vector.broadcast %c-2048144789_i32_79 : i32 to vector<96x16xi32>
    %252 = arith.muli %250, %251 : vector<96x16xi32>
    %c13_i32_80 = arith.constant 13 : i32
    %253 = vector.broadcast %c13_i32_80 : i32 to vector<96x16xi32>
    %254 = arith.shrui %252, %253 : vector<96x16xi32>
    %255 = arith.xori %252, %254 : vector<96x16xi32>
    %c-1028477387_i32_81 = arith.constant -1028477387 : i32
    %256 = vector.broadcast %c-1028477387_i32_81 : i32 to vector<96x16xi32>
    %257 = arith.muli %255, %256 : vector<96x16xi32>
    %c16_i32_82 = arith.constant 16 : i32
    %258 = vector.broadcast %c16_i32_82 : i32 to vector<96x16xi32>
    %259 = arith.shrui %257, %258 : vector<96x16xi32>
    %260 = arith.xori %257, %259 : vector<96x16xi32>
    %c16777215_i32_83 = arith.constant 16777215 : i32
    %261 = vector.broadcast %c16777215_i32_83 : i32 to vector<96x16xi32>
    %262 = arith.andi %260, %261 : vector<96x16xi32>
    %263 = arith.sitofp %262 : vector<96x16xi32> to vector<96x16xf32>
    %cst_84 = arith.constant 5.96046448E-8 : f32
    %264 = vector.broadcast %cst_84 : f32 to vector<96x16xf32>
    %265 = arith.mulf %263, %264 : vector<96x16xf32>
    %cst_85 = arith.constant 5.000000e-01 : f32
    %266 = vector.broadcast %cst_85 : f32 to vector<96x16xf32>
    %267 = arith.subf %265, %266 : vector<96x16xf32>
    %268 = math.absf %267 : vector<96x16xf32>
    %cst_86 = arith.constant 2.000000e+00 : f32
    %269 = vector.broadcast %cst_86 : f32 to vector<96x16xf32>
    %270 = arith.mulf %269, %268 : vector<96x16xf32>
    %cst_87 = arith.constant 1.000000e+00 : f32
    %271 = vector.broadcast %cst_87 : f32 to vector<96x16xf32>
    %272 = arith.subf %271, %270 : vector<96x16xf32>
    %cst_88 = arith.constant 9.99999996E-13 : f32
    %273 = vector.broadcast %cst_88 : f32 to vector<96x16xf32>
    %274 = arith.maximumf %272, %273 : vector<96x16xf32>
    %275 = math.log %274 : vector<96x16xf32>
    %cst_89 = arith.constant 0.000000e+00 : f32
    %276 = vector.broadcast %cst_89 : f32 to vector<96x16xf32>
    %277 = arith.cmpf oge, %267, %276 : vector<96x16xf32>
    %cst_90 = arith.constant 0.000000e+00 : f32
    %278 = vector.broadcast %cst_90 : f32 to vector<96x16xf32>
    %279 = arith.subf %278, %275 : vector<96x16xf32>
    %280 = arith.select %277, %279, %275 : vector<96x16xi1>, vector<96x16xf32>
    %281 = arith.mulf %8, %280 : vector<96x16xf32>
    %282 = vector.extract_strided_slice %281 {offsets = [0, 0], sizes = [32, 16], strides = [1, 1]} : vector<96x16xf32> to vector<32x16xf32>
    %283 = vector.extract_strided_slice %281 {offsets = [32, 0], sizes = [32, 16], strides = [1, 1]} : vector<96x16xf32> to vector<32x16xf32>
    %284 = arith.addf %282, %283 : vector<32x16xf32>
    %285 = vector.extract_strided_slice %281 {offsets = [64, 0], sizes = [32, 16], strides = [1, 1]} : vector<96x16xf32> to vector<32x16xf32>
    %286 = arith.addf %284, %285 : vector<32x16xf32>
    %287 = arith.addf %15, %286 : vector<32x16xf32>
    %cst_91 = arith.constant 1.000000e+00 : f32
    %288 = vector.broadcast %cst_91 : f32 to vector<32x16xf32>
    %289 = arith.mulf %287, %288 : vector<32x16xf32>
    %c0_92 = arith.constant 0 : index
    %c64 = arith.constant 64 : index
    %290 = vector.load %arg6[%c0_92, %c64] : memref<32x80xf32, #tpu.memory_space<vmem>>, vector<32x16xf32>
    tpu.vector_store %arg6[%c0_92, %c64], %289 {strides = array<i32>} : memref<32x80xf32, #tpu.memory_space<vmem>>, vector<32x16xf32>,
    %291 = arith.addf %236, %286 : vector<32x16xf32>
    %292 = arith.mulf %286, %286 : vector<32x16xf32>
    %293 = arith.addf %238, %292 : vector<32x16xf32>
    %cst_93 = arith.constant 2.000000e-01 : f32
    %294 = vector.broadcast %cst_93 : f32 to vector<32x16xf32>
    %295 = arith.mulf %291, %294 : vector<32x16xf32>
    %296 = arith.mulf %291, %295 : vector<32x16xf32>
    %297 = arith.subf %293, %296 : vector<32x16xf32>
    %cst_94 = arith.constant 2.500000e-01 : f32
    %298 = vector.broadcast %cst_94 : f32 to vector<32x16xf32>
    %299 = arith.mulf %297, %298 : vector<32x16xf32>
    %cst_95 = arith.constant 0.000000e+00 : f32
    %300 = vector.broadcast %cst_95 : f32 to vector<32x16xf32>
    %301 = arith.maximumf %299, %300 : vector<32x16xf32>
    %302 = arith.addf %15, %295 : vector<32x16xf32>
    %cst_96 = arith.constant 1.000000e+00 : f32
    %303 = vector.broadcast %cst_96 : f32 to vector<32x16xf32>
    %304 = arith.mulf %302, %303 : vector<32x16xf32>
    %cst_97 = arith.constant 1.000000e+00 : f32
    %305 = vector.broadcast %cst_97 : f32 to vector<32x16xf32>
    %306 = arith.mulf %301, %305 : vector<32x16xf32>
    %cst_98 = arith.constant 9.99999968E-21 : f32
    %307 = vector.broadcast %cst_98 : f32 to vector<32x16xf32>
    %308 = arith.addf %306, %307 : vector<32x16xf32>
    %cst_99 = arith.constant 0.000000e+00 : f32
    %309 = vector.broadcast %cst_99 : f32 to vector<32x16xf32>
    %310 = arith.subf %304, %309 : vector<32x16xf32>
    %311 = arith.mulf %310, %310 : vector<32x16xf32>
    %312 = arith.addf %308, %311 : vector<32x16xf32>
    %313 = vector.shape_cast %312 : vector<32x16xf32> to vector<1x32x16xf32>
    %cst_100 = arith.constant dense<0.000000e+00> : vector<1xf32>
    %314 = vector.multi_reduction <add>, %313, %cst_100 [1, 2] : vector<1x32x16xf32> to vector<1xf32>
    %315 = vector.shape_cast %314 : vector<1xf32> to vector<1x1x1xf32>
    %316 = vector.extract %315[0, 0, 0] : f32 from vector<1x1x1xf32>
    %317 = math.log %308 : vector<32x16xf32>
    %318 = vector.shape_cast %317 : vector<32x16xf32> to vector<1x32x16xf32>
    %cst_101 = arith.constant dense<0.000000e+00> : vector<1xf32>
    %319 = vector.multi_reduction <add>, %318, %cst_101 [1, 2] : vector<1x32x16xf32> to vector<1xf32>
    %320 = vector.shape_cast %319 : vector<1xf32> to vector<1x1x1xf32>
    %321 = vector.extract %320[0, 0, 0] : f32 from vector<1x1x1xf32>
    %cst_102 = arith.constant -2357.84717 : f32
    %322 = arith.subf %cst_102, %321 : f32
    %cst_103 = arith.constant 5.000000e-01 : f32
    %323 = arith.mulf %cst_103, %322 : f32
    %cst_104 = arith.constant 2.560000e+02 : f32
    %324 = arith.subf %323, %cst_104 : f32
    %cst_105 = arith.constant 5.000000e+01 : f32
    %325 = arith.mulf %cst_105, %316 : f32
    %326 = arith.addf %324, %325 : f32
    %327 = vector.broadcast %326 : f32 to vector<1x8x128xf32>
    %c0_106 = arith.constant 0 : index
    %c0_107 = arith.constant 0 : index
    %c0_108 = arith.constant 0 : index
    %328 = vector.load %arg5[%c0_106, %c0_107, %c0_108] : memref<1x8x128xf32, #tpu.memory_space<vmem>>, vector<1x8x128xf32>
    tpu.vector_store %arg5[%c0_106, %c0_107, %c0_108], %327 {strides = array<i32>} : memref<1x8x128xf32, #tpu.memory_space<vmem>>, vector<1x8x128xf32>,
    %c0_109 = arith.constant 0 : index
    %c0_110 = arith.constant 0 : index
    %329 = vector.load %arg2[%c0_109, %c0_110] : memref<8x31xf32, #tpu.memory_space<vmem>>, vector<8x31xf32>
    %c0_111 = arith.constant 0 : index
    %c0_112 = arith.constant 0 : index
    %330 = vector.load %arg6[%c0_111, %c0_112] : memref<32x80xf32, #tpu.memory_space<vmem>>, vector<31x80xf32>
    %cst_113 = arith.constant dense<0.000000e+00> : vector<8x80xf32>
    %331 = tpu.matmul %329, %330, %cst_113 {dimension_numbers = #tpu.dot_dimension_numbers<[1], [0], [0], [1], [0, 0, 1, 1], [], []>} : vector<8x31xf32>, vector<31x80xf32>, vector<8x80xf32> -> vector<8x80xf32>
    %c31 = arith.constant 31 : index
    %c0_114 = arith.constant 0 : index
    %332 = vector.load %arg6[%c31, %c0_114] : memref<32x80xf32, #tpu.memory_space<vmem>>, vector<1x80xf32>
    %cst_115 = arith.constant 1.000000e+00 : f32
    %333 = vector.broadcast %cst_115 : f32 to vector<1x80xf32>
    %334 = arith.mulf %333, %332 : vector<1x80xf32>
    %335 = vector.broadcast %334 : vector<1x80xf32> to vector<8x80xf32>
    %336 = arith.addf %331, %335 : vector<8x80xf32>
    %337 = vector.extract_strided_slice %336 {offsets = [0, 0], sizes = [8, 16], strides = [1, 1]} : vector<8x80xf32> to vector<8x16xf32>
    %c0_116 = arith.constant 0 : index
    %c0_117 = arith.constant 0 : index
    %c0_118 = arith.constant 0 : index
    %338 = vector.load %arg4[%c0_116, %c0_117, %c0_118] : memref<5x8x16xf32, #tpu.memory_space<vmem>>, vector<1x8x16xf32>
    %339 = vector.shape_cast %338 : vector<1x8x16xf32> to vector<8x16xf32>
    %340 = vector.shape_cast %337 : vector<8x16xf32> to vector<1x8x16xf32>
    tpu.vector_store %arg4[%c0_116, %c0_117, %c0_118], %340 {strides = array<i32>} : memref<5x8x16xf32, #tpu.memory_space<vmem>>, vector<1x8x16xf32>,
    %341 = vector.extract_strided_slice %336 {offsets = [0, 16], sizes = [8, 16], strides = [1, 1]} : vector<8x80xf32> to vector<8x16xf32>
    %c1 = arith.constant 1 : index
    %c0_119 = arith.constant 0 : index
    %c0_120 = arith.constant 0 : index
    %342 = vector.load %arg4[%c1, %c0_119, %c0_120] : memref<5x8x16xf32, #tpu.memory_space<vmem>>, vector<1x8x16xf32>
    %343 = vector.shape_cast %342 : vector<1x8x16xf32> to vector<8x16xf32>
    %344 = vector.shape_cast %341 : vector<8x16xf32> to vector<1x8x16xf32>
    tpu.vector_store %arg4[%c1, %c0_119, %c0_120], %344 {strides = array<i32>} : memref<5x8x16xf32, #tpu.memory_space<vmem>>, vector<1x8x16xf32>,
    %345 = vector.extract_strided_slice %336 {offsets = [0, 32], sizes = [8, 16], strides = [1, 1]} : vector<8x80xf32> to vector<8x16xf32>
    %c2 = arith.constant 2 : index
    %c0_121 = arith.constant 0 : index
    %c0_122 = arith.constant 0 : index
    %346 = vector.load %arg4[%c2, %c0_121, %c0_122] : memref<5x8x16xf32, #tpu.memory_space<vmem>>, vector<1x8x16xf32>
    %347 = vector.shape_cast %346 : vector<1x8x16xf32> to vector<8x16xf32>
    %348 = vector.shape_cast %345 : vector<8x16xf32> to vector<1x8x16xf32>
    tpu.vector_store %arg4[%c2, %c0_121, %c0_122], %348 {strides = array<i32>} : memref<5x8x16xf32, #tpu.memory_space<vmem>>, vector<1x8x16xf32>,
    %349 = vector.extract_strided_slice %336 {offsets = [0, 48], sizes = [8, 16], strides = [1, 1]} : vector<8x80xf32> to vector<8x16xf32>
    %c3 = arith.constant 3 : index
    %c0_123 = arith.constant 0 : index
    %c0_124 = arith.constant 0 : index
    %350 = vector.load %arg4[%c3, %c0_123, %c0_124] : memref<5x8x16xf32, #tpu.memory_space<vmem>>, vector<1x8x16xf32>
    %351 = vector.shape_cast %350 : vector<1x8x16xf32> to vector<8x16xf32>
    %352 = vector.shape_cast %349 : vector<8x16xf32> to vector<1x8x16xf32>
    tpu.vector_store %arg4[%c3, %c0_123, %c0_124], %352 {strides = array<i32>} : memref<5x8x16xf32, #tpu.memory_space<vmem>>, vector<1x8x16xf32>,
    %353 = vector.extract_strided_slice %336 {offsets = [0, 64], sizes = [8, 16], strides = [1, 1]} : vector<8x80xf32> to vector<8x16xf32>
    %c4 = arith.constant 4 : index
    %c0_125 = arith.constant 0 : index
    %c0_126 = arith.constant 0 : index
    %354 = vector.load %arg4[%c4, %c0_125, %c0_126] : memref<5x8x16xf32, #tpu.memory_space<vmem>>, vector<1x8x16xf32>
    %355 = vector.shape_cast %354 : vector<1x8x16xf32> to vector<8x16xf32>
    %356 = vector.shape_cast %353 : vector<8x16xf32> to vector<1x8x16xf32>
    tpu.vector_store %arg4[%c4, %c0_125, %c0_126], %356 {strides = array<i32>} : memref<5x8x16xf32, #tpu.memory_space<vmem>>, vector<1x8x16xf32>,
    return
  }
  func.func @transform_0(%arg0: i32, %arg1: memref<1xi32, #tpu.memory_space<smem>>) -> (i32, i32) {
    %c0_i32 = arith.constant 0 : i32
    %c0_i32_0 = arith.constant 0 : i32
    %c0_i32_1 = arith.constant 0 : i32
    return %c0_i32, %c0_i32_0 : i32, i32
  }
  func.func @transform_1(%arg0: i32, %arg1: memref<1xi32, #tpu.memory_space<smem>>) -> (i32, i32) {
    %c0_i32 = arith.constant 0 : i32
    %c0_i32_0 = arith.constant 0 : i32
    return %c0_i32, %arg0 : i32, i32
  }
  func.func @transform_2(%arg0: i32, %arg1: memref<1xi32, #tpu.memory_space<smem>>) -> (i32, i32, i32) {
    %c0_i32 = arith.constant 0 : i32
    %c0_i32_0 = arith.constant 0 : i32
    %c0_i32_1 = arith.constant 0 : i32
    return %c0_i32, %c0_i32_0, %arg0 : i32, i32, i32
  }
  func.func @transform_3(%arg0: i32, %arg1: memref<1xi32, #tpu.memory_space<smem>>) -> (i32, i32, i32) {
    %c0_i32 = arith.constant 0 : i32
    %c0_i32_0 = arith.constant 0 : i32
    %c0_i32_1 = arith.constant 0 : i32
    return %arg0, %c0_i32, %c0_i32_0 : i32, i32, i32
  }
}

</mosaic_0001>

<bundles_post_ra>
// kernel: tpu_custom_call.1
= control target key start
LH: loop header
LB: loop body
LE: loop exit
PB: predicated region body
PF: predicated region fallthrough
CT: control target
= control target key end

     0   :  { %11 = vsyncpa [#allocation6], 0  ;;  %v101_v3 = vlaneseq  ;;  %s3346_s0 = inlined_call_operand.<no memory space> [shape: s32[1], index: 0, kind: input, shape index: {}]   ;;  %s3347_s1 = inlined_call_operand.vmem [shape: f32[8,31], index: 1, kind: input, shape index: {}]   ;;  %s3348_s2 = inlined_call_operand.vmem [shape: f32[96,16], index: 2, kind: input, shape index: {}]   ;;  %s3349_s3 = inlined_call_operand.hbm [shape: f32[5,8,16], index: 3, kind: output, shape index: {0}]   ;;  %s3350_s4 = inlined_call_operand.hbm [shape: f32[1,8,128], index: 4, kind: output, shape index: {1}]  }
   0x1   :  { %v17_v0 = vld [vmem:[%s3348_s2] sm:$0xff]  ;;  %v2323_v16 = vld [vmem:[%s3348_s2 + $0x8] sm:$0xff]  ;;  %s783_s25 = sadd.s32 3327642422, %s3346_s0 }
   0x2   :  { %v21_v1 = vld [vmem:[%s3348_s2 + $0x20] sm:$0xff]  ;;  %v29_v4 = vmul.f32 -0.0058, %v17_v0  ;;  %v53_v8 = vmul.f32 0.0324, %v17_v0  ;;  %v2316_v14 = vshrl.u32 %v101_v3, 7 }
   0x3   :  { %v25_v2 = vld [vmem:[%s3348_s2 + $0x40] sm:$0xff]  ;;  %v33_v5 = vmul.f32 -0.0058, %v21_v1  ;;  %v89_v7 = vadd.f32 %v21_v1, %v17_v0  ;;  %v57_v9 = vmul.f32 0.0324, %v21_v1  ;;  %v2318_v15 = vand.u32 127, %v101_v3 }
   0x4   :  { %v37_v6 = vmul.f32 -0.0058, %v25_v2  ;;  %v41_v10 = vmul.f32 %v29_v4, %v17_v0  ;;  %v61_v13 = vmul.f32 0.0324, %v25_v2 }
   0x5   :  { %v45_v11 = vmul.f32 %v33_v5, %v21_v1  ;;  %v93_v17 = vadd.f32 %v89_v7, %v25_v2 }
   0x6   :  { %v49_v12 = vmul.f32 %v37_v6, %v25_v2 }
   0x7   :  { %12 = vsyncpa [#allocation8], 0  ;;  %v106_v18 = vadd.s32 32, %v2316_v14  ;;  %v110_v19 = vadd.s32 64, %v2316_v14  ;;  %v116_v20 = vmul.u32 16, %v2316_v14  ;;  %v65_v21 = vadd.f32 %v53_v8, %v41_v10  ;;  %v2337_v24 = vld [vmem:[%s3348_s2 + $0x28] sm:$0xff] }
   0x8   :  { %s457_s28 = sadd.s32 1663821211, %s3346_s0  ;;  %v69_v22 = vadd.f32 %v57_v9, %v45_v11  ;;  %v73_v23 = vadd.f32 %v61_v13, %v49_v12  ;;  %v30_v25 = vmul.f32 -0.0058, %v2323_v16  ;;  %v2341_v29 = vadd.f32 -7.2, %v93_v17 }
   0x9   :  { %v120_v26 = vmul.u32 16, %v106_v18  ;;  %v124_v27 = vmul.u32 16, %v110_v19  ;;  %v128_v28 = vadd.s32 %v116_v20, %v2318_v15  ;;  %v2343_v30 = vstv %s783_s25  ;;  %v2359_v36 = vld [vmem:[%s3348_s2 + $0x48] sm:$0xff]  ;;  %s1109_s11 = sadd.s32 696496337, %s3346_s0  ;;  %s2267_s12 = smov 32  }
   0xa   :  { %v2348_v31 = vstv %s3346_s0  ;;  %v2350_v32 = vstv %s457_s28  ;;  %v2362_v37 = vmul.f32 -0.0058, %v2337_v24  ;;  %v2364_v38 = vadd.f32 0.0141, %v65_v21  ;;  %s2268_s13 = smov 16  }
   0xb   :  { %v132_v33 = vadd.s32 %v120_v26, %v2318_v15  ;;  %v136_v34 = vadd.s32 %v124_v27, %v2318_v15  ;;  %v2354_v35 = vmul.u32 2654435761, %v128_v28  ;;  %v2366_v39 = vadd.f32 0.0141, %v69_v22  ;;  %s1435_s16 = sadd.s32 2360317548, %s3346_s0 }
   0xc   :  { %v2368_v40 = vadd.f32 0.0141, %v73_v23  ;;  %v2371_v41 = vmul.f32 %v30_v25, %v2323_v16  ;;  %v2384_v47 = vmul.f32 -0.0058, %v2359_v36  ;;  %v2387_v48 = vmul.f32 0.0324, %v2323_v16 }
   0xd   :  { %v2373_v42 = vmul.u32 2654435761, %v132_v33  ;;  %v2375_v43 = vmul.u32 2654435761, %v136_v34  ;;  %v785_v44 = vadd.s32 %v2343_v30, %v2354_v35  ;;  %v156_v45 = vadd.s32 %v2348_v31, %v2354_v35  ;;  %s2269_s0 = smov 48  }
   0xe   :  { %v459_v46 = vadd.s32 %v2350_v32, %v2354_v35  ;;  %v2390_v49 = vmul.f32 0.0324, %v2337_v24  ;;  %v2405_v33 = vmul.f32 0.0324, %v2359_v36 }
   0xf   :  { %v789_v50 = vadd.s32 %v2343_v30, %v2373_v42  ;;  %v793_v51 = vadd.s32 %v2343_v30, %v2375_v43  ;;  %v797_v52 = vshrl.u32 %v785_v44, 16  ;;  %v160_v53 = vadd.s32 %v2348_v31, %v2373_v42 }
  0x10   :  { %v164_v54 = vadd.s32 %v2348_v31, %v2375_v43  ;;  %v168_v55 = vshrl.u32 %v156_v45, 16  ;;  %v463_v56 = vadd.s32 %v2350_v32, %v2373_v42  ;;  %v467_v57 = vadd.s32 %v2350_v32, %v2375_v43 }
  0x11   :  { %v801_v58 = vshrl.u32 %v789_v50, 16  ;;  %v805_v59 = vshrl.u32 %v793_v51, 16  ;;  %v809_v60 = vxor.u32 %v797_v52, %v785_v44  ;;  %v172_v61 = vshrl.u32 %v160_v53, 16 }
  0x12   :  { %v176_v62 = vshrl.u32 %v164_v54, 16  ;;  %v180_v63 = vxor.u32 %v168_v55, %v156_v45  ;;  %v471_v0 = vshrl.u32 %v459_v46, 16  ;;  %v475_v1 = vshrl.u32 %v463_v56, 16 }
  0x13   :  { %v813_v2 = vxor.u32 %v801_v58, %v789_v50  ;;  %v817_v3 = vxor.u32 %v805_v59, %v793_v51  ;;  %v821_v4 = vmul.u32 2246822507, %v809_v60  ;;  %v184_v5 = vxor.u32 %v172_v61, %v160_v53 }
  0x14   :  { %v188_v6 = vxor.u32 %v176_v62, %v164_v54  ;;  %v192_v7 = vmul.u32 2246822507, %v180_v63  ;;  %v479_v8 = vshrl.u32 %v467_v57, 16  ;;  %v483_v9 = vxor.u32 %v471_v0, %v459_v46 }
  0x15   :  { %v825_v10 = vmul.u32 2246822507, %v813_v2  ;;  %v829_v11 = vmul.u32 2246822507, %v817_v3  ;;  %v833_v12 = vshrl.u32 %v821_v4, 13  ;;  %v487_v13 = vxor.u32 %v475_v1, %v463_v56 }
  0x16   :  { %v196_v17 = vmul.u32 2246822507, %v184_v5  ;;  %v200_v18 = vmul.u32 2246822507, %v188_v6  ;;  %v204_v19 = vshrl.u32 %v192_v7, 13  ;;  %v491_v20 = vxor.u32 %v479_v8, %v467_v57 }
  0x17   :  { %v837_v21 = vshrl.u32 %v825_v10, 13  ;;  %v841_v22 = vshrl.u32 %v829_v11, 13  ;;  %v845_v23 = vxor.u32 %v833_v12, %v821_v4  ;;  %v495_v25 = vmul.u32 2246822507, %v483_v9 }
  0x18   :  { %v208_v26 = vshrl.u32 %v196_v17, 13  ;;  %v212_v27 = vshrl.u32 %v200_v18, 13  ;;  %v216_v28 = vxor.u32 %v204_v19, %v192_v7  ;;  %v499_v46 = vmul.u32 2246822507, %v487_v13 }
  0x19   :  { %v849_v34 = vxor.u32 %v837_v21, %v825_v10  ;;  %v853_v44 = vxor.u32 %v841_v22, %v829_v11  ;;  %v857_v45 = vmul.u32 3266489909, %v845_v23  ;;  %v503_v53 = vmul.u32 2246822507, %v491_v20 }
  0x1a   :  { %v220_v50 = vxor.u32 %v208_v26, %v196_v17  ;;  %v224_v51 = vxor.u32 %v212_v27, %v200_v18  ;;  %v228_v52 = vmul.u32 3266489909, %v216_v28  ;;  %v507_v57 = vshrl.u32 %v495_v25, 13 }
  0x1b   :  { %v861_v54 = vmul.u32 3266489909, %v849_v34  ;;  %v865_v55 = vmul.u32 3266489909, %v853_v44  ;;  %v869_v56 = vshrl.u32 %v857_v45, 16  ;;  %v46_v61 = vmul.f32 %v2362_v37, %v2337_v24 }
  0x1c   :  { %v232_v58 = vmul.u32 3266489909, %v220_v50  ;;  %v236_v59 = vmul.u32 3266489909, %v224_v51  ;;  %v240_v60 = vshrl.u32 %v228_v52, 16  ;;  %v511_v1 = vshrl.u32 %v499_v46, 13 }
  0x1d   :  { %v873_v62 = vshrl.u32 %v861_v54, 16  ;;  %v877_v63 = vshrl.u32 %v865_v55, 16  ;;  %v881_v0 = vxor.u32 %v869_v56, %v857_v45  ;;  %v515_v5 = vshrl.u32 %v503_v53, 13 }
  0x1e   :  { %v244_v2 = vshrl.u32 %v232_v58, 16  ;;  %v248_v3 = vshrl.u32 %v236_v59, 16  ;;  %v252_v4 = vxor.u32 %v240_v60, %v228_v52  ;;  %v519_v9 = vxor.u32 %v507_v57, %v495_v25 }
  0x1f   :  { %v885_v6 = vxor.u32 %v873_v62, %v861_v54  ;;  %v889_v7 = vxor.u32 %v877_v63, %v865_v55  ;;  %v893_v8 = vand.u32 16777215, %v881_v0  ;;  %v2411_v13 = vmul.f32 %v2384_v47, %v2359_v36 }
  0x20   :  { %v256_v10 = vxor.u32 %v244_v2, %v232_v58  ;;  %v260_v11 = vxor.u32 %v248_v3, %v236_v59  ;;  %v264_v12 = vand.u32 16777215, %v252_v4  ;;  %v523_v19 = vxor.u32 %v511_v1, %v499_v46 }
  0x21   :  { %v897_v37 = vand.u32 16777215, %v885_v6  ;;  %v901_v17 = vand.u32 16777215, %v889_v7  ;;  %v905_v18 = vcvt.s32.f32 %v893_v8  ;;  %v527_v23 = vxor.u32 %v515_v5, %v503_v53 }
  0x22   :  { %v268_v20 = vand.u32 16777215, %v256_v10  ;;  %v272_v21 = vand.u32 16777215, %v260_v11  ;;  %v276_v22 = vcvt.s32.f32 %v264_v12  ;;  %v531_v34 = vmul.u32 3266489909, %v519_v9 }
  0x23   :  { %v909_v26 = vcvt.s32.f32 %v897_v37  ;;  %v913_v27 = vcvt.s32.f32 %v901_v17  ;;  %v917_v28 = vmul.f32 5.9604645e-08, %v905_v18  ;;  %v2415_v50 = vadd.f32 %v2387_v48, %v2371_v41 }
  0x24   :  { %v280_v25 = vcvt.s32.f32 %v268_v20  ;;  %v284_v44 = vcvt.s32.f32 %v272_v21  ;;  %v288_v45 = vmul.f32 5.9604645e-08, %v276_v22  ;;  %v535_v46 = vmul.u32 3266489909, %v523_v19 }
  0x25   :  { %v921_v47 = vmul.f32 5.9604645e-08, %v909_v26  ;;  %v925_v51 = vmul.f32 5.9604645e-08, %v913_v27  ;;  %v2417_v52 = vadd.f32 -0.5, %v917_v28  ;;  %v539_v53 = vmul.u32 3266489909, %v527_v23 }
  0x26   :  { %v292_v54 = vmul.f32 5.9604645e-08, %v280_v25  ;;  %v296_v55 = vmul.f32 5.9604645e-08, %v284_v44  ;;  %v2419_v56 = vadd.f32 -0.5, %v288_v45  ;;  %v543_v60 = vshrl.u32 %v531_v34, 16 }
  0x27   :  { %v2421_v57 = vadd.f32 -0.5, %v921_v47  ;;  %v2423_v58 = vadd.f32 -0.5, %v925_v51  ;;  %v941_v59 = vand.u32 2147483647, %v2417_v52  ;;  %v2432_v63 = vadd.f32 %v2390_v49, %v46_v61 }
  0x28   :  { %v2426_v62 = vadd.f32 -0.5, %v292_v54  ;;  %v2428_v41 = vadd.f32 -0.5, %v296_v55  ;;  %v312_v48 = vand.u32 2147483647, %v2419_v56  ;;  %v547_v3 = vshrl.u32 %v535_v46, 16 }
  0x29   :  { %v945_v0 = vand.u32 2147483647, %v2421_v57  ;;  %v949_v1 = vand.u32 2147483647, %v2423_v58  ;;  %v953_v2 = vmul.f32 2.0, %v941_v59  ;;  %v551_v7 = vshrl.u32 %v539_v53, 16 }
  0x2a   :  { %v316_v4 = vand.u32 2147483647, %v2426_v62  ;;  %v320_v5 = vand.u32 2147483647, %v2428_v41  ;;  %v324_v6 = vmul.f32 2.0, %v312_v48  ;;  %v555_v11 = vxor.u32 %v543_v60, %v531_v34 }
  0x2b   :  { %v957_v8 = vmul.f32 2.0, %v945_v0  ;;  %v961_v9 = vmul.f32 2.0, %v949_v1  ;;  %v965_v10 = vsub.f32 1.0, %v953_v2  ;;  %v103_v61 = vadd.s32 8, %v2316_v14 }
  0x2c   :  { %v328_v12 = vmul.f32 2.0, %v316_v4  ;;  %v332_v37 = vmul.f32 2.0, %v320_v5  ;;  %v336_v49 = vsub.f32 1.0, %v324_v6  ;;  %v559_v20 = vxor.u32 %v547_v3, %v535_v46 }
  0x2d   :  { %v969_v17 = vsub.f32 1.0, %v957_v8  ;;  %v973_v18 = vsub.f32 1.0, %v961_v9  ;;  %v977_v19 = vmax.f32 %v965_v10, 1e-12  ;;  %v563_v26 = vxor.u32 %v551_v7, %v539_v53 }
  0x2e   :  { %v340_v21 = vsub.f32 1.0, %v328_v12  ;;  %v344_v22 = vsub.f32 1.0, %v332_v37  ;;  %v348_v23 = vmax.f32 %v336_v49, 1e-12  ;;  %v567_v25 = vand.u32 16777215, %v555_v11 }
  0x2f   :  { %v981_v27 = vmax.f32 %v969_v17, 1e-12  ;;  %v985_v28 = vmax.f32 %v973_v18, 1e-12  ;;  %2091 = vlog2.f32 %v977_v19  ;;  %v571_v34 = vand.u32 16777215, %v559_v20 }
  0x30   :  { %v352_v44 = vmax.f32 %v340_v21, 1e-12  ;;  %v356_v45 = vmax.f32 %v344_v22, 1e-12  ;;  %2093 = vlog2.f32 %v348_v23  ;;  %v575_v47 = vand.u32 16777215, %v563_v26 }
  0x31   :  { %2095 = vlog2.f32 %v981_v27  ;;  %v579_v51 = vcvt.s32.f32 %v567_v25  ;;  %v2441_v54 = vadd.f32 %v2337_v24, %v2323_v16  ;;  %v583_v46 = vcvt.s32.f32 %v571_v34 }
  0x32   :  { %2097 = vlog2.f32 %v985_v28  ;;  %v2445_v55 = vadd.f32 %v2405_v33, %v2411_v13  ;;  %v107_v53 = vadd.s32 40, %v2316_v14  ;;  %vm1013_vm0 = vcmp.ge.f32.partialorder %v2417_v52, 0.0 }
  0x33   :  { %2099 = vlog2.f32 %v352_v44  ;;  %v587_v59 = vcvt.s32.f32 %v575_v47  ;;  %v591_v60 = vmul.f32 5.9604645e-08, %v579_v51  ;;  %v111_v48 = vadd.s32 72, %v2316_v14 }
  0x34   :  { %2101 = vlog2.f32 %v356_v45  ;;  %vm384_vm1 = vcmp.ge.f32.partialorder %v2419_v56, 0.0  ;;  %v595_v16 = vmul.f32 5.9604645e-08, %v583_v46  ;;  %v117_v24 = vmul.u32 16, %v103_v61 }
  0x35   :  { %v599_v0 = vmul.f32 5.9604645e-08, %v587_v59  ;;  %v2451_v1 = vadd.f32 -0.5, %v591_v60  ;;  %v121_v2 = vmul.u32 16, %v107_v53  ;;  %v125_v33 = vmul.u32 16, %v111_v48 }
  0x36   :  { %vm1017_vm2 = vcmp.ge.f32.partialorder %v2421_v57, 0.0  ;;  %vm1021_vm3 = vcmp.ge.f32.partialorder %v2423_v58, 0.0  ;;  %v2455_v13 = vadd.f32 -0.5, %v595_v16  ;;  %v129_v3 = vadd.s32 %v117_v24, %v2318_v15 }
  0x37   :  { %vm388_vm4 = vcmp.ge.f32.partialorder %v2426_v62, 0.0  ;;  %v2462_v4 = vadd.f32 -0.5, %v599_v0  ;;  %v615_v5 = vand.u32 2147483647, %v2451_v1  ;;  %v133_v6 = vadd.s32 %v121_v2, %v2318_v15 }
  0x38   :  { %vm392_vm5 = vcmp.ge.f32.partialorder %v2428_v41, 0.0  ;;  %v619_v7 = vand.u32 2147483647, %v2455_v13  ;;  %v137_v8 = vadd.s32 %v125_v33, %v2318_v15  ;;  %v2469_v9 = vmul.u32 2654435761, %v129_v3 }
  0x39   :  { %v2092_v10 = vpop.eup %2091  ;;  %v623_v11 = vand.u32 2147483647, %v2462_v4  ;;  %v627_v12 = vmul.f32 2.0, %v615_v5  ;;  %v2472_v37 = vmul.u32 2654435761, %v133_v6  ;;  %v2474_v49 = vstv %s1109_s11  ;;  %s2275_s11 = smov [#allocation7]  }
  0x3a   :  { %v2094_v61 = vpop.eup %2093  ;;  %v990_v17 = vmul.f32 0.6931472, %v2092_v10  ;;  %v631_v18 = vmul.f32 2.0, %v619_v7  ;;  %v2476_v19 = vmul.u32 2654435761, %v137_v8  ;;  %v786_v20 = vadd.s32 %v2343_v30, %v2469_v9 }
  0x3b   :  { %v2096_v21 = vpop.eup %2095  ;;  %v361_v22 = vmul.f32 0.6931472, %v2094_v61  ;;  %v635_v23 = vmul.f32 2.0, %v623_v11  ;;  %v639_v26 = vsub.f32 1.0, %v627_v12  ;;  %v790_v27 = vadd.s32 %v2343_v30, %v2472_v37 }
  0x3c   :  { %v2098_v28 = vpop.eup %2097  ;;  %v998_v25 = vmul.f32 0.6931472, %v2096_v21  ;;  %v1025_v44 = vsub.f32 0.0, %v990_v17  ;;  %v643_v45 = vsub.f32 1.0, %v631_v18  ;;  %v794_v34 = vadd.s32 %v2343_v30, %v2476_v19 }
  0x3d   :  { %v2100_v47 = vpop.eup %2099  ;;  %v1006_v51 = vmul.f32 0.6931472, %v2098_v28  ;;  %v396_v46 = vsub.f32 0.0, %v361_v22  ;;  %v647_v53 = vsub.f32 1.0, %v635_v23  ;;  %v651_v59 = vmax.f32 %v639_v26, 1e-12 }
  0x3e   :  { %v2102_v60 = vpop.eup %2101  ;;  %v1029_v48 = vsub.f32 0.0, %v998_v25  ;;  %v1037_v16 = vsel %vm1013_vm0, %v1025_v44, %v990_v17  ;;  %v369_v24 = vmul.f32 0.6931472, %v2100_v47  ;;  %v655_v0 = vmax.f32 %v643_v45, 1e-12 }
  0x3f   :  { %v1033_v2 = vsub.f32 0.0, %v1006_v51  ;;  %v1049_v33 = vmul.f32 %v1037_v16, %v2364_v38  ;;  %v377_v3 = vmul.f32 0.6931472, %v2102_v60  ;;  %v408_v5 = vsel %vm384_vm1, %v396_v46, %v361_v22 }
  0x40   :  { %v1041_v6 = vsel %vm1017_vm2, %v1029_v48, %v998_v25  ;;  %v400_v7 = vsub.f32 0.0, %v369_v24  ;;  %v659_v8 = vmax.f32 %v647_v53, 1e-12  ;;  %2103 = vlog2.f32 %v651_v59 }
  0x41   :  { %v1045_v10 = vsel %vm1021_vm3, %v1033_v2, %v1006_v51  ;;  %v1053_v52 = vmul.f32 %v1041_v6, %v2366_v39  ;;  %v404_v11 = vsub.f32 0.0, %v377_v3  ;;  %2105 = vlog2.f32 %v655_v0 }
  0x42   :  { %v1057_v12 = vmul.f32 %v1045_v10, %v2368_v40  ;;  %v412_v61 = vsel %vm388_vm4, %v400_v7, %v369_v24  ;;  %2107 = vlog2.f32 %v659_v8  ;;  %v420_v56 = vmul.f32 %v408_v5, %v2364_v38 }
  0x43   :  { %v1061_v57 = vadd.f32 %v1053_v52, %v1049_v33  ;;  %v416_v17 = vsel %vm392_vm5, %v404_v11, %v377_v3  ;;  %v424_v18 = vmul.f32 %v412_v61, %v2366_v39  ;;  %v798_v58 = vshrl.u32 %v786_v20, 16 }
  0x44   :  { %v428_v21 = vmul.f32 %v416_v17, %v2368_v40  ;;  %vm687_vm6 = vcmp.ge.f32.partialorder %v2451_v1, 0.0  ;;  %v802_v22 = vshrl.u32 %v790_v27, 16  ;;  %v806_v23 = vshrl.u32 %v794_v34, 16 }
  0x45   :  { %v460_v62 = vadd.s32 %v2350_v32, %v2469_v9  ;;  %v2505_v26 = vadd.f32 %v1061_v57, %v1057_v12  ;;  %vm691_vm7 = vcmp.ge.f32.partialorder %v2455_v13, 0.0  ;;  %v432_v28 = vadd.f32 %v424_v18, %v420_v56 }
  0x46   :  { %v810_v25 = vxor.u32 %v798_v58, %v786_v20  ;;  %v464_v41 = vadd.s32 %v2350_v32, %v2472_v37  ;;  %v814_v44 = vxor.u32 %v802_v22, %v790_v27  ;;  %v818_v45 = vxor.u32 %v806_v23, %v794_v34 }
  0x47   :  { %v468_v47 = vadd.s32 %v2350_v32, %v2476_v19  ;;  %v472_v51 = vshrl.u32 %v460_v62, 16  ;;  %v1069_v46 = vadd.f32 %v2341_v29, %v2505_v26  ;;  %vm695_vm8 = vcmp.ge.f32.partialorder %v2462_v4, 0.0 }
  0x48   :  { %v2515_v53 = vadd.f32 %v432_v28, %v428_v21  ;;  %v822_v59 = vmul.u32 2246822507, %v810_v25  ;;  %v826_v60 = vmul.u32 2246822507, %v814_v44  ;;  %v476_v20 = vshrl.u32 %v464_v41, 16 }
  0x49   :  { %v830_v48 = vmul.u32 2246822507, %v818_v45  ;;  %v480_v16 = vshrl.u32 %v468_v47, 16  ;;  %v2519_v27 = vmul.f32 %v2505_v26, %v2505_v26  ;;  %1077 = vrot.lane.b32.xlu1 %v1069_v46, %s2267_s12  ;;  %v484_v0 = vxor.u32 %v472_v51, %v460_v62 }
  0x4a   :  { %v2524_v34 = vmul.f32 %v2515_v53, %v2515_v53  ;;  %v834_v24 = vshrl.u32 %v822_v59, 13  ;;  %v2104_v2 = vpop.eup %2103  ;;  %v838_v33 = vshrl.u32 %v826_v60, 13  ;;  %v488_v5 = vxor.u32 %v476_v20, %v464_v41 }
  0x4b   :  { %v842_v3 = vshrl.u32 %v830_v48, 13  ;;  %v2528_v6 = vadd.s32 %v2474_v49, %v2469_v9  ;;  %v2106_v7 = vpop.eup %2105  ;;  %v664_v8 = vmul.f32 0.6931472, %v2104_v2  ;;  %v492_v52 = vxor.u32 %v480_v16, %v468_v47 }
  0x4c   :  { %v846_v10 = vxor.u32 %v834_v24, %v822_v59  ;;  %v496_v11 = vmul.u32 2246822507, %v484_v0  ;;  %v2108_v12 = vpop.eup %2107  ;;  %v672_v61 = vmul.f32 0.6931472, %v2106_v7  ;;  %v850_v56 = vxor.u32 %v838_v33, %v826_v60 }
  0x4d   :  { %v854_v57 = vxor.u32 %v842_v3, %v830_v48  ;;  %v500_v17 = vmul.u32 2246822507, %v488_v5  ;;  %v680_v18 = vmul.f32 0.6931472, %v2108_v12  ;;  %v699_v58 = vsub.f32 0.0, %v664_v8 }
  0x4e   :  { %v858_v21 = vmul.u32 3266489909, %v846_v10  ;;  %v508_v22 = vshrl.u32 %v496_v11, 13  ;;  %v703_v23 = vsub.f32 0.0, %v672_v61  ;;  %v862_v62 = vmul.u32 3266489909, %v850_v56 }
  0x4f   :  { %v866_v28 = vmul.u32 3266489909, %v854_v57  ;;  %v512_v25 = vshrl.u32 %v500_v17, 13  ;;  %v707_v41 = vsub.f32 0.0, %v680_v18  ;;  %v711_v44 = vsel %vm687_vm6, %v699_v58, %v664_v8 }
  0x50   :  { %v870_v45 = vshrl.u32 %v858_v21, 16  ;;  %v504_v47 = vmul.u32 2246822507, %v492_v52  ;;  %v715_v51 = vsel %vm691_vm7, %v703_v23, %v672_v61  ;;  %v723_v46 = vmul.f32 %v711_v44, %v2364_v38 }
  0x51   :  { %v874_v59 = vshrl.u32 %v862_v62, 16  ;;  %v878_v60 = vshrl.u32 %v866_v28, 16  ;;  %v719_v48 = vsel %vm695_vm8, %v707_v41, %v680_v18  ;;  %v727_v20 = vmul.f32 %v715_v51, %v2366_v39 }
  0x52   :  { %v882_v16 = vxor.u32 %v870_v45, %v858_v21  ;;  %v516_v24 = vshrl.u32 %v504_v47, 13  ;;  %v731_v0 = vmul.f32 %v719_v48, %v2368_v40  ;;  %v520_v33 = vxor.u32 %v508_v22, %v496_v11 }
  0x53   :  { %v886_v1 = vxor.u32 %v874_v59, %v862_v62  ;;  %v890_v2 = vxor.u32 %v878_v60, %v866_v28  ;;  %v735_v3 = vadd.f32 %v727_v20, %v723_v46  ;;  %v524_v13 = vxor.u32 %v512_v25, %v500_v17 }
  0x54   :  { %v894_v5 = vand.u32 16777215, %v882_v16  ;;  %v528_v7 = vxor.u32 %v516_v24, %v504_v47  ;;  %v532_v52 = vmul.u32 3266489909, %v520_v33  ;;  %v1116_v4 = vadd.s32 %v2474_v49, %v2472_v37 }
  0x55   :  { %v898_v8 = vand.u32 16777215, %v886_v1  ;;  %v902_v10 = vand.u32 16777215, %v890_v2  ;;  %v739_v12 = vadd.f32 %v735_v3, %v731_v0  ;;  %v536_v56 = vmul.u32 3266489909, %v524_v13 }
  0x56   :  { %v906_v61 = vcvt.s32.f32 %v894_v5  ;;  %v540_v57 = vmul.u32 3266489909, %v528_v7  ;;  %v544_v21 = vshrl.u32 %v532_v52, 16  ;;  %v1120_v11 = vadd.s32 %v2474_v49, %v2476_v19 }
  0x57   :  { %v910_v18 = vcvt.s32.f32 %v898_v8  ;;  %v914_v58 = vcvt.s32.f32 %v902_v10  ;;  %v743_v22 = vadd.f32 %v2341_v29, %v739_v12  ;;  %v772_v17 = vmul.f32 %v739_v12, %v739_v12 }
  0x58   :  { %v768_v23 = vadd.f32 %v739_v12, %v2515_v53  ;;  %v918_v62 = vmul.f32 5.9604645e-08, %v906_v61  ;;  %v548_v41 = vshrl.u32 %v536_v56, 16  ;;  %v552_v44 = vshrl.u32 %v540_v57, 16 }
  0x59   :  { %v922_v28 = vmul.f32 5.9604645e-08, %v910_v18  ;;  %v926_v25 = vmul.f32 5.9604645e-08, %v914_v58  ;;  %751 = vrot.lane.b32.xlu0 %v743_v22, %s2268_s13  ;;  %v776_v45 = vadd.f32 %v772_v17, %v2524_v34  ;;  %v556_v46 = vxor.u32 %v544_v21, %v532_v52 }
  0x5a   :  { %v2548_v47 = vadd.f32 %v2505_v26, %v768_v23  ;;  %v2550_v51 = vadd.f32 -0.5, %v918_v62  ;;  %v560_v48 = vxor.u32 %v548_v41, %v536_v56  ;;  %v564_v20 = vxor.u32 %v552_v44, %v540_v57 }
  0x5b   :  { %v2552_v59 = vadd.f32 -0.5, %v922_v28  ;;  %v2554_v60 = vadd.f32 -0.5, %v926_v25  ;;  %v2557_v16 = vadd.f32 %v2519_v27, %v776_v45  ;;  %v2560_v24 = vadd.f32 0.0141, %v2415_v50 }
  0x5c   :  { %v942_v34 = vand.u32 2147483647, %v2550_v51  ;;  %v568_v0 = vand.u32 16777215, %v556_v46  ;;  %v94_v26 = vadd.f32 %v2441_v54, %v2359_v36  ;;  %v1124_v33 = vshrl.u32 %v2528_v6, 16 }
  0x5d   :  { %v946_v1 = vand.u32 2147483647, %v2552_v59  ;;  %v950_v2 = vand.u32 2147483647, %v2554_v60  ;;  %v572_v5 = vand.u32 16777215, %v560_v48 }
  0x5e   :  { %v954_v3 = vmul.f32 2.0, %v942_v34  ;;  %v576_v13 = vand.u32 16777215, %v564_v20  ;;  %v580_v27 = vcvt.s32.f32 %v568_v0  ;;  %v1128_v50 = vshrl.u32 %v1116_v4, 16 }
  0x5f   :  { %v958_v7 = vmul.f32 2.0, %v946_v1  ;;  %v962_v8 = vmul.f32 2.0, %v950_v2  ;;  %v1132_v10 = vshrl.u32 %v1120_v11, 16  ;;  %v584_v12 = vcvt.s32.f32 %v572_v5 }
  0x60   :  { %v966_v52 = vsub.f32 1.0, %v954_v3  ;;  %v588_v61 = vcvt.s32.f32 %v576_v13  ;;  %v592_v56 = vmul.f32 5.9604645e-08, %v580_v27  ;;  %v1136_v54 = vxor.u32 %v1124_v33, %v2528_v6 }
  0x61   :  { %v970_v57 = vsub.f32 1.0, %v958_v7  ;;  %v974_v36 = vsub.f32 1.0, %v962_v8  ;;  %v1140_v18 = vxor.u32 %v1128_v50, %v1116_v4  ;;  %v596_v21 = vmul.f32 5.9604645e-08, %v584_v12 }
  0x62   :  { %v978_v58 = vmax.f32 %v966_v52, 1e-12  ;;  %v600_v22 = vmul.f32 5.9604645e-08, %v588_v61  ;;  %v2569_v17 = vadd.f32 -0.5, %v592_v56  ;;  %v1144_v28 = vxor.u32 %v1132_v10, %v1120_v11 }
  0x63   :  { %v982_v23 = vmax.f32 %v970_v57, 1e-12  ;;  %v986_v62 = vmax.f32 %v974_v36, 1e-12  ;;  %v1148_v25 = vmul.u32 2246822507, %v1136_v54  ;;  %v1111_v7 = vadd.s32 %v2474_v49, %v2354_v35 }
  0x64   :  { %2109 = vlog2.f32 %v978_v58  ;;  %v2571_v41 = vadd.f32 -0.5, %v596_v21  ;;  %v2573_v44 = vadd.f32 -0.5, %v600_v22  ;;  %v616_v45 = vand.u32 2147483647, %v2569_v17 }
  0x65   :  { %v2577_v46 = vadd.f32 0.0141, %v2432_v63  ;;  %2111 = vlog2.f32 %v982_v23  ;;  %v1152_v6 = vmul.u32 2246822507, %v1140_v18  ;;  %v1156_v4 = vmul.u32 2246822507, %v1144_v28 }
  0x66   :  { %2113 = vlog2.f32 %v986_v62  ;;  %v620_v48 = vand.u32 2147483647, %v2571_v41  ;;  %v624_v20 = vand.u32 2147483647, %v2573_v44  ;;  %v628_v11 = vmul.f32 2.0, %v616_v45 }
  0x67   :  { %v2582_v34 = vadd.f32 0.0141, %v2445_v55  ;;  %v2584_v0 = vadd.f32 -7.2, %v94_v26  ;;  %v1160_v1 = vshrl.u32 %v1148_v25, 13  ;;  %v1164_v2 = vshrl.u32 %v1152_v6, 13 }
  0x68   :  { %vm1014_vm9 = vcmp.ge.f32.partialorder %v2550_v51, 0.0  ;;  %v632_v63 = vmul.f32 2.0, %v620_v48  ;;  %v636_v33 = vmul.f32 2.0, %v624_v20  ;;  %v640_v3 = vsub.f32 1.0, %v628_v11 }
  0x69   :  { %3369 = vst [vmem:[#allocation11_spill] sm:$0xff] %v2584_v0  ;;  %v1168_v5 = vshrl.u32 %v1156_v4, 13  ;;  %v1172_v13 = vxor.u32 %v1160_v1, %v1148_v25  ;;  %v1176_v27 = vxor.u32 %v1164_v2, %v1152_v6  ;;  %v1115_v8 = vadd.s32 %v2474_v49, %v2373_v42 }
  0x6a   :  { %v644_v55 = vsub.f32 1.0, %v632_v63  ;;  %v648_v50 = vsub.f32 1.0, %v636_v33  ;;  %v652_v26 = vmax.f32 %v640_v3, 1e-12  ;;  %v1119_v61 = vadd.s32 %v2474_v49, %v2375_v43 }
  0x6b   :  { %v1180_v10 = vxor.u32 %v1168_v5, %v1156_v4  ;;  %v1184_v52 = vmul.u32 3266489909, %v1172_v13  ;;  %v1188_v12 = vmul.u32 3266489909, %v1176_v27  ;;  %v1123_v56 = vshrl.u32 %v1111_v7, 16 }
  0x6c   :  { %v656_v57 = vmax.f32 %v644_v55, 1e-12  ;;  %v660_v36 = vmax.f32 %v648_v50, 1e-12  ;;  %2115 = vlog2.f32 %v652_v26  ;;  %vm1018_vm10 = vcmp.ge.f32.partialorder %v2552_v59, 0.0 }
  0x6d   :  { %v1192_v54 = vmul.u32 3266489909, %v1180_v10  ;;  %v1196_v18 = vshrl.u32 %v1184_v52, 16  ;;  %v1200_v58 = vshrl.u32 %v1188_v12, 16  ;;  %v1127_v21 = vshrl.u32 %v1115_v8, 16 }
  0x6e   :  { %v2110_v22 = vpop.eup %2109  ;;  %2117 = vlog2.f32 %v656_v57  ;;  %v1131_v62 = vshrl.u32 %v1119_v61, 16  ;;  %v2594_v28 = vxor.u32 %v1123_v56, %v1111_v7  ;;  %vm1022_vm11 = vcmp.ge.f32.partialorder %v2554_v60, 0.0 }
  0x6f   :  { %v1204_v23 = vshrl.u32 %v1192_v54, 16  ;;  %v2112_v25 = vpop.eup %2111  ;;  %v992_v45 = vmul.f32 0.6931472, %v2110_v22  ;;  %2119 = vlog2.f32 %v660_v36  ;;  %v1208_v6 = vxor.u32 %v1196_v18, %v1184_v52 }
  0x70   :  { %v1212_v4 = vxor.u32 %v1200_v58, %v1188_v12  ;;  %v2114_v48 = vpop.eup %2113  ;;  %v1000_v20 = vmul.f32 0.6931472, %v2112_v25  ;;  %vm688_vm12 = vcmp.ge.f32.partialorder %v2569_v17, 0.0  ;;  %v1139_v33 = vxor.u32 %v1127_v21, %v1115_v8 }
  0x71   :  { %v1216_v11 = vxor.u32 %v1204_v23, %v1192_v54  ;;  %v1008_v1 = vmul.f32 0.6931472, %v2114_v48  ;;  %v1026_v2 = vsub.f32 0.0, %v992_v45  ;;  %v1220_v63 = vand.u32 16777215, %v1208_v6 }
  0x72   :  { %v1030_v3 = vsub.f32 0.0, %v1000_v20  ;;  %vm692_vm13 = vcmp.ge.f32.partialorder %v2571_v41, 0.0  ;;  %v1224_v5 = vand.u32 16777215, %v1212_v4  ;;  %v1143_v27 = vxor.u32 %v1131_v62, %v1119_v61 }
  0x73   :  { %v1228_v13 = vand.u32 16777215, %v1216_v11  ;;  %v1034_v7 = vsub.f32 0.0, %v1008_v1  ;;  %v1038_v55 = vsel %vm1014_vm9, %v1026_v2, %v992_v45  ;;  %v1232_v50 = vcvt.s32.f32 %v1220_v63 }
  0x74   :  { %v1147_v26 = vmul.u32 2246822507, %v2594_v28  ;;  %v1042_v10 = vsel %vm1018_vm10, %v1030_v3, %v1000_v20  ;;  %v1050_v52 = vmul.f32 %v1038_v55, %v2560_v24  ;;  %v1236_v12 = vcvt.s32.f32 %v1224_v5 }
  0x75   :  { %v1240_v8 = vcvt.s32.f32 %v1228_v13  ;;  %v1046_v56 = vsel %vm1022_vm11, %v1034_v7, %v1008_v1  ;;  %v1054_v57 = vmul.f32 %v1042_v10, %v2577_v46  ;;  %v1244_v61 = vmul.f32 5.9604645e-08, %v1232_v50 }
  0x76   :  { %v1151_v36 = vmul.u32 2246822507, %v1139_v33  ;;  %v2116_v54 = vpop.eup %2115  ;;  %v1058_v51 = vmul.f32 %v1046_v56, %v2582_v34  ;;  %vm696_vm14 = vcmp.ge.f32.partialorder %v2573_v44, 0.0  ;;  %v1248_v18 = vmul.f32 5.9604645e-08, %v1236_v12 }
  0x77   :  { %v1252_v58 = vmul.f32 5.9604645e-08, %v1240_v8  ;;  %v1062_v59 = vadd.f32 %v1054_v57, %v1050_v52  ;;  %v666_v21 = vmul.f32 0.6931472, %v2116_v54  ;;  %v2613_v22 = vadd.f32 -0.5, %v1244_v61 }
  0x78   :  { %v1155_v60 = vmul.u32 2246822507, %v1143_v27  ;;  %v2118_v23 = vpop.eup %2117  ;;  %v2615_v62 = vadd.f32 -0.5, %v1248_v18  ;;  %v1159_v25 = vshrl.u32 %v1147_v26, 13  ;;  %v1163_v45 = vshrl.u32 %v1151_v36, 13 }
  0x79   :  { %v2617_v28 = vadd.f32 -0.5, %v1252_v58  ;;  %v2120_v6 = vpop.eup %2119  ;;  %v2619_v4 = vadd.f32 %v1062_v59, %v1058_v51  ;;  %v674_v48 = vmul.f32 0.6931472, %v2118_v23  ;;  %v700_v20 = vsub.f32 0.0, %v666_v21 }
  0x7a   :  { %v1268_v11 = vand.u32 2147483647, %v2613_v22  ;;  %v682_v1 = vmul.f32 0.6931472, %v2120_v6  ;;  %v1272_v2 = vand.u32 2147483647, %v2615_v62  ;;  %v2624_v33 = vstv %s1435_s16 }
  0x7b   :  { %3370 = vst [vmem:[#allocation12_spill] sm:$0xff] %v2619_v4  ;;  %v1276_v63 = vand.u32 2147483647, %v2617_v28  ;;  %v1070_v3 = vadd.f32 %v2584_v0, %v2619_v4  ;;  %v704_v5 = vsub.f32 0.0, %v674_v48  ;;  %v712_v13 = vsel %vm688_vm12, %v700_v20, %v666_v21 }
  0x7c   :  { %v1167_v27 = vshrl.u32 %v1155_v60, 13  ;;  %v708_v7 = vsub.f32 0.0, %v682_v1  ;;  %v724_v55 = vmul.f32 %v712_v13, %v2560_v24  ;;  %v1280_v50 = vmul.f32 2.0, %v1268_v11 }
  0x7d   :  { %v1284_v10 = vmul.f32 2.0, %v1272_v2  ;;  %1079 = vrot.lane.b32.xlu1 %v1070_v3, %s2267_s12  ;;  %v716_v52 = vsel %vm692_vm13, %v704_v5, %v674_v48  ;;  %v1288_v12 = vmul.f32 2.0, %v1276_v63  ;;  %v1171_v8 = vxor.u32 %v1159_v25, %v1147_v26 }
  0x7e   :  { %v1438_v56 = vadd.s32 %v2624_v33, %v2469_v9  ;;  %v720_v17 = vsel %vm696_vm14, %v708_v7, %v682_v1  ;;  %v728_v57 = vmul.f32 %v716_v52, %v2577_v46  ;;  %v1292_v61 = vsub.f32 1.0, %v1280_v50 }
  0x7f   :  { %v1296_v54 = vsub.f32 1.0, %v1284_v10  ;;  %v732_v51 = vmul.f32 %v720_v17, %v2582_v34  ;;  %v1300_v18 = vsub.f32 1.0, %v1288_v12  ;;  %v1175_v58 = vxor.u32 %v1163_v45, %v1151_v36 }
  0x80   :  { %v1442_v41 = vadd.s32 %v2624_v33, %v2472_v37  ;;  %v736_v59 = vadd.f32 %v728_v57, %v724_v55  ;;  %v1304_v21 = vmax.f32 %v1292_v61, 1e-12  ;;  %v1179_v23 = vxor.u32 %v1167_v27, %v1155_v60 }
  0x81   :  { %v1308_v26 = vmax.f32 %v1296_v54, 1e-12  ;;  %v1312_v25 = vmax.f32 %v1300_v18, 1e-12  ;;  %v1183_v6 = vmul.u32 3266489909, %v1171_v8  ;;  %v1446_v44 = vadd.s32 %v2624_v33, %v2476_v19 }
  0x82   :  { %v1187_v48 = vmul.u32 3266489909, %v1175_v58  ;;  %v2644_v20 = vadd.f32 %v736_v59, %v732_v51  ;;  %2121 = vlog2.f32 %v1304_v21  ;;  %v1191_v11 = vmul.u32 3266489909, %v1179_v23 }
  0x83   :  { %v1450_v1 = vshrl.u32 %v1438_v56, 16  ;;  %2123 = vlog2.f32 %v1308_v26  ;;  %v1195_v36 = vshrl.u32 %v1183_v6, 16  ;;  %v1454_v2 = vshrl.u32 %v1442_v41, 16 }
  0x84   :  { %3371 = vst [vmem:[#allocation13_spill] sm:$0xff] %v2644_v20  ;;  %v1199_v45 = vshrl.u32 %v1187_v48, 16  ;;  %v744_v63 = vadd.f32 %v2584_v0, %v2644_v20  ;;  %2125 = vlog2.f32 %v1312_v25  ;;  %v1203_v60 = vshrl.u32 %v1191_v11, 16 }
  0x85   :  { %v1207_v3 = vxor.u32 %v1195_v36, %v1183_v6  ;;  %v1458_v13 = vshrl.u32 %v1446_v44, 16  ;;  %v1462_v27 = vxor.u32 %v1450_v1, %v1438_v56  ;;  %v1466_v55 = vxor.u32 %v1454_v2, %v1442_v41 }
  0x86   :  { %v1211_v5 = vxor.u32 %v1199_v45, %v1187_v48  ;;  %753 = vrot.lane.b32.xlu0 %v744_v63, %s2268_s13  ;;  %v1215_v7 = vxor.u32 %v1203_v60, %v1191_v11  ;;  %v1437_v50 = vadd.s32 %v2624_v33, %v2354_v35  ;;  %v1441_v10 = vadd.s32 %v2624_v33, %v2373_v42 }
  0x87   :  { %v1219_v52 = vand.u32 16777215, %v1207_v3  ;;  %v1470_v8 = vxor.u32 %v1458_v13, %v1446_v44  ;;  %v1474_v17 = vmul.u32 2246822507, %v1462_v27  ;;  %v1478_v61 = vmul.u32 2246822507, %v1466_v55 }
  0x88   :  { %v1223_v12 = vand.u32 16777215, %v1211_v5  ;;  %v1227_v57 = vand.u32 16777215, %v1215_v7  ;;  %v1445_v54 = vadd.s32 %v2624_v33, %v2375_v43  ;;  %vm1340_vm15 = vcmp.ge.f32.partialorder %v2613_v22, 0.0 }
  0x89   :  { %v1231_v56 = vcvt.s32.f32 %v1219_v52  ;;  %v1482_v18 = vmul.u32 2246822507, %v1470_v8  ;;  %v1486_v58 = vshrl.u32 %v1474_v17, 13  ;;  %v1490_v35 = vshrl.u32 %v1478_v61, 13 }
  0x8a   :  { %v1235_v51 = vcvt.s32.f32 %v1223_v12  ;;  %v1239_v41 = vcvt.s32.f32 %v1227_v57  ;;  %v1449_v59 = vshrl.u32 %v1437_v50, 16  ;;  %vm1344_vm0 = vcmp.ge.f32.partialorder %v2615_v62, 0.0 }
  0x8b   :  { %v1243_v42 = vmul.f32 5.9604645e-08, %v1231_v56  ;;  %v1453_v26 = vshrl.u32 %v1441_v10, 16  ;;  %vm1348_vm1 = vcmp.ge.f32.partialorder %v2617_v28, 0.0  ;;  %v1494_v6 = vshrl.u32 %v1482_v18, 13 }
  0x8c   :  { %v1247_v21 = vmul.f32 5.9604645e-08, %v1235_v51  ;;  %v2122_v23 = vpop.eup %2121  ;;  %v1251_v25 = vmul.f32 5.9604645e-08, %v1239_v41  ;;  %v1457_v43 = vshrl.u32 %v1445_v54, 16  ;;  %v1498_v36 = vxor.u32 %v1486_v58, %v1474_v17 }
  0x8d   :  { %v2124_v48 = vpop.eup %2123  ;;  %v1318_v44 = vmul.f32 0.6931472, %v2122_v23  ;;  %v2658_v11 = vadd.f32 -0.5, %v1243_v42  ;;  %v1502_v60 = vxor.u32 %v1490_v35, %v1478_v61  ;;  %v1461_v3 = vxor.u32 %v1449_v59, %v1437_v50 }
  0x8e   :  { %v2660_v1 = vadd.f32 -0.5, %v1247_v21  ;;  %v2126_v45 = vpop.eup %2125  ;;  %v1326_v2 = vmul.f32 0.6931472, %v2124_v48  ;;  %v2662_v63 = vadd.f32 -0.5, %v1251_v25  ;;  %v1465_v7 = vxor.u32 %v1453_v26, %v1441_v10 }
  0x8f   :  { %v1334_v5 = vmul.f32 0.6931472, %v2126_v45  ;;  %v1352_v13 = vsub.f32 0.0, %v1318_v44  ;;  %v1267_v27 = vand.u32 2147483647, %v2658_v11  ;;  %v1506_v8 = vxor.u32 %v1494_v6, %v1482_v18 }
  0x90   :  { %v1356_v55 = vsub.f32 0.0, %v1326_v2  ;;  %v1271_v52 = vand.u32 2147483647, %v2660_v1  ;;  %v1275_v12 = vand.u32 2147483647, %v2662_v63  ;;  %v1469_v45 = vxor.u32 %v1457_v43, %v1445_v54 }
  0x91   :  { %v1360_v57 = vsub.f32 0.0, %v1334_v5  ;;  %v1364_v17 = vsel %vm1340_vm15, %v1352_v13, %v1318_v44  ;;  %v1279_v56 = vmul.f32 2.0, %v1267_v27  ;;  %v1510_v51 = vmul.u32 3266489909, %v1498_v36 }
  0x92   :  { %v1368_v50 = vsel %vm1344_vm0, %v1356_v55, %v1326_v2  ;;  %v1376_v61 = vmul.f32 %v1364_v17, %v2560_v24  ;;  %v1283_v58 = vmul.f32 2.0, %v1271_v52  ;;  %v1287_v41 = vmul.f32 2.0, %v1275_v12 }
  0x93   :  { %v1372_v10 = vsel %vm1348_vm1, %v1360_v57, %v1334_v5  ;;  %v1380_v35 = vmul.f32 %v1368_v50, %v2577_v46  ;;  %v1291_v59 = vsub.f32 1.0, %v1279_v56  ;;  %v1514_v18 = vmul.u32 3266489909, %v1502_v60 }
  0x94   :  { %v1384_v42 = vmul.f32 %v1372_v10, %v2582_v34  ;;  %v1295_v22 = vsub.f32 1.0, %v1283_v58  ;;  %v1299_v21 = vsub.f32 1.0, %v1287_v41  ;;  %v1518_v26 = vmul.u32 3266489909, %v1506_v8  ;;  %v2684_v58 = vld [vmem:[%s3348_s2 + $0x18] sm:$0xff] }
  0x95   :  { %v1388_v23 = vadd.f32 %v1380_v35, %v1376_v61  ;;  %v1303_v25 = vmax.f32 %v1291_v59, 1e-12  ;;  %v1522_v62 = vshrl.u32 %v1510_v51, 16  ;;  %v1526_v6 = vshrl.u32 %v1514_v18, 16  ;;  %v2689_v41 = vld [vmem:[%s3348_s2 + $0x38] sm:$0xff] }
  0x96   :  { %v1307_v48 = vmax.f32 %v1295_v22, 1e-12  ;;  %v1311_v44 = vmax.f32 %v1299_v21, 1e-12  ;;  %v1530_v36 = vshrl.u32 %v1518_v26, 16  ;;  %vm1339_vm2 = vcmp.ge.f32.partialorder %v2658_v11, 0.0 }
  0x97   :  { %v2676_v2 = vadd.f32 %v1388_v23, %v1384_v42  ;;  %2127 = vlog2.f32 %v1303_v25  ;;  %v1534_v28 = vxor.u32 %v1522_v62, %v1510_v51  ;;  %v1538_v5 = vxor.u32 %v1526_v6, %v1514_v18  ;;  %v2695_v18 = vld [vmem:[%s3348_s2 + $0x58] sm:$0xff] }
  0x98   :  { %2129 = vlog2.f32 %v1307_v48  ;;  %v1542_v60 = vxor.u32 %v1530_v36, %v1518_v26  ;;  %v1473_v13 = vmul.u32 2246822507, %v1461_v3  ;;  %v1477_v27 = vmul.u32 2246822507, %v1465_v7 }
  0x99   :  { %3372 = vst [vmem:[#allocation14_spill] sm:$0xff] %v2676_v2  ;;  %v1396_v55 = vadd.f32 %v2584_v0, %v2676_v2  ;;  %2131 = vlog2.f32 %v1311_v44  ;;  %v1546_v52 = vand.u32 16777215, %v1534_v28  ;;  %v1550_v12 = vand.u32 16777215, %v1538_v5 }
  0x9a   :  { %v1554_v8 = vand.u32 16777215, %v1542_v60  ;;  %v1481_v57 = vmul.u32 2246822507, %v1469_v45  ;;  %v1485_v43 = vshrl.u32 %v1473_v13, 13  ;;  %v1489_v17 = vshrl.u32 %v1477_v27, 13 }
  0x9b   :  { %1405 = vrot.lane.b32.xlu1 %v1396_v55, %s2269_s0  ;;  %v1558_v54 = vcvt.s32.f32 %v1546_v52  ;;  %v1562_v56 = vcvt.s32.f32 %v1550_v12  ;;  %vm1343_vm3 = vcmp.ge.f32.partialorder %v2660_v1, 0.0  ;;  %v32_v25 = vmul.f32 -0.0058, %v2684_v58 }
  0x9c   :  { %v1566_v51 = vcvt.s32.f32 %v1554_v8  ;;  %v1493_v50 = vshrl.u32 %v1481_v57, 13  ;;  %v1497_v3 = vxor.u32 %v1485_v43, %v1473_v13  ;;  %v1501_v7 = vxor.u32 %v1489_v17, %v1477_v27 }
  0x9d   :  { %v1570_v61 = vmul.f32 5.9604645e-08, %v1558_v54  ;;  %v1574_v10 = vmul.f32 5.9604645e-08, %v1562_v56  ;;  %v36_v62 = vmul.f32 -0.0058, %v2689_v41  ;;  %vm1347_vm4 = vcmp.ge.f32.partialorder %v2662_v63, 0.0  ;;  %v2728_v63 = vld [vmem:[%s3348_s2 + $0x10] sm:$0xff] }
  0x9e   :  { %v1578_v35 = vmul.f32 5.9604645e-08, %v1566_v51  ;;  %v1505_v59 = vxor.u32 %v1493_v50, %v1481_v57  ;;  %v1509_v22 = vmul.u32 3266489909, %v1497_v3  ;;  %v1513_v21 = vmul.u32 3266489909, %v1501_v7 }
  0x9f   :  { %v2698_v42 = vadd.f32 -0.5, %v1570_v61  ;;  %v2700_v26 = vadd.f32 -0.5, %v1574_v10  ;;  %v92_v13 = vadd.f32 %v2689_v41, %v2684_v58  ;;  %v40_v8 = vmul.f32 -0.0058, %v2695_v18 }
  0xa0   :  { %v2702_v23 = vadd.f32 -0.5, %v1578_v35  ;;  %v1517_v44 = vmul.u32 3266489909, %v1505_v59  ;;  %v1521_v36 = vshrl.u32 %v1509_v22, 16  ;;  %v1525_v12 = vshrl.u32 %v1513_v21, 16 }
  0xa1   :  { %v2128_v6 = vpop.eup %2127  ;;  %v1594_v48 = vand.u32 2147483647, %v2698_v42  ;;  %v1598_v5 = vand.u32 2147483647, %v2700_v26  ;;  %vm1666_vm5 = vcmp.ge.f32.partialorder %v2698_v42, 0.0  ;;  %vm1670_vm6 = vcmp.ge.f32.partialorder %v2700_v26, 0.0 }
  0xa2   :  { %v2130_v45 = vpop.eup %2129  ;;  %v1316_v28 = vmul.f32 0.6931472, %v2128_v6  ;;  %v1602_v60 = vand.u32 2147483647, %v2702_v23  ;;  %v1529_v50 = vshrl.u32 %v1517_v44, 16  ;;  %v1533_v61 = vxor.u32 %v1521_v36, %v1509_v22 }
  0xa3   :  { %v2132_v27 = vpop.eup %2131  ;;  %v1324_v55 = vmul.f32 0.6931472, %v2130_v45  ;;  %v1606_v52 = vmul.f32 2.0, %v1594_v48  ;;  %v1610_v43 = vmul.f32 2.0, %v1598_v5  ;;  %v1537_v45 = vxor.u32 %v1525_v12, %v1513_v21  ;;  %v2733_v21 = vld [vmem:[%s3348_s2 + $0x30] sm:$0xff] }
  0xa4   :  { %v1332_v57 = vmul.f32 0.6931472, %v2132_v27  ;;  %v1351_v54 = vsub.f32 0.0, %v1316_v28  ;;  %v1614_v17 = vmul.f32 2.0, %v1602_v60  ;;  %v1541_v11 = vxor.u32 %v1529_v50, %v1517_v44 }
  0xa5   :  { %v1355_v56 = vsub.f32 0.0, %v1324_v55  ;;  %v1618_v51 = vsub.f32 1.0, %v1606_v52  ;;  %v1622_v10 = vsub.f32 1.0, %v1610_v43  ;;  %v1549_v1 = vand.u32 16777215, %v1537_v45 }
  0xa6   :  { %v1359_v3 = vsub.f32 0.0, %v1332_v57  ;;  %v1363_v7 = vsel %vm1339_vm2, %v1351_v54, %v1316_v28  ;;  %v1626_v35 = vsub.f32 1.0, %v1614_v17  ;;  %v1545_v28 = vand.u32 16777215, %v1533_v61 }
  0xa7   :  { %v1367_v59 = vsel %vm1343_vm3, %v1355_v56, %v1324_v55  ;;  %v1375_v6 = vmul.f32 %v1363_v7, %v2364_v38  ;;  %v1630_v48 = vmax.f32 %v1618_v51, 1e-12  ;;  %v1634_v27 = vmax.f32 %v1622_v10, 1e-12 }
  0xa8   :  { %v1371_v5 = vsel %vm1347_vm4, %v1359_v3, %v1332_v57  ;;  %v1379_v60 = vmul.f32 %v1367_v59, %v2366_v39  ;;  %v1638_v22 = vmax.f32 %v1626_v35, 1e-12  ;;  %v2723_v55 = vadd.f32 %v92_v13, %v2695_v18 }
  0xa9   :  { %v1383_v36 = vmul.f32 %v1371_v5, %v2368_v40  ;;  %2133 = vlog2.f32 %v1630_v48  ;;  %v1553_v12 = vand.u32 16777215, %v1541_v11  ;;  %v1557_v44 = vcvt.s32.f32 %v1545_v28 }
  0xaa   :  { %v1387_v52 = vadd.f32 %v1379_v60, %v1375_v6  ;;  %2135 = vlog2.f32 %v1634_v27  ;;  %v2737_v57 = vadd.f32 %v2733_v21, %v2728_v63  ;;  %v1561_v13 = vcvt.s32.f32 %v1549_v1 }
  0xab   :  { %2137 = vlog2.f32 %v1638_v22  ;;  %v44_v43 = vmul.f32 %v32_v25, %v2684_v58  ;;  %v48_v17 = vmul.f32 %v36_v62, %v2689_v41  ;;  %v1565_v56 = vcvt.s32.f32 %v1553_v12 }
  0xac   :  { %v1391_v54 = vadd.f32 %v1387_v52, %v1383_v36  ;;  %v1569_v51 = vmul.f32 5.9604645e-08, %v1557_v44  ;;  %v2742_v50 = vmul.f32 %v40_v8, %v2695_v18  ;;  %v56_v61 = vmul.f32 0.0324, %v2684_v58 }
  0xad   :  { %v1573_v35 = vmul.f32 5.9604645e-08, %v1561_v13  ;;  %v1577_v59 = vmul.f32 5.9604645e-08, %v1565_v56  ;;  %v60_v62 = vmul.f32 0.0324, %v2689_v41  ;;  %vm1674_vm7 = vcmp.ge.f32.partialorder %v2702_v23, 0.0 }
  0xae   :  { %v1395_v3 = vadd.f32 %v2341_v29, %v1391_v54  ;;  %v1424_v7 = vmul.f32 %v1391_v54, %v1391_v54  ;;  %v2747_v10 = vadd.f32 %v1391_v54, %v2548_v47  ;;  %v2750_v25 = vadd.f32 -0.5, %v1569_v51 }
  0xaf   :  { %v2758_v58 = vadd.f32 -0.5, %v1573_v35  ;;  %v105_v47 = vadd.s32 24, %v2316_v14  ;;  %v2762_v6 = vadd.f32 -0.5, %v1577_v59  ;;  %v64_v45 = vmul.f32 0.0324, %v2695_v18 }
  0xb0   :  { %1403 = vrot.lane.b32.xlu0 %v1395_v3, %s2269_s0  ;;  %v2755_v8 = vadd.f32 %v1424_v7, %v2557_v16  ;;  %v1593_v48 = vand.u32 2147483647, %v2750_v25  ;;  %v68_v5 = vadd.f32 %v56_v61, %v44_v43  ;;  %v109_v16 = vadd.s32 56, %v2316_v14 }
  0xb1   :  { %v1597_v41 = vand.u32 2147483647, %v2758_v58  ;;  %v113_v60 = vadd.s32 88, %v2316_v14  ;;  %v1601_v22 = vand.u32 2147483647, %v2762_v6  ;;  %v72_v11 = vadd.f32 %v60_v62, %v48_v17 }
  0xb2   :  { %v1605_v36 = vmul.f32 2.0, %v1593_v48  ;;  %v119_v28 = vmul.u32 16, %v105_v47  ;;  %v123_v44 = vmul.u32 16, %v109_v16  ;;  %vm1665_vm8 = vcmp.ge.f32.partialorder %v2750_v25, 0.0 }
  0xb3   :  { %v2134_v27 = vpop.eup %2133  ;;  %v1609_v12 = vmul.f32 2.0, %v1597_v41  ;;  %v127_v54 = vmul.u32 16, %v113_v60  ;;  %v1613_v56 = vmul.f32 2.0, %v1601_v22  ;;  %vm1669_vm9 = vcmp.ge.f32.partialorder %v2758_v58, 0.0 }
  0xb4   :  { %v2136_v52 = vpop.eup %2135  ;;  %v1644_v1 = vmul.f32 0.6931472, %v2134_v27  ;;  %v1617_v51 = vsub.f32 1.0, %v1605_v36  ;;  %v131_v43 = vadd.s32 %v119_v28, %v2318_v15  ;;  %v135_v35 = vadd.s32 %v123_v44, %v2318_v15  ;;  %v2793_v44 = vld [vmem:[%s3348_s2 + $0x50] sm:$0xff]  ;;  %s2270_s2 = smov 64  }
  0xb5   :  { %v2138_v13 = vpop.eup %2137  ;;  %v1652_v18 = vmul.f32 0.6931472, %v2136_v52  ;;  %v1621_v7 = vsub.f32 1.0, %v1609_v12  ;;  %v1625_v48 = vsub.f32 1.0, %v1613_v56  ;;  %v139_v62 = vadd.s32 %v127_v54, %v2318_v15 }
  0xb6   :  { %v1660_v61 = vmul.f32 0.6931472, %v2138_v13  ;;  %v1678_v3 = vsub.f32 0.0, %v1644_v1  ;;  %v1629_v17 = vmax.f32 %v1617_v51, 1e-12  ;;  %v76_v54 = vadd.f32 %v64_v45, %v2742_v50 }
  0xb7   :  { %v1682_v59 = vsub.f32 0.0, %v1652_v18  ;;  %v1633_v16 = vmax.f32 %v1621_v7, 1e-12  ;;  %v2775_v60 = vmul.u32 2654435761, %v131_v43  ;;  %vm1673_vm10 = vcmp.ge.f32.partialorder %v2762_v6, 0.0 }
  0xb8   :  { %v1686_v47 = vsub.f32 0.0, %v1660_v61  ;;  %v1690_v41 = vsel %vm1666_vm5, %v1678_v3, %v1644_v1  ;;  %v1637_v36 = vmax.f32 %v1625_v48, 1e-12  ;;  %2139 = vlog2.f32 %v1629_v17 }
  0xb9   :  { %v1694_v27 = vsel %vm1670_vm6, %v1682_v59, %v1652_v18  ;;  %v1702_v22 = vmul.f32 %v1690_v41, %v2560_v24  ;;  %2141 = vlog2.f32 %v1633_v16  ;;  %v2783_v12 = vmul.u32 2654435761, %v135_v35 }
  0xba   :  { %v1698_v28 = vsel %vm1674_vm7, %v1686_v47, %v1660_v61  ;;  %v1706_v52 = vmul.f32 %v1694_v27, %v2577_v46  ;;  %2143 = vlog2.f32 %v1637_v36  ;;  %v2786_v1 = vmul.u32 2654435761, %v139_v62 }
  0xbb   :  { %v1710_v42 = vmul.f32 %v1698_v28, %v2582_v34  ;;  %v462_v26 = vadd.s32 %v2350_v32, %v2775_v60  ;;  %v466_v13 = vadd.s32 %v2350_v32, %v2783_v12  ;;  %v2800_v18 = vadd.f32 %v2737_v57, %v2793_v44 }
  0xbc   :  { %v1714_v23 = vadd.f32 %v1706_v52, %v1702_v22  ;;  %v2802_v56 = vadd.f32 0.0141, %v68_v5  ;;  %v2805_v51 = vadd.f32 -7.2, %v2723_v55  ;;  %v470_v43 = vadd.s32 %v2350_v32, %v2786_v1 }
  0xbd   :  { %v474_v61 = vshrl.u32 %v462_v26, 16  ;;  %v2811_v7 = vadd.f32 0.0141, %v72_v11  ;;  %v478_v50 = vshrl.u32 %v466_v13, 16  ;;  %v31_v45 = vmul.f32 -0.0058, %v2728_v63 }
  0xbe   :  { %v2809_v3 = vadd.f32 %v1714_v23, %v1710_v42  ;;  %v482_v57 = vshrl.u32 %v470_v43, 16  ;;  %v35_v5 = vmul.f32 -0.0058, %v2733_v21  ;;  %v2818_v59 = vadd.f32 0.0141, %v76_v54 }
  0xbf   :  { %v486_v35 = vxor.u32 %v474_v61, %v462_v26  ;;  %v490_v48 = vxor.u32 %v478_v50, %v466_v13  ;;  %v39_v17 = vmul.f32 -0.0058, %v2793_v44  ;;  %v43_v41 = vmul.f32 %v31_v45, %v2728_v63 }
  0xc0   :  { %3373 = vst [vmem:[#allocation15_spill] sm:$0xff] %v2809_v3  ;;  %v1722_v55 = vadd.f32 %v2584_v0, %v2809_v3  ;;  %v494_v11 = vxor.u32 %v482_v57, %v470_v43  ;;  %v55_v16 = vmul.f32 0.0324, %v2728_v63  ;;  %v104_v27 = vadd.s32 16, %v2316_v14 }
  0xc1   :  { %v498_v62 = vmul.u32 2246822507, %v486_v35  ;;  %v502_v47 = vmul.u32 2246822507, %v490_v48  ;;  %v2828_v52 = vmul.f32 %v35_v5, %v2733_v21  ;;  %v108_v42 = vadd.s32 48, %v2316_v14 }
  0xc2   :  { %1731 = vrot.lane.b32.xlu1 %v1722_v55, %s2270_s2  ;;  %v2140_v22 = vpop.eup %2139  ;;  %v506_v36 = vmul.u32 2246822507, %v494_v11  ;;  %v2832_v13 = vmul.f32 %v39_v17, %v2793_v44  ;;  %v112_v43 = vadd.s32 80, %v2316_v14  ;;  %v2836_v57 = vmul.f32 0.0324, %v2733_v21 }
  0xc3   :  { %v510_v28 = vshrl.u32 %v498_v62, 13  ;;  %v2142_v26 = vpop.eup %2141  ;;  %v1642_v23 = vmul.f32 0.6931472, %v2140_v22  ;;  %v514_v54 = vshrl.u32 %v502_v47, 13  ;;  %v118_v48 = vmul.u32 16, %v104_v27 }
  0xc4   :  { %v2144_v61 = vpop.eup %2143  ;;  %v1650_v63 = vmul.f32 0.6931472, %v2142_v26  ;;  %v518_v50 = vshrl.u32 %v506_v36, 13  ;;  %v122_v2 = vmul.u32 16, %v108_v42  ;;  %v126_v4 = vmul.u32 16, %v112_v43 }
  0xc5   :  { %v522_v45 = vxor.u32 %v510_v28, %v498_v62  ;;  %v1658_v35 = vmul.f32 0.6931472, %v2144_v61  ;;  %v1677_v5 = vsub.f32 0.0, %v1642_v23  ;;  %v526_v55 = vxor.u32 %v514_v54, %v502_v47 }
  0xc6   :  { %v1681_v11 = vsub.f32 0.0, %v1650_v63  ;;  %v530_v3 = vxor.u32 %v518_v50, %v506_v36  ;;  %v130_v42 = vadd.s32 %v118_v48, %v2318_v15  ;;  %v134_v43 = vadd.s32 %v122_v2, %v2318_v15 }
  0xc7   :  { %v534_v22 = vmul.u32 3266489909, %v522_v45  ;;  %v1685_v20 = vsub.f32 0.0, %v1658_v35  ;;  %v1689_v17 = vsel %vm1665_vm8, %v1677_v5, %v1642_v23  ;;  %v538_v14 = vmul.u32 3266489909, %v526_v55 }
  0xc8   :  { %v1693_v62 = vsel %vm1669_vm9, %v1681_v11, %v1650_v63  ;;  %v1701_v21 = vmul.f32 %v1689_v17, %v2364_v38  ;;  %v542_v28 = vmul.u32 3266489909, %v530_v3  ;;  %v138_v38 = vadd.s32 %v126_v4, %v2318_v15 }
  0xc9   :  { %v546_v26 = vshrl.u32 %v534_v22, 16  ;;  %v1697_v47 = vsel %vm1673_vm10, %v1685_v20, %v1658_v35  ;;  %v1705_v27 = vmul.f32 %v1693_v62, %v2366_v39  ;;  %v550_v36 = vshrl.u32 %v538_v14, 16 }
  0xca   :  { %v1709_v25 = vmul.f32 %v1697_v47, %v2368_v40  ;;  %v554_v23 = vshrl.u32 %v542_v28, 16  ;;  %v2850_v3 = vmul.u32 2654435761, %v130_v42  ;;  %v63_v20 = vmul.f32 0.0324, %v2793_v44 }
  0xcb   :  { %v558_v54 = vxor.u32 %v546_v26, %v534_v22  ;;  %v1713_v58 = vadd.f32 %v1705_v27, %v1701_v21  ;;  %v562_v61 = vxor.u32 %v550_v36, %v538_v14  ;;  %v2853_v39 = vmul.u32 2654435761, %v134_v43 }
  0xcc   :  { %v566_v63 = vxor.u32 %v554_v23, %v542_v28  ;;  %v2855_v35 = vmul.u32 2654435761, %v138_v38  ;;  %v461_v40 = vadd.s32 %v2350_v32, %v2850_v3  ;;  %v2859_v55 = vadd.f32 %v55_v16, %v43_v41 }
  0xcd   :  { %v570_v6 = vand.u32 16777215, %v558_v54  ;;  %v1717_v50 = vadd.f32 %v1713_v58, %v1709_v25  ;;  %v574_v45 = vand.u32 16777215, %v562_v61  ;;  %v465_v15 = vadd.s32 %v2350_v32, %v2853_v39 }
  0xce   :  { %v578_v2 = vand.u32 16777215, %v566_v63  ;;  %v469_v14 = vadd.s32 %v2350_v32, %v2855_v35  ;;  %v473_v62 = vshrl.u32 %v461_v40, 16  ;;  %v788_v28 = vadd.s32 %v2343_v30, %v2775_v60 }
  0xcf   :  { %v582_v5 = vcvt.s32.f32 %v570_v6  ;;  %v1721_v4 = vadd.f32 %v2341_v29, %v1717_v50  ;;  %v1750_v48 = vmul.f32 %v1717_v50, %v1717_v50  ;;  %v2865_v44 = vadd.f32 %v1717_v50, %v2747_v10 }
  0xd0   :  { %v586_v11 = vcvt.s32.f32 %v574_v45  ;;  %v590_v22 = vcvt.s32.f32 %v578_v2  ;;  %v477_v21 = vshrl.u32 %v465_v15, 16  ;;  %v481_v47 = vshrl.u32 %v469_v14, 16 }
  0xd1   :  { %v594_v17 = vmul.f32 5.9604645e-08, %v582_v5  ;;  %1729 = vrot.lane.b32.xlu0 %v1721_v4, %s2270_s2  ;;  %v2871_v41 = vadd.f32 %v1750_v48, %v2755_v8  ;;  %v485_v27 = vxor.u32 %v473_v62, %v461_v40  ;;  %v2880_v32 = vadd.f32 -7.2, %v2800_v18 }
  0xd2   :  { %v598_v16 = vmul.f32 5.9604645e-08, %v586_v11  ;;  %v602_v26 = vmul.f32 5.9604645e-08, %v590_v22  ;;  %v489_v42 = vxor.u32 %v477_v21, %v465_v15  ;;  %v792_v8 = vadd.s32 %v2343_v30, %v2783_v12 }
  0xd3   :  { %v2875_v10 = vadd.f32 -0.5, %v594_v17  ;;  %v493_v54 = vxor.u32 %v481_v47, %v469_v14  ;;  %v796_v43 = vadd.s32 %v2343_v30, %v2786_v1  ;;  %v2892_v61 = vadd.f32 %v2836_v57, %v2828_v52 }
  0xd4   :  { %v2877_v36 = vadd.f32 -0.5, %v598_v16  ;;  %v2884_v25 = vadd.f32 -0.5, %v602_v26  ;;  %v497_v18 = vmul.u32 2246822507, %v485_v27  ;;  %v800_v38 = vshrl.u32 %v788_v28, 16 }
  0xd5   :  { %v618_v23 = vand.u32 2147483647, %v2875_v10  ;;  %v2896_v50 = vadd.f32 %v63_v20, %v2832_v13  ;;  %v501_v45 = vmul.u32 2246822507, %v489_v42  ;;  %v505_v2 = vmul.u32 2246822507, %v493_v54 }
  0xd6   :  { %v622_v58 = vand.u32 2147483647, %v2877_v36  ;;  %v626_v63 = vand.u32 2147483647, %v2884_v25  ;;  %v509_v5 = vshrl.u32 %v497_v18, 13  ;;  %v804_v15 = vshrl.u32 %v792_v8, 16 }
  0xd7   :  { %v630_v6 = vmul.f32 2.0, %v618_v23  ;;  %v513_v11 = vshrl.u32 %v501_v45, 13  ;;  %v808_v22 = vshrl.u32 %v796_v43, 16  ;;  %v517_v52 = vshrl.u32 %v505_v2, 13 }
  0xd8   :  { %v634_v40 = vmul.f32 2.0, %v622_v58  ;;  %v638_v4 = vmul.f32 2.0, %v626_v63  ;;  %v521_v57 = vxor.u32 %v509_v5, %v497_v18  ;;  %v812_v14 = vxor.u32 %v800_v38, %v788_v28 }
  0xd9   :  { %v642_v48 = vsub.f32 1.0, %v630_v6  ;;  %v525_v21 = vxor.u32 %v513_v11, %v501_v45  ;;  %v816_v26 = vxor.u32 %v804_v15, %v792_v8  ;;  %v529_v13 = vxor.u32 %v517_v52, %v505_v2 }
  0xda   :  { %v646_v17 = vsub.f32 1.0, %v634_v40  ;;  %v650_v62 = vsub.f32 1.0, %v638_v4  ;;  %v533_v20 = vmul.u32 3266489909, %v521_v57  ;;  %v820_v27 = vxor.u32 %v808_v22, %v796_v43 }
  0xdb   :  { %v654_v16 = vmax.f32 %v642_v48, 1e-12  ;;  %v537_v23 = vmul.u32 3266489909, %v525_v21  ;;  %v824_v54 = vmul.u32 2246822507, %v812_v14  ;;  %v787_v4 = vadd.s32 %v2343_v30, %v2850_v3 }
  0xdc   :  { %v658_v47 = vmax.f32 %v646_v17, 1e-12  ;;  %v662_v42 = vmax.f32 %v650_v62, 1e-12  ;;  %v541_v58 = vmul.u32 3266489909, %v529_v13  ;;  %v791_v57 = vadd.s32 %v2343_v30, %v2853_v39 }
  0xdd   :  { %2145 = vlog2.f32 %v654_v16  ;;  %v545_v63 = vshrl.u32 %v533_v20, 16  ;;  %v828_v6 = vmul.u32 2246822507, %v816_v26  ;;  %v549_v40 = vshrl.u32 %v537_v23, 16 }
  0xde   :  { %2147 = vlog2.f32 %v658_v47  ;;  %v832_v18 = vmul.u32 2246822507, %v820_v27  ;;  %v836_v28 = vshrl.u32 %v824_v54, 13  ;;  %v2899_v38 = vadd.f32 0.0141, %v2859_v55 }
  0xdf   :  { %2149 = vlog2.f32 %v662_v42  ;;  %v553_v8 = vshrl.u32 %v541_v58, 16  ;;  %v557_v45 = vxor.u32 %v545_v63, %v533_v20  ;;  %v840_v2 = vshrl.u32 %v828_v6, 13 }
  0xe0   :  { %vm690_vm11 = vcmp.ge.f32.partialorder %v2875_v10, 0.0  ;;  %v561_v43 = vxor.u32 %v549_v40, %v537_v23  ;;  %v844_v5 = vshrl.u32 %v832_v18, 13  ;;  %v848_v15 = vxor.u32 %v836_v28, %v824_v54 }
  0xe1   :  { %vm694_vm12 = vcmp.ge.f32.partialorder %v2877_v36, 0.0  ;;  %v565_v48 = vxor.u32 %v553_v8, %v541_v58  ;;  %v569_v11 = vand.u32 16777215, %v557_v45  ;;  %v852_v22 = vxor.u32 %v840_v2, %v828_v6 }
  0xe2   :  { %v573_v17 = vand.u32 16777215, %v561_v43  ;;  %v856_v52 = vxor.u32 %v844_v5, %v832_v18  ;;  %v860_v55 = vmul.u32 3266489909, %v848_v15  ;;  %v795_v21 = vadd.s32 %v2343_v30, %v2855_v35 }
  0xe3   :  { %v577_v14 = vand.u32 16777215, %v565_v48  ;;  %v581_v62 = vcvt.s32.f32 %v569_v11  ;;  %v864_v16 = vmul.u32 3266489909, %v852_v22  ;;  %v799_v20 = vshrl.u32 %v787_v4, 16 }
  0xe4   :  { %v585_v26 = vcvt.s32.f32 %v573_v17  ;;  %v868_v47 = vmul.u32 3266489909, %v856_v52  ;;  %v872_v13 = vshrl.u32 %v860_v55, 16  ;;  %vm698_vm13 = vcmp.ge.f32.partialorder %v2884_v25, 0.0 }
  0xe5   :  { %v589_v27 = vcvt.s32.f32 %v577_v14  ;;  %v593_v42 = vmul.f32 5.9604645e-08, %v581_v62  ;;  %v876_v23 = vshrl.u32 %v864_v16, 16  ;;  %v803_v40 = vshrl.u32 %v791_v57, 16 }
  0xe6   :  { %v597_v58 = vmul.f32 5.9604645e-08, %v585_v26  ;;  %v880_v63 = vshrl.u32 %v868_v47, 16  ;;  %v884_v6 = vxor.u32 %v872_v13, %v860_v55  ;;  %v807_v30 = vshrl.u32 %v795_v21, 16 }
  0xe7   :  { %v2146_v54 = vpop.eup %2145  ;;  %v601_v8 = vmul.f32 5.9604645e-08, %v589_v27  ;;  %v2910_v45 = vadd.f32 -0.5, %v593_v42  ;;  %v888_v15 = vxor.u32 %v876_v23, %v864_v16  ;;  %v811_v48 = vxor.u32 %v799_v20, %v787_v4 }
  0xe8   :  { %v2148_v18 = vpop.eup %2147  ;;  %v670_v28 = vmul.f32 0.6931472, %v2146_v54  ;;  %v2912_v5 = vadd.f32 -0.5, %v597_v58  ;;  %v892_v62 = vxor.u32 %v880_v63, %v868_v47  ;;  %v896_v26 = vand.u32 16777215, %v884_v6 }
  0xe9   :  { %v2150_v2 = vpop.eup %2149  ;;  %v678_v43 = vmul.f32 0.6931472, %v2148_v18  ;;  %v2914_v17 = vadd.f32 -0.5, %v601_v8  ;;  %v617_v52 = vand.u32 2147483647, %v2910_v45  ;;  %v815_v23 = vxor.u32 %v803_v40, %v791_v57 }
  0xea   :  { %v686_v11 = vmul.f32 0.6931472, %v2150_v2  ;;  %v702_v22 = vsub.f32 0.0, %v670_v28  ;;  %v621_v14 = vand.u32 2147483647, %v2912_v5  ;;  %v819_v57 = vxor.u32 %v807_v30, %v795_v21 }
  0xeb   :  { %v706_v55 = vsub.f32 0.0, %v678_v43  ;;  %v625_v42 = vand.u32 2147483647, %v2914_v17  ;;  %v629_v54 = vmul.f32 2.0, %v617_v52  ;;  %v904_v8 = vand.u32 16777215, %v892_v62 }
  0xec   :  { %v710_v13 = vsub.f32 0.0, %v686_v11  ;;  %v714_v27 = vsel %vm690_vm11, %v702_v22, %v670_v28  ;;  %v633_v20 = vmul.f32 2.0, %v621_v14  ;;  %v900_v28 = vand.u32 16777215, %v888_v15 }
  0xed   :  { %v718_v4 = vsel %vm694_vm12, %v706_v55, %v678_v43  ;;  %v726_v16 = vmul.f32 %v714_v27, %v2802_v56  ;;  %v637_v63 = vmul.f32 2.0, %v625_v42  ;;  %v641_v6 = vsub.f32 1.0, %v629_v54 }
  0xee   :  { %v722_v58 = vsel %vm698_vm13, %v710_v13, %v686_v11  ;;  %v730_v47 = vmul.f32 %v718_v4, %v2811_v7  ;;  %v645_v18 = vsub.f32 1.0, %v633_v20  ;;  %v908_v43 = vcvt.s32.f32 %v896_v26 }
  0xef   :  { %v734_v10 = vmul.f32 %v722_v58, %v2818_v59  ;;  %v649_v22 = vsub.f32 1.0, %v637_v63  ;;  %v653_v36 = vmax.f32 %v641_v6, 1e-12  ;;  %v912_v55 = vcvt.s32.f32 %v900_v28 }
  0xf0   :  { %v738_v2 = vadd.f32 %v730_v47, %v726_v16  ;;  %v657_v52 = vmax.f32 %v645_v18, 1e-12  ;;  %v916_v14 = vcvt.s32.f32 %v904_v8  ;;  %v920_v11 = vmul.f32 5.9604645e-08, %v908_v43 }
  0xf1   :  { %v661_v25 = vmax.f32 %v649_v22, 1e-12  ;;  %2151 = vlog2.f32 %v653_v36  ;;  %v924_v13 = vmul.f32 5.9604645e-08, %v912_v55  ;;  %v823_v42 = vmul.u32 2246822507, %v811_v48 }
  0xf2   :  { %v2928_v40 = vadd.f32 %v738_v2, %v734_v10  ;;  %2153 = vlog2.f32 %v657_v52  ;;  %v928_v27 = vmul.f32 5.9604645e-08, %v916_v14  ;;  %v2933_v62 = vadd.f32 0.0141, %v2892_v61 }
  0xf3   :  { %2155 = vlog2.f32 %v661_v25  ;;  %v2935_v26 = vadd.f32 -0.5, %v920_v11  ;;  %v2937_v54 = vadd.f32 -0.5, %v924_v13  ;;  %v827_v30 = vmul.u32 2246822507, %v815_v23 }
  0xf4   :  { %3374 = vst [vmem:[#allocation16_spill] sm:$0xff] %v2928_v40  ;;  %v746_v15 = vadd.f32 %v2805_v51, %v2928_v40  ;;  %v2939_v21 = vadd.f32 -0.5, %v928_v27  ;;  %v831_v4 = vmul.u32 2246822507, %v819_v57  ;;  %v2943_v16 = vadd.f32 0.0141, %v2896_v50 }
  0xf5   :  { %vm689_vm14 = vcmp.ge.f32.partialorder %v2910_v45, 0.0  ;;  %v944_v48 = vand.u32 2147483647, %v2935_v26  ;;  %v835_v61 = vshrl.u32 %v823_v42, 13  ;;  %vm693_vm15 = vcmp.ge.f32.partialorder %v2912_v5, 0.0 }
  0xf6   :  { %757 = vrot.lane.b32.xlu1 %v746_v15, %s2268_s13  ;;  %v948_v20 = vand.u32 2147483647, %v2937_v54  ;;  %v952_v58 = vand.u32 2147483647, %v2939_v21  ;;  %v1114_v23 = vadd.s32 %v2474_v49, %v2775_v60  ;;  %v839_v63 = vshrl.u32 %v827_v30, 13 }
  0xf7   :  { %v956_v47 = vmul.f32 2.0, %v944_v48  ;;  %v843_v6 = vshrl.u32 %v831_v4, 13  ;;  %v847_v10 = vxor.u32 %v835_v61, %v823_v42  ;;  %vm697_vm0 = vcmp.ge.f32.partialorder %v2914_v17, 0.0 }
  0xf8   :  { %v960_v50 = vmul.f32 2.0, %v948_v20  ;;  %v964_v18 = vmul.f32 2.0, %v952_v58  ;;  %v1118_v28 = vadd.s32 %v2474_v49, %v2783_v12  ;;  %v851_v2 = vxor.u32 %v839_v63, %v827_v30 }
  0xf9   :  { %v968_v8 = vsub.f32 1.0, %v956_v47  ;;  %v855_v22 = vxor.u32 %v843_v6, %v831_v4  ;;  %v859_v36 = vmul.u32 3266489909, %v847_v10  ;;  %v1126_v55 = vshrl.u32 %v1114_v23, 16 }
  0xfa   :  { %v972_v43 = vsub.f32 1.0, %v960_v50  ;;  %v976_v52 = vsub.f32 1.0, %v964_v18  ;;  %v1130_v14 = vshrl.u32 %v1118_v28, 16  ;;  %v863_v11 = vmul.u32 3266489909, %v851_v2 }
  0xfb   :  { %v2152_v57 = vpop.eup %2151  ;;  %v980_v25 = vmax.f32 %v968_v8, 1e-12  ;;  %v867_v13 = vmul.u32 3266489909, %v855_v22  ;;  %v1122_v27 = vadd.s32 %v2474_v49, %v2786_v1  ;;  %v2957_v20 = vxor.u32 %v1126_v55, %v1114_v23 }
  0xfc   :  { %v2154_v42 = vpop.eup %2153  ;;  %v668_v15 = vmul.f32 0.6931472, %v2152_v57  ;;  %v984_v48 = vmax.f32 %v972_v43, 1e-12  ;;  %v988_v61 = vmax.f32 %v976_v52, 1e-12 }
  0xfd   :  { %v2156_v30 = vpop.eup %2155  ;;  %v676_v4 = vmul.f32 0.6931472, %v2154_v42  ;;  %2157 = vlog2.f32 %v980_v25  ;;  %v871_v58 = vshrl.u32 %v859_v36, 16  ;;  %v875_v47 = vshrl.u32 %v863_v11, 16 }
  0xfe   :  { %v684_v63 = vmul.f32 0.6931472, %v2156_v30  ;;  %v701_v6 = vsub.f32 0.0, %v668_v15  ;;  %2159 = vlog2.f32 %v984_v48  ;;  %v879_v10 = vshrl.u32 %v867_v13, 16 }
  0xff   :  { %v705_v50 = vsub.f32 0.0, %v676_v4  ;;  %2161 = vlog2.f32 %v988_v61  ;;  %v883_v18 = vxor.u32 %v871_v58, %v859_v36  ;;  %v887_v8 = vxor.u32 %v875_v47, %v863_v11 }
 0x100   :  { %v709_v2 = vsub.f32 0.0, %v684_v63  ;;  %v713_v22 = vsel %vm689_vm14, %v701_v6, %v668_v15  ;;  %v891_v43 = vxor.u32 %v879_v10, %v867_v13  ;;  %v1134_v23 = vshrl.u32 %v1122_v27, 16 }
 0x101   :  { %v717_v52 = vsel %vm693_vm15, %v705_v50, %v676_v4  ;;  %v725_v55 = vmul.f32 %v713_v22, %v2899_v38  ;;  %v895_v57 = vand.u32 16777215, %v883_v18  ;;  %v899_v25 = vand.u32 16777215, %v887_v8 }
 0x102   :  { %v721_v42 = vsel %vm697_vm0, %v709_v2, %v684_v63  ;;  %v729_v48 = vmul.f32 %v717_v52, %v2933_v62  ;;  %v903_v36 = vand.u32 16777215, %v891_v43  ;;  %v1142_v11 = vxor.u32 %v1130_v14, %v1118_v28 }
 0x103   :  { %v733_v61 = vmul.f32 %v721_v42, %v2943_v16  ;;  %v907_v45 = vcvt.s32.f32 %v895_v57  ;;  %v911_v15 = vcvt.s32.f32 %v899_v25  ;;  %v1146_v13 = vxor.u32 %v1134_v23, %v1122_v27 }
 0x104   :  { %v737_v30 = vadd.f32 %v729_v48, %v725_v55  ;;  %v915_v58 = vcvt.s32.f32 %v903_v36  ;;  %v1150_v5 = vmul.u32 2246822507, %v2957_v20  ;;  %v1154_v4 = vmul.u32 2246822507, %v1142_v11 }
 0x105   :  { %vm1016_vm1 = vcmp.ge.f32.partialorder %v2935_v26, 0.0  ;;  %vm1020_vm2 = vcmp.ge.f32.partialorder %v2937_v54, 0.0  ;;  %v919_v17 = vmul.f32 5.9604645e-08, %v907_v45  ;;  %v923_v47 = vmul.f32 5.9604645e-08, %v911_v15 }
 0x106   :  { %v2971_v63 = vadd.f32 %v737_v30, %v733_v61  ;;  %vm1024_vm3 = vcmp.ge.f32.partialorder %v2939_v21, 0.0  ;;  %v927_v28 = vmul.f32 5.9604645e-08, %v915_v58  ;;  %v1158_v14 = vmul.u32 2246822507, %v1146_v13 }
 0x107   :  { %v2158_v6 = vpop.eup %2157  ;;  %v2974_v10 = vadd.f32 -0.5, %v919_v17  ;;  %v2976_v27 = vadd.f32 -0.5, %v923_v47  ;;  %v1162_v50 = vshrl.u32 %v1150_v5, 13  ;;  %v1113_v20 = vadd.s32 %v2474_v49, %v2850_v3 }
 0x108   :  { %3375 = vst [vmem:[#allocation17_spill] sm:$0xff] %v2971_v63  ;;  %v2160_v18 = vpop.eup %2159  ;;  %v745_v8 = vadd.f32 %v2880_v32, %v2971_v63  ;;  %v996_v2 = vmul.f32 0.6931472, %v2158_v6  ;;  %v2982_v22 = vadd.f32 -0.5, %v927_v28  ;;  %v1166_v43 = vshrl.u32 %v1154_v4, 13 }
 0x109   :  { %v2162_v23 = vpop.eup %2161  ;;  %v1004_v52 = vmul.f32 0.6931472, %v2160_v18  ;;  %v943_v55 = vand.u32 2147483647, %v2974_v10  ;;  %v947_v57 = vand.u32 2147483647, %v2976_v27  ;;  %v1117_v25 = vadd.s32 %v2474_v49, %v2853_v39 }
 0x10a   :  { %755 = vrot.lane.b32.xlu0 %v745_v8, %s2268_s13  ;;  %v1012_v42 = vmul.f32 0.6931472, %v2162_v23  ;;  %v1028_v48 = vsub.f32 0.0, %v996_v2  ;;  %v951_v36 = vand.u32 2147483647, %v2982_v22  ;;  %v1170_v11 = vshrl.u32 %v1158_v14, 13 }
 0x10b   :  { %v1032_v61 = vsub.f32 0.0, %v1004_v52  ;;  %v955_v45 = vmul.f32 2.0, %v943_v55  ;;  %v959_v15 = vmul.f32 2.0, %v947_v57  ;;  %v1121_v13 = vadd.s32 %v2474_v49, %v2855_v35 }
 0x10c   :  { %v1036_v30 = vsub.f32 0.0, %v1012_v42  ;;  %v1040_v58 = vsel %vm1016_vm1, %v1028_v48, %v996_v2  ;;  %v963_v17 = vmul.f32 2.0, %v951_v36  ;;  %v1174_v47 = vxor.u32 %v1162_v50, %v1150_v5 }
 0x10d   :  { %v1044_v28 = vsel %vm1020_vm2, %v1032_v61, %v1004_v52  ;;  %v1052_v6 = vmul.f32 %v1040_v58, %v2802_v56  ;;  %v967_v18 = vsub.f32 1.0, %v955_v45  ;;  %v971_v8 = vsub.f32 1.0, %v959_v15 }
 0x10e   :  { %v1048_v23 = vsel %vm1024_vm3, %v1036_v30, %v1012_v42  ;;  %v1056_v55 = vmul.f32 %v1044_v28, %v2811_v7  ;;  %v975_v57 = vsub.f32 1.0, %v963_v17  ;;  %v1178_v49 = vxor.u32 %v1166_v43, %v1154_v4 }
 0x10f   :  { %v1060_v63 = vmul.f32 %v1048_v23, %v2818_v59  ;;  %v979_v26 = vmax.f32 %v967_v18, 1e-12  ;;  %v983_v2 = vmax.f32 %v971_v8, 1e-12  ;;  %v1182_v48 = vxor.u32 %v1170_v11, %v1158_v14 }
 0x110   :  { %v1064_v5 = vadd.f32 %v1056_v55, %v1052_v6  ;;  %v987_v50 = vmax.f32 %v975_v57, 1e-12  ;;  %v1186_v54 = vmul.u32 3266489909, %v1174_v47  ;;  %v1190_v52 = vmul.u32 3266489909, %v1178_v49 }
 0x111   :  { %2163 = vlog2.f32 %v979_v26  ;;  %v1194_v36 = vmul.u32 3266489909, %v1182_v48  ;;  %v1125_v61 = vshrl.u32 %v1113_v20, 16  ;;  %v1129_v45 = vshrl.u32 %v1117_v25, 16 }
 0x112   :  { %v3001_v15 = vadd.f32 %v1064_v5, %v1060_v63  ;;  %2165 = vlog2.f32 %v983_v2  ;;  %v1198_v21 = vshrl.u32 %v1186_v54, 16  ;;  %v1202_v42 = vshrl.u32 %v1190_v52, 16 }
 0x113   :  { %2167 = vlog2.f32 %v987_v50  ;;  %v1206_v4 = vshrl.u32 %v1194_v36, 16  ;;  %v1133_v43 = vshrl.u32 %v1121_v13, 16  ;;  %v1137_v30 = vxor.u32 %v1125_v61, %v1113_v20 }
 0x114   :  { %3376 = vst [vmem:[#allocation18_spill] sm:$0xff] %v3001_v15  ;;  %v1072_v14 = vadd.f32 %v2805_v51, %v3001_v15  ;;  %v1210_v11 = vxor.u32 %v1198_v21, %v1186_v54  ;;  %v1214_v58 = vxor.u32 %v1202_v42, %v1190_v52  ;;  %v1141_v47 = vxor.u32 %v1129_v45, %v1117_v25 }
 0x115   :  { %v1218_v17 = vxor.u32 %v1206_v4, %v1194_v36  ;;  %v1145_v28 = vxor.u32 %v1133_v43, %v1121_v13  ;;  %v1149_v6 = vmul.u32 2246822507, %v1137_v30  ;;  %vm1015_vm4 = vcmp.ge.f32.partialorder %v2974_v10, 0.0 }
 0x116   :  { %1083 = vrot.lane.b32.xlu1 %v1072_v14, %s2267_s12  ;;  %v1222_v63 = vand.u32 16777215, %v1210_v11  ;;  %v1226_v18 = vand.u32 16777215, %v1214_v58  ;;  %v1440_v8 = vadd.s32 %v2624_v33, %v2775_v60  ;;  %v1153_v20 = vmul.u32 2246822507, %v1141_v47 }
 0x117   :  { %v1230_v23 = vand.u32 16777215, %v1218_v17  ;;  %v1157_v55 = vmul.u32 2246822507, %v1145_v28  ;;  %v1444_v57 = vadd.s32 %v2624_v33, %v2783_v12  ;;  %vm1019_vm5 = vcmp.ge.f32.partialorder %v2976_v27, 0.0 }
 0x118   :  { %v1234_v25 = vcvt.s32.f32 %v1222_v63  ;;  %v1238_v13 = vcvt.s32.f32 %v1226_v18  ;;  %v1161_v49 = vshrl.u32 %v1149_v6, 13  ;;  %vm1023_vm6 = vcmp.ge.f32.partialorder %v2982_v22, 0.0 }
 0x119   :  { %v1242_v26 = vcvt.s32.f32 %v1230_v23  ;;  %v1165_v2 = vshrl.u32 %v1153_v20, 13  ;;  %v1448_v48 = vadd.s32 %v2624_v33, %v2786_v1  ;;  %v1169_v54 = vshrl.u32 %v1157_v55, 13 }
 0x11a   :  { %v1246_v5 = vmul.f32 5.9604645e-08, %v1234_v25  ;;  %v1250_v50 = vmul.f32 5.9604645e-08, %v1238_v13  ;;  %v1173_v52 = vxor.u32 %v1161_v49, %v1149_v6  ;;  %v1452_v21 = vshrl.u32 %v1440_v8, 16 }
 0x11b   :  { %v2164_v36 = vpop.eup %2163  ;;  %v1254_v61 = vmul.f32 5.9604645e-08, %v1242_v26  ;;  %v1177_v45 = vxor.u32 %v1165_v2, %v1153_v20  ;;  %v1456_v42 = vshrl.u32 %v1444_v57, 16  ;;  %v1460_v63 = vshrl.u32 %v1448_v48, 16 }
 0x11c   :  { %v2166_v4 = vpop.eup %2165  ;;  %v994_v43 = vmul.f32 0.6931472, %v2164_v36  ;;  %v3015_v30 = vadd.f32 -0.5, %v1246_v5  ;;  %v3017_v14 = vadd.f32 -0.5, %v1250_v50  ;;  %v1185_v11 = vmul.u32 3266489909, %v1173_v52 }
 0x11d   :  { %v2168_v58 = vpop.eup %2167  ;;  %v1002_v17 = vmul.f32 0.6931472, %v2166_v4  ;;  %v3019_v47 = vadd.f32 -0.5, %v1254_v61  ;;  %v1189_v28 = vmul.u32 3266489909, %v1177_v45  ;;  %v1181_v20 = vxor.u32 %v1169_v54, %v1157_v55 }
 0x11e   :  { %v1010_v18 = vmul.f32 0.6931472, %v2168_v58  ;;  %v1027_v6 = vsub.f32 0.0, %v994_v43  ;;  %v1270_v23 = vand.u32 2147483647, %v3015_v30  ;;  %v1464_v26 = vxor.u32 %v1452_v21, %v1440_v8 }
 0x11f   :  { %v1031_v25 = vsub.f32 0.0, %v1002_v17  ;;  %v1274_v13 = vand.u32 2147483647, %v3017_v14  ;;  %v1278_v49 = vand.u32 2147483647, %v3019_v47  ;;  %v1468_v52 = vxor.u32 %v1456_v42, %v1444_v57 }
 0x120   :  { %v1035_v2 = vsub.f32 0.0, %v1010_v18  ;;  %v1039_v5 = vsel %vm1015_vm4, %v1027_v6, %v994_v43  ;;  %v1282_v50 = vmul.f32 2.0, %v1270_v23  ;;  %v1193_v8 = vmul.u32 3266489909, %v1181_v20 }
 0x121   :  { %v1043_v36 = vsel %vm1019_vm5, %v1031_v25, %v1002_v17  ;;  %v1051_v61 = vmul.f32 %v1039_v5, %v2899_v38  ;;  %v1286_v45 = vmul.f32 2.0, %v1274_v13  ;;  %v1290_v4 = vmul.f32 2.0, %v1278_v49 }
 0x122   :  { %v1047_v55 = vsel %vm1023_vm6, %v1035_v2, %v1010_v18  ;;  %v1055_v54 = vmul.f32 %v1043_v36, %v2933_v62  ;;  %v1294_v58 = vsub.f32 1.0, %v1282_v50  ;;  %v1197_v6 = vshrl.u32 %v1185_v11, 16 }
 0x123   :  { %v1059_v21 = vmul.f32 %v1047_v55, %v2943_v16  ;;  %v1298_v10 = vsub.f32 1.0, %v1286_v45  ;;  %v1302_v43 = vsub.f32 1.0, %v1290_v4  ;;  %v1201_v27 = vshrl.u32 %v1189_v28, 16 }
 0x124   :  { %v1063_v57 = vadd.f32 %v1055_v54, %v1051_v61  ;;  %v1306_v42 = vmax.f32 %v1294_v58, 1e-12  ;;  %v1205_v17 = vshrl.u32 %v1193_v8, 16  ;;  %v1209_v13 = vxor.u32 %v1197_v6, %v1185_v11 }
 0x125   :  { %v1310_v23 = vmax.f32 %v1298_v10, 1e-12  ;;  %v1314_v25 = vmax.f32 %v1302_v43, 1e-12  ;;  %v1472_v49 = vxor.u32 %v1460_v63, %v1448_v48  ;;  %v1213_v22 = vxor.u32 %v1201_v27, %v1189_v28 }
 0x126   :  { %v3033_v5 = vadd.f32 %v1063_v57, %v1059_v21  ;;  %2169 = vlog2.f32 %v1306_v42  ;;  %v1217_v18 = vxor.u32 %v1205_v17, %v1193_v8  ;;  %v1221_v20 = vand.u32 16777215, %v1209_v13 }
 0x127   :  { %2171 = vlog2.f32 %v1310_v23  ;;  %v1476_v2 = vmul.u32 2246822507, %v1464_v26  ;;  %v1480_v50 = vmul.u32 2246822507, %v1468_v52  ;;  %v1225_v61 = vand.u32 16777215, %v1213_v22 }
 0x128   :  { %3377 = vst [vmem:[#allocation19_spill] sm:$0xff] %v3033_v5  ;;  %v1071_v36 = vadd.f32 %v2880_v32, %v3033_v5  ;;  %2173 = vlog2.f32 %v1314_v25  ;;  %v1229_v45 = vand.u32 16777215, %v1217_v18  ;;  %v1233_v4 = vcvt.s32.f32 %v1221_v20 }
 0x129   :  { %v1484_v55 = vmul.u32 2246822507, %v1472_v49  ;;  %v1488_v54 = vshrl.u32 %v1476_v2, 13  ;;  %vm1342_vm7 = vcmp.ge.f32.partialorder %v3015_v30, 0.0  ;;  %v1237_v48 = vcvt.s32.f32 %v1225_v61 }
 0x12a   :  { %1081 = vrot.lane.b32.xlu0 %v1071_v36, %s2267_s12  ;;  %v1492_v11 = vshrl.u32 %v1480_v50, 13  ;;  %v3041_v28 = vadd.s32 %v2624_v33, %v2850_v3  ;;  %v1241_v63 = vcvt.s32.f32 %v1229_v45  ;;  %v1245_v26 = vmul.f32 5.9604645e-08, %v1233_v4  ;;  %s1969_s12 = sshll.u32 %s2275_s11, 4  ;;  %s1970_s12 = int_to_ptr.vmem [resolvable:$true] %s1969_s12 }
 0x12b   :  { %v1496_v52 = vshrl.u32 %v1484_v55, 13  ;;  %v1500_v58 = vxor.u32 %v1488_v54, %v1476_v2  ;;  %v1249_v8 = vmul.f32 5.9604645e-08, %v1237_v48  ;;  %v1443_v10 = vadd.s32 %v2624_v33, %v2853_v39  ;;  %s2219_s13 = scalar_lea.vmem %s1970_s12, 128  ;;  %p2224_p1 = scmp.lt.s32.totalorder %s1970_s12, %s1970_s12 }
 0x12c   :  { %v1504_v21 = vxor.u32 %v1492_v11, %v1480_v50  ;;  %v1447_v43 = vadd.s32 %v2624_v33, %v2855_v35  ;;  %v1253_v6 = vmul.f32 5.9604645e-08, %v1241_v63  ;;  %v3047_v57 = vadd.f32 -0.5, %v1245_v26  ;;  %p2220_p0 = scmp.ne.s32.totalorder %s1970_s12, %s2219_s13  ;;  %p2225_p2 = scmp.lt.s32.totalorder %s2219_s13, %s2219_s13 }
 0x12d   :  { %v1508_v42 = vxor.u32 %v1496_v52, %v1484_v55  ;;  %v1512_v27 = vmul.u32 3266489909, %v1500_v58  ;;  %vm1346_vm8 = vcmp.ge.f32.partialorder %v3017_v14, 0.0  ;;  %vm1350_vm9 = vcmp.ge.f32.partialorder %v3019_v47, 0.0 }
 0x12e   :  { %v3051_v17 = vadd.f32 -0.5, %v1249_v8  ;;  %v1516_v23 = vmul.u32 3266489909, %v1504_v21  ;;  %v3053_v25 = vadd.f32 -0.5, %v1253_v6  ;;  %v1269_v13 = vand.u32 2147483647, %v3047_v57  ;;  %p2226_p3 = por %p2225_p2, %p2224_p1 }
 0x12f   :  { %v1520_v49 = vmul.u32 3266489909, %v1508_v42  ;;  %v1451_v22 = vshrl.u32 %v3041_v28, 16  ;;  %v1524_v20 = vshrl.u32 %v1512_v27, 16  ;;  %v1455_v50 = vshrl.u32 %v1443_v10, 16 }
 0x130   :  { %v2170_v33 = vpop.eup %2169  ;;  %v1273_v18 = vand.u32 2147483647, %v3051_v17  ;;  %v1528_v2 = vshrl.u32 %v1516_v23, 16  ;;  %v1277_v45 = vand.u32 2147483647, %v3053_v25  ;;  %v1281_v4 = vmul.f32 2.0, %v1269_v13  ;;  %p2227_p4 = pnand %p2226_p3, %p2220_p0 }
 0x131   :  { %v2172_v36 = vpop.eup %2171  ;;  %v1322_v61 = vmul.f32 0.6931472, %v2170_v33  ;;  %v1459_v55 = vshrl.u32 %v1447_v43, 16  ;;  %v1532_v63 = vshrl.u32 %v1520_v49, 16  ;;  %v1536_v26 = vxor.u32 %v1524_v20, %v1512_v27 }
 0x132   :  { %v2174_v54 = vpop.eup %2173  ;;  %v1330_v48 = vmul.f32 0.6931472, %v2172_v36  ;;  %v1285_v11 = vmul.f32 2.0, %v1273_v18  ;;  %v1289_v8 = vmul.f32 2.0, %v1277_v45  ;;  %v1293_v21 = vsub.f32 1.0, %v1281_v4 }
 0x133   :  { %v1338_v52 = vmul.f32 0.6931472, %v2174_v54  ;;  %v1354_v58 = vsub.f32 0.0, %v1322_v61  ;;  %v1540_v5 = vxor.u32 %v1528_v2, %v1516_v23  ;;  %v1544_v15 = vxor.u32 %v1532_v63, %v1520_v49 }
 0x134   :  { %v1358_v6 = vsub.f32 0.0, %v1330_v48  ;;  %v1297_v42 = vsub.f32 1.0, %v1285_v11  ;;  %v1301_v0 = vsub.f32 1.0, %v1289_v8  ;;  %v1305_v13 = vmax.f32 %v1293_v21, 1e-12 }
 0x135   :  { %v1362_v40 = vsub.f32 0.0, %v1338_v52  ;;  %v1366_v33 = vsel %vm1342_vm7, %v1354_v58, %v1322_v61  ;;  %v1548_v20 = vand.u32 16777215, %v1536_v26  ;;  %v1552_v30 = vand.u32 16777215, %v1540_v5 }
 0x136   :  { %v1370_v36 = vsel %vm1346_vm8, %v1358_v6, %v1330_v48  ;;  %v1378_v18 = vmul.f32 %v1366_v33, %v2802_v56  ;;  %v1309_v27 = vmax.f32 %v1297_v42, 1e-12  ;;  %v1313_v23 = vmax.f32 %v1301_v0, 1e-12  ;;  %v752_v6 = vpop.permute.xlu0 %751 }
 0x137   :  { %v1374_v45 = vsel %vm1350_vm9, %v1362_v40, %v1338_v52  ;;  %v1382_v4 = vmul.f32 %v1370_v36, %v2811_v7  ;;  %2175 = vlog2.f32 %v1305_v13  ;;  %v1556_v2 = vand.u32 16777215, %v1544_v15 }
 0x138   :  { %v1386_v49 = vmul.f32 %v1374_v45, %v2818_v59  ;;  %2177 = vlog2.f32 %v1309_v27  ;;  %v1560_v14 = vcvt.s32.f32 %v1548_v20  ;;  %v1463_v54 = vxor.u32 %v1451_v22, %v3041_v28 }
 0x139   :  { %v1390_v61 = vadd.f32 %v1382_v4, %v1378_v18  ;;  %2179 = vlog2.f32 %v1313_v23  ;;  %v1564_v48 = vcvt.s32.f32 %v1552_v30  ;;  %v1568_v11 = vcvt.s32.f32 %v1556_v2 }
 0x13a   :  { %v1467_v63 = vxor.u32 %v1455_v50, %v1443_v10  ;;  %v1471_v26 = vxor.u32 %v1459_v55, %v1447_v43  ;;  %v1572_v40 = vmul.f32 5.9604645e-08, %v1560_v14  ;;  %v1475_v52 = vmul.u32 2246822507, %v1463_v54 }
 0x13b   :  { %v3069_v47 = vadd.f32 %v1390_v61, %v1386_v49  ;;  %v1576_v0 = vmul.f32 5.9604645e-08, %v1564_v48  ;;  %v1580_v58 = vmul.f32 5.9604645e-08, %v1568_v11  ;;  %vm1341_vm10 = vcmp.ge.f32.partialorder %v3047_v57, 0.0  ;;  %v3088_v61 = vpop.permute.xlu0 %753 }
 0x13c   :  { %v1479_v8 = vmul.u32 2246822507, %v1467_v63  ;;  %v1483_v21 = vmul.u32 2246822507, %v1471_v26  ;;  %v3074_v5 = vadd.f32 -0.5, %v1572_v40  ;;  %v1487_v28 = vshrl.u32 %v1475_v52, 13 }
 0x13d   :  { %v1398_v15 = vadd.f32 %v2805_v51, %v3069_v47  ;;  %v3076_v22 = vadd.f32 -0.5, %v1576_v0  ;;  %v3078_v10 = vadd.f32 -0.5, %v1580_v58  ;;  %vm1345_vm11 = vcmp.ge.f32.partialorder %v3051_v17, 0.0 }
 0x13e   :  { %v1491_v43 = vshrl.u32 %v1479_v8, 13  ;;  %v1495_v50 = vshrl.u32 %v1483_v21, 13  ;;  %vm1349_vm12 = vcmp.ge.f32.partialorder %v3053_v25, 0.0  ;;  %v1596_v55 = vand.u32 2147483647, %v3074_v5 }
 0x13f   :  { %1409 = vrot.lane.b32.xlu1 %v1398_v15, %s2269_s0  ;;  %v1499_v42 = vxor.u32 %v1487_v28, %v1475_v52  ;;  %v1600_v33 = vand.u32 2147483647, %v3076_v22  ;;  %v1604_v13 = vand.u32 2147483647, %v3078_v10  ;;  %vm444_vm13 = vcmask 130048  }
 0x140   :  { %vm763_vm14 = vcmask 261248   ;;  %v1608_v18 = vmul.f32 2.0, %v1596_v55  ;;  %v1503_v27 = vxor.u32 %v1491_v43, %v1479_v8  ;;  %v1507_v20 = vxor.u32 %v1495_v50, %v1483_v21 }
 0x141   :  { %v2176_v36 = vpop.eup %2175  ;;  %v1511_v45 = vmul.u32 3266489909, %v1499_v42  ;;  %v1612_v49 = vmul.f32 2.0, %v1600_v33  ;;  %v1616_v30 = vmul.f32 2.0, %v1604_v13  ;;  %v440_v2 = vadd.f32 %v2341_v29, %v2515_v53 }
 0x142   :  { %v2178_v4 = vpop.eup %2177  ;;  %v1320_v23 = vmul.f32 0.6931472, %v2176_v36  ;;  %v1620_v48 = vsub.f32 1.0, %v1608_v18  ;;  %v1515_v11 = vmul.u32 3266489909, %v1503_v27  ;;  %v1404_v18 = vpop.permute.xlu0 %1403  ;;  %v161_v25 = vadd.s32 %v2348_v31, %v2472_v37 }
 0x143   :  { %v2180_v14 = vpop.eup %2179  ;;  %v1328_v54 = vmul.f32 0.6931472, %v2178_v4  ;;  %v1523_v63 = vshrl.u32 %v1511_v45, 16  ;;  %v1624_v52 = vsub.f32 1.0, %v1612_v49  ;;  %v1628_v0 = vsub.f32 1.0, %v1616_v30  ;;  %445 = vst.msk [vmem:[#allocation2] sm:$0xff] %vm444_vm13, %v440_v2  ;;  %v1078_v4 = vpop.permute.xlu1 %1077 }
 0x144   :  { %v1336_v26 = vmul.f32 0.6931472, %v2180_v14  ;;  %v1353_v40 = vsub.f32 0.0, %v1320_v23  ;;  %v1632_v8 = vmax.f32 %v1620_v48, 1e-12  ;;  %v1527_v15 = vshrl.u32 %v1515_v11, 16 }
 0x145   :  { %v1357_v58 = vsub.f32 0.0, %v1328_v54  ;;  %v1519_v21 = vmul.u32 3266489909, %v1507_v20  ;;  %764 = vst.msk [vmem:[#allocation2] sm:$0xff] %vm763_vm14, %v752_v6  ;;  %v1636_v43 = vmax.f32 %v1624_v52, 1e-12  ;;  %v1535_v6 = vxor.u32 %v1523_v63, %v1511_v45 }
 0x146   :  { %v1361_v53 = vsub.f32 0.0, %v1336_v26  ;;  %v1365_v28 = vsel %vm1341_vm10, %v1353_v40, %v1320_v23  ;;  %v1640_v50 = vmax.f32 %v1628_v0, 1e-12  ;;  %2181 = vlog2.f32 %v1632_v8 }
 0x147   :  { %v1369_v55 = vsel %vm1345_vm11, %v1357_v58, %v1328_v54  ;;  %v1377_v42 = vmul.f32 %v1365_v28, %v2899_v38  ;;  %v1531_v33 = vshrl.u32 %v1519_v21, 16  ;;  %2183 = vlog2.f32 %v1636_v43 }
 0x148   :  { %v1373_v13 = vsel %vm1349_vm12, %v1361_v53, %v1336_v26  ;;  %v1381_v36 = vmul.f32 %v1369_v55, %v2933_v62  ;;  %2185 = vlog2.f32 %v1640_v50  ;;  %v1539_v27 = vxor.u32 %v1527_v15, %v1515_v11 }
 0x149   :  { %v1385_v57 = vmul.f32 %v1373_v13, %v2943_v16  ;;  %v1543_v20 = vxor.u32 %v1531_v33, %v1519_v21  ;;  %v1547_v23 = vand.u32 16777215, %v1535_v6  ;;  %v157_v49 = vadd.s32 %v2348_v31, %v2469_v9 }
 0x14a   :  { %v1389_v17 = vadd.f32 %v1381_v36, %v1377_v42  ;;  %v1551_v30 = vand.u32 16777215, %v1539_v27  ;;  %v165_v45 = vadd.s32 %v2348_v31, %v2476_v19  ;;  %vm1089_vm15 = vcmask 392448   ;;  %v1730_v19 = vpop.permute.xlu0 %1729 }
 0x14b   :  { %v1555_v2 = vand.u32 16777215, %v1543_v20  ;;  %v1559_v54 = vcvt.s32.f32 %v1547_v23  ;;  %v169_v48 = vshrl.u32 %v157_v49, 16  ;;  %v173_v11 = vshrl.u32 %v161_v25, 16  ;;  %1090 = vst.msk [vmem:[#allocation2] sm:$0xff] %vm1089_vm15, %v1078_v4 }
 0x14c   :  { %v3107_v14 = vadd.f32 %v1389_v17, %v1385_v57  ;;  %v1563_v63 = vcvt.s32.f32 %v1551_v30  ;;  %v177_v40 = vshrl.u32 %v165_v45, 16  ;;  %vm1415_vm0 = vcmask 523648  }
 0x14d   :  { %v1567_v26 = vcvt.s32.f32 %v1555_v2  ;;  %vm1668_vm1 = vcmp.ge.f32.partialorder %v3074_v5, 0.0  ;;  %v1571_v37 = vmul.f32 5.9604645e-08, %v1559_v54  ;;  %v181_v52 = vxor.u32 %v169_v48, %v157_v49  ;;  %1416 = vst.msk [vmem:[#allocation2] sm:$0xff] %vm1415_vm0, %v1404_v18 }
 0x14e   :  { %v1397_v9 = vadd.f32 %v2880_v32, %v3107_v14  ;;  %v1575_v0 = vmul.f32 5.9604645e-08, %v1563_v63  ;;  %v185_v8 = vxor.u32 %v173_v11, %v161_v25  ;;  %v189_v21 = vxor.u32 %v177_v40, %v165_v45 }
 0x14f   :  { %v1579_v58 = vmul.f32 5.9604645e-08, %v1567_v26  ;;  %vm1672_vm2 = vcmp.ge.f32.partialorder %v3076_v22, 0.0  ;;  %v3116_v15 = vadd.f32 -0.5, %v1571_v37  ;;  %v193_v53 = vmul.u32 2246822507, %v181_v52 }
 0x150   :  { %1407 = vrot.lane.b32.xlu0 %v1397_v9, %s2269_s0  ;;  %vm1741_vm3 = vcmask 654848   ;;  %v2182_v28 = vpop.eup %2181  ;;  %vm1676_vm4 = vcmp.ge.f32.partialorder %v3078_v10, 0.0  ;;  %v3119_v43 = vadd.f32 -0.5, %v1575_v0  ;;  %v197_v55 = vmul.u32 2246822507, %v185_v8 }
 0x151   :  { %v3121_v50 = vadd.f32 -0.5, %v1579_v58  ;;  %1742 = vst.msk [vmem:[#allocation2] sm:$0xff] %vm1741_vm3, %v1730_v19  ;;  %v2184_v42 = vpop.eup %2183  ;;  %v1648_v33 = vmul.f32 0.6931472, %v2182_v28  ;;  %v1595_v13 = vand.u32 2147483647, %v3116_v15  ;;  %v159_v20 = vadd.s32 %v2348_v31, %v2775_v60 }
 0x152   :  { %v201_v36 = vmul.u32 2246822507, %v189_v21  ;;  %v2186_v6 = vpop.eup %2185  ;;  %v1656_v18 = vmul.f32 0.6931472, %v2184_v42  ;;  %v1599_v57 = vand.u32 2147483647, %v3119_v43  ;;  %v163_v45 = vadd.s32 %v2348_v31, %v2783_v12 }
 0x153   :  { %v1603_v27 = vand.u32 2147483647, %v3121_v50  ;;  %v1664_v4 = vmul.f32 0.6931472, %v2186_v6  ;;  %v1680_v17 = vsub.f32 0.0, %v1648_v33  ;;  %v1607_v23 = vmul.f32 2.0, %v1595_v13 }
 0x154   :  { %v205_v49 = vshrl.u32 %v193_v53, 13  ;;  %v1684_v25 = vsub.f32 0.0, %v1656_v18  ;;  %v1611_v30 = vmul.f32 2.0, %v1599_v57  ;;  %v209_v63 = vshrl.u32 %v197_v55, 13 }
 0x155   :  { %v1615_v2 = vmul.f32 2.0, %v1603_v27  ;;  %v1688_v54 = vsub.f32 0.0, %v1664_v4  ;;  %v1692_v48 = vsel %vm1668_vm1, %v1680_v17, %v1648_v33  ;;  %v1619_v11 = vsub.f32 1.0, %v1607_v23 }
 0x156   :  { %v1696_v26 = vsel %vm1672_vm2, %v1684_v25, %v1656_v18  ;;  %v1704_v60 = vmul.f32 %v1692_v48, %v2802_v56  ;;  %v1623_v40 = vsub.f32 1.0, %v1611_v30  ;;  %v213_v12 = vshrl.u32 %v201_v36, 13 }
 0x157   :  { %v1627_v9 = vsub.f32 1.0, %v1615_v2  ;;  %v1700_v37 = vsel %vm1676_vm4, %v1688_v54, %v1664_v4  ;;  %v1708_v52 = vmul.f32 %v1696_v26, %v2811_v7  ;;  %v1631_v19 = vmax.f32 %v1619_v11, 1e-12 }
 0x158   :  { %v1712_v0 = vmul.f32 %v1700_v37, %v2818_v59  ;;  %v1635_v5 = vmax.f32 %v1623_v40, 1e-12  ;;  %v217_v8 = vxor.u32 %v205_v49, %v193_v53  ;;  %v221_v22 = vxor.u32 %v209_v63, %v197_v55 }
 0x159   :  { %v1639_v58 = vmax.f32 %v1627_v9, 1e-12  ;;  %v1716_v21 = vadd.f32 %v1708_v52, %v1704_v60  ;;  %2187 = vlog2.f32 %v1631_v19  ;;  %v225_v28 = vxor.u32 %v213_v12, %v201_v36 }
 0x15a   :  { %2189 = vlog2.f32 %v1635_v5  ;;  %v229_v42 = vmul.u32 3266489909, %v217_v8  ;;  %v167_v33 = vadd.s32 %v2348_v31, %v2786_v1  ;;  %v171_v10 = vshrl.u32 %v159_v20, 16 }
 0x15b   :  { %v3142_v13 = vadd.f32 %v1716_v21, %v1712_v0  ;;  %2191 = vlog2.f32 %v1639_v58  ;;  %v233_v6 = vmul.u32 3266489909, %v221_v22  ;;  %v237_v18 = vmul.u32 3266489909, %v225_v28 }
 0x15c   :  { %v241_v57 = vshrl.u32 %v229_v42, 16  ;;  %v175_v27 = vshrl.u32 %v163_v45, 16  ;;  %v179_v4 = vshrl.u32 %v167_v33, 16  ;;  %v183_v17 = vxor.u32 %v171_v10, %v159_v20 }
 0x15d   :  { %v1724_v53 = vadd.f32 %v2805_v51, %v3142_v13  ;;  %vm1667_vm5 = vcmp.ge.f32.partialorder %v3116_v15, 0.0  ;;  %v245_v55 = vshrl.u32 %v233_v6, 16  ;;  %v249_v36 = vshrl.u32 %v237_v18, 16 }
 0x15e   :  { %v253_v23 = vxor.u32 %v241_v57, %v229_v42  ;;  %v187_v49 = vxor.u32 %v175_v27, %v163_v45  ;;  %v191_v1 = vxor.u32 %v179_v4, %v167_v33  ;;  %v195_v25 = vmul.u32 2246822507, %v183_v17 }
 0x15f   :  { %1735 = vrot.lane.b32.xlu1 %v1724_v53, %s2270_s2  ;;  %vm1671_vm6 = vcmp.ge.f32.partialorder %v3119_v43, 0.0  ;;  %vm1675_vm7 = vcmp.ge.f32.partialorder %v3121_v50, 0.0  ;;  %v257_v30 = vxor.u32 %v245_v55, %v233_v6  ;;  %v261_v2 = vxor.u32 %v249_v36, %v237_v18 }
 0x160   :  { %v265_v20 = vand.u32 16777215, %v253_v23  ;;  %v199_v54 = vmul.u32 2246822507, %v187_v49  ;;  %v203_v48 = vmul.u32 2246822507, %v191_v1  ;;  %v158_v60 = vadd.s32 %v2348_v31, %v2850_v3 }
 0x161   :  { %v269_v11 = vand.u32 16777215, %v257_v30  ;;  %v273_v63 = vand.u32 16777215, %v261_v2  ;;  %v207_v26 = vshrl.u32 %v195_v25, 13  ;;  %v162_v37 = vadd.s32 %v2348_v31, %v2853_v39 }
 0x162   :  { %v277_v45 = vcvt.s32.f32 %v265_v20  ;;  %v211_v40 = vshrl.u32 %v199_v54, 13  ;;  %v215_v9 = vshrl.u32 %v203_v48, 13  ;;  %v166_v5 = vadd.s32 %v2348_v31, %v2855_v35 }
 0x163   :  { %v2188_v52 = vpop.eup %2187  ;;  %v281_v19 = vcvt.s32.f32 %v269_v11  ;;  %v285_v12 = vcvt.s32.f32 %v273_v63  ;;  %v219_v0 = vxor.u32 %v207_v26, %v195_v25  ;;  %v170_v6 = vshrl.u32 %v158_v60, 16 }
 0x164   :  { %v2190_v58 = vpop.eup %2189  ;;  %v1646_v8 = vmul.f32 0.6931472, %v2188_v52  ;;  %v289_v21 = vmul.f32 5.9604645e-08, %v277_v45  ;;  %v223_v22 = vxor.u32 %v211_v40, %v199_v54  ;;  %v227_v28 = vxor.u32 %v215_v9, %v203_v48 }
 0x165   :  { %v2192_v42 = vpop.eup %2191  ;;  %v1654_v3 = vmul.f32 0.6931472, %v2190_v58  ;;  %v293_v33 = vmul.f32 5.9604645e-08, %v281_v19  ;;  %v297_v10 = vmul.f32 5.9604645e-08, %v285_v12  ;;  %v231_v27 = vmul.u32 3266489909, %v219_v0 }
 0x166   :  { %v1662_v18 = vmul.f32 0.6931472, %v2192_v42  ;;  %v1679_v57 = vsub.f32 0.0, %v1646_v8  ;;  %v3156_v39 = vadd.f32 -0.5, %v289_v21  ;;  %v235_v31 = vmul.u32 3266489909, %v223_v22 }
 0x167   :  { %v1683_v4 = vsub.f32 0.0, %v1654_v3  ;;  %v3158_v17 = vadd.f32 -0.5, %v293_v33  ;;  %v3160_v53 = vadd.f32 -0.5, %v297_v10  ;;  %v239_v23 = vmul.u32 3266489909, %v227_v28 }
 0x168   :  { %v1687_v35 = vsub.f32 0.0, %v1662_v18  ;;  %v1691_v55 = vsel %vm1667_vm5, %v1679_v57, %v1646_v8  ;;  %v313_v36 = vand.u32 2147483647, %v3156_v39  ;;  %v174_v15 = vshrl.u32 %v162_v37, 16 }
 0x169   :  { %v1695_v49 = vsel %vm1671_vm6, %v1683_v4, %v1654_v3  ;;  %v1703_v1 = vmul.f32 %v1691_v55, %v2899_v38  ;;  %v317_v25 = vand.u32 2147483647, %v3158_v17  ;;  %v321_v30 = vand.u32 2147483647, %v3160_v53 }
 0x16a   :  { %v1699_v2 = vsel %vm1675_vm7, %v1687_v35, %v1662_v18  ;;  %v1707_v20 = vmul.f32 %v1695_v49, %v2933_v62  ;;  %v325_v54 = vmul.f32 2.0, %v313_v36  ;;  %v178_v26 = vshrl.u32 %v166_v5, 16 }
 0x16b   :  { %v1711_v48 = vmul.f32 %v1699_v2, %v2943_v16  ;;  %v329_v11 = vmul.f32 2.0, %v317_v25  ;;  %v333_v63 = vmul.f32 2.0, %v321_v30  ;;  %v243_v40 = vshrl.u32 %v231_v27, 16 }
 0x16c   :  { %v1715_v43 = vadd.f32 %v1707_v20, %v1703_v1  ;;  %v337_v45 = vsub.f32 1.0, %v325_v54  ;;  %v247_v9 = vshrl.u32 %v235_v31, 16  ;;  %v251_v12 = vshrl.u32 %v239_v23, 16 }
 0x16d   :  { %v341_v52 = vsub.f32 1.0, %v329_v11  ;;  %v345_v19 = vsub.f32 1.0, %v333_v63  ;;  %v182_v0 = vxor.u32 %v170_v6, %v158_v60  ;;  %v255_v8 = vxor.u32 %v243_v40, %v231_v27 }
 0x16e   :  { %v3174_v58 = vadd.f32 %v1715_v43, %v1711_v48  ;;  %v349_v50 = vmax.f32 %v337_v45, 1e-12  ;;  %v259_v21 = vxor.u32 %v247_v9, %v235_v31  ;;  %v263_v42 = vxor.u32 %v251_v12, %v239_v23 }
 0x16f   :  { %v353_v22 = vmax.f32 %v341_v52, 1e-12  ;;  %v357_v28 = vmax.f32 %v345_v19, 1e-12  ;;  %v186_v3 = vxor.u32 %v174_v15, %v162_v37  ;;  %v3177_v33 = vmul.f32 0.2, %v2865_v44 }
 0x170   :  { %v1723_v10 = vadd.f32 %v2880_v32, %v3174_v58  ;;  %2193 = vlog2.f32 %v349_v50  ;;  %v267_v18 = vand.u32 16777215, %v255_v8  ;;  %v271_v57 = vand.u32 16777215, %v259_v21 }
 0x171   :  { %2195 = vlog2.f32 %v353_v22  ;;  %v275_v60 = vand.u32 16777215, %v263_v42  ;;  %v190_v6 = vxor.u32 %v178_v26, %v166_v5  ;;  %v194_v4 = vmul.u32 2246822507, %v182_v0 }
 0x172   :  { %1733 = vrot.lane.b32.xlu0 %v1723_v10, %s2270_s2  ;;  %2197 = vlog2.f32 %v357_v28  ;;  %v279_v27 = vcvt.s32.f32 %v267_v18  ;;  %v198_v31 = vmul.u32 2246822507, %v186_v3  ;;  %v283_v35 = vcvt.s32.f32 %v271_v57 }
 0x173   :  { %v287_v37 = vcvt.s32.f32 %v275_v60  ;;  %v202_v55 = vmul.u32 2246822507, %v190_v6  ;;  %v206_v23 = vshrl.u32 %v194_v4, 13  ;;  %v2271_v1 = vmov 0.0|0.0  }
 0x174   :  { %v291_v36 = vmul.f32 5.9604645e-08, %v279_v27  ;;  %v210_v49 = vshrl.u32 %v198_v31, 13  ;;  %2065 = vmatprep.subr.bf16.mxu0 %v2271_v1  ;;  %v3185_v25 = vmul.f32 %v3177_v33, %v2865_v44  ;;  %v295_v5 = vmul.f32 5.9604645e-08, %v283_v35 }
 0x175   :  { %v299_v30 = vmul.f32 5.9604645e-08, %v287_v37  ;;  %v214_v2 = vshrl.u32 %v202_v55, 13  ;;  %v218_v54 = vxor.u32 %v206_v23, %v194_v4  ;;  %vm385_vm8 = vcmp.ge.f32.partialorder %v3156_v39, 0.0 }
 0x176   :  { %v3187_v20 = vadd.f32 -0.5, %v291_v36  ;;  %v222_v15 = vxor.u32 %v210_v49, %v198_v31  ;;  %v3189_v48 = vadd.f32 -0.5, %v295_v5  ;;  %vm2272_vm9 = vmmov 0   ;;  %v1080_v31 = vpop.permute.xlu1 %1079 }
 0x177   :  { %v3191_v11 = vadd.f32 -0.5, %v299_v30  ;;  %v226_v63 = vxor.u32 %v214_v2, %v202_v55  ;;  %v230_v43 = vmul.u32 3266489909, %v218_v54  ;;  %v2273_v44 = vmov 0.0  }
 0x178   :  { %v315_v26 = vand.u32 2147483647, %v3187_v20  ;;  %2062 = vmatprep.mubr.msk.f32.mxu0 %vm2272_vm9, %v2273_v44  ;;  %vm389_vm10 = vcmp.ge.f32.partialorder %v3158_v17, 0.0  ;;  %vm393_vm11 = vcmp.ge.f32.partialorder %v3160_v53, 0.0  ;;  %v319_v45 = vand.u32 2147483647, %v3189_v48 }
 0x179   :  { %v323_v40 = vand.u32 2147483647, %v3191_v11  ;;  %v234_v19 = vmul.u32 3266489909, %v222_v15  ;;  %v238_v12 = vmul.u32 3266489909, %v226_v63  ;;  %v1766_v28 = vsub.f32 %v2871_v41, %v3185_v25 }
 0x17a   :  { %v2194_v9 = vpop.eup %2193  ;;  %v327_v52 = vmul.f32 2.0, %v315_v26  ;;  %v242_v0 = vshrl.u32 %v230_v43, 16  ;;  %v331_v21 = vmul.f32 2.0, %v319_v45  ;;  %v1406_v17 = vpop.permute.xlu1 %1405  ;;  %v3378_v53 = vld [vmem:[#allocation11_spill] sm:$0xff]  ;;  %vm387_vm12 = vcmp.ge.f32.partialorder %v3187_v20, 0.0 }
 0x17b   :  { %v2196_v50 = vpop.eup %2195  ;;  %v363_v8 = vmul.f32 0.6931472, %v2194_v9  ;;  %v335_v22 = vmul.f32 2.0, %v323_v40  ;;  %v246_v18 = vshrl.u32 %v234_v19, 16  ;;  %v250_v57 = vshrl.u32 %v238_v12, 16 }
 0x17c   :  { %v2198_v42 = vpop.eup %2197  ;;  %v371_v3 = vmul.f32 0.6931472, %v2196_v50  ;;  %v339_v10 = vsub.f32 1.0, %v327_v52  ;;  %v343_v27 = vsub.f32 1.0, %v331_v21  ;;  %v254_v55 = vxor.u32 %v242_v0, %v230_v43 }
 0x17d   :  { %v379_v60 = vmul.f32 0.6931472, %v2198_v42  ;;  %v397_v6 = vsub.f32 0.0, %v363_v8  ;;  %v347_v4 = vsub.f32 1.0, %v335_v22  ;;  %v258_v36 = vxor.u32 %v246_v18, %v234_v19  ;;  %v3379_v22 = vld [vmem:[#allocation12_spill] sm:$0xff] }
 0x17e   :  { %v401_v35 = vsub.f32 0.0, %v371_v3  ;;  %v351_v37 = vmax.f32 %v339_v10, 1e-12  ;;  %v355_v5 = vmax.f32 %v343_v27, 1e-12  ;;  %v262_v2 = vxor.u32 %v250_v57, %v238_v12 }
 0x17f   :  { %v405_v23 = vsub.f32 0.0, %v379_v60  ;;  %v409_v49 = vsel %vm385_vm8, %v397_v6, %v363_v8  ;;  %v359_v41 = vmax.f32 %v347_v4, 1e-12  ;;  %v266_v63 = vand.u32 16777215, %v254_v55 }
 0x180   :  { %v413_v25 = vsel %vm389_vm10, %v401_v35, %v371_v3  ;;  %v421_v30 = vmul.f32 %v409_v49, %v2560_v24  ;;  %2199 = vlog2.f32 %v351_v37  ;;  %v270_v39 = vand.u32 16777215, %v258_v36  ;;  %v3380_v3 = vld [vmem:[#allocation13_spill] sm:$0xff] }
 0x181   :  { %v417_v54 = vsel %vm393_vm11, %v405_v23, %v379_v60  ;;  %v425_v15 = vmul.f32 %v413_v25, %v2577_v46  ;;  %2201 = vlog2.f32 %v355_v5  ;;  %v274_v43 = vand.u32 16777215, %v262_v2  ;;  %v1732_v60 = vpop.permute.xlu1 %1731 }
 0x182   :  { %v429_v26 = vmul.f32 %v417_v54, %v2582_v34  ;;  %2203 = vlog2.f32 %v359_v41  ;;  %v278_v45 = vcvt.s32.f32 %v266_v63  ;;  %v282_v40 = vcvt.s32.f32 %v270_v39 }
 0x183   :  { %v433_v44 = vadd.f32 %v425_v15, %v421_v30  ;;  %v286_v9 = vcvt.s32.f32 %v274_v43  ;;  %v1770_v46 = vmul.f32 0.25, %v1766_v28  ;;  %v1778_v21 = vadd.f32 %v2341_v29, %v3177_v33 }
 0x184   :  { %v290_v52 = vmul.f32 5.9604645e-08, %v278_v45  ;;  %v294_v19 = vmul.f32 5.9604645e-08, %v282_v40  ;;  %v1099_v42 = vmul.f32 %v3379_v22, %v3379_v22  ;;  %v773_v10 = vmul.f32 %v3380_v3, %v3380_v3 }
 0x185   :  { %v437_v24 = vadd.f32 %v433_v44, %v429_v26  ;;  %v298_v12 = vmul.f32 5.9604645e-08, %v286_v9  ;;  %vm391_vm1 = vcmp.ge.f32.partialorder %v3189_v48, 0.0  ;;  %vm395_vm2 = vcmp.ge.f32.partialorder %v3191_v11, 0.0 }
 0x186   :  { %v3211_v50 = vadd.f32 -0.5, %v290_v52  ;;  %v3213_v8 = vadd.f32 -0.5, %v294_v19  ;;  %v1774_v35 = vmax.f32 %v1770_v46, 0.0  ;;  %v1786_v23 = vmul.f32 %v1778_v21, %v1778_v21  ;;  %v3381_v52 = vld [vmem:[#allocation14_spill] sm:$0xff]  ;;  %v3382_v21 = vld [vmem:[#allocation16_spill] sm:$0xff] }
 0x187   :  { %v441_v0 = vadd.f32 %v3378_v53, %v437_v24  ;;  %v3215_v34 = vadd.f32 -0.5, %v298_v12  ;;  %v769_v57 = vadd.f32 %v3380_v3, %v437_v24  ;;  %v450_v49 = vmul.f32 %v437_v24, %v437_v24  ;;  %v758_v12 = vpop.permute.xlu1 %757 }
 0x188   :  { %v314_v18 = vand.u32 2147483647, %v3211_v50  ;;  %v318_v29 = vand.u32 2147483647, %v3213_v8  ;;  %v3239_v39 = vadd.f32 1e-20, %v1774_v35  ;;  %v775_v11 = vmul.f32 %v3382_v21, %v3382_v21 }
 0x189   :  { %446 = vst.msk [vmem:[#allocation2 + $0x8] sm:$0xff] %vm444_vm13, %v441_v0  ;;  %v322_v33 = vand.u32 2147483647, %v3215_v34  ;;  %v777_v40 = vadd.f32 %v773_v10, %v450_v49  ;;  %v1842_v0 = vld [vmem:[#allocation2] sm:$0xff]  ;;  %vm386_vm4 = vcmp.ge.f32.partialorder %v3211_v50, 0.0  ;;  %vm390_vm5 = vcmp.ge.f32.partialorder %v3213_v8, 0.0 }
 0x18a   :  { %v2200_v28 = vpop.eup %2199  ;;  %765 = vst.msk [vmem:[#allocation2 + $0x8] sm:$0xff] %vm763_vm14, %v3088_v61  ;;  %v326_v4 = vmul.f32 2.0, %v314_v18  ;;  %v330_v61 = vmul.f32 2.0, %v318_v29  ;;  %v3250_v48 = vadd.f32 %v1786_v23, %v3239_v39  ;;  %v3383_v18 = vld [vmem:[#allocation15_spill] sm:$0xff]  ;;  %v3384_v29 = vld [vmem:[#allocation18_spill] sm:$0xff]  ;;  %vm394_vm6 = vcmp.ge.f32.partialorder %v3215_v34, 0.0 }
 0x18b   :  { %v2202_v6 = vpop.eup %2201  ;;  %1091 = vst.msk [vmem:[#allocation2 + $0x8] sm:$0xff] %vm1089_vm15, %v1080_v31  ;;  %v367_v27 = vmul.f32 0.6931472, %v2200_v28  ;;  %v334_v36 = vmul.f32 2.0, %v322_v33  ;;  %v1095_v31 = vadd.f32 %v3379_v22, %v769_v57  ;;  %v1103_v10 = vadd.f32 %v1099_v42, %v777_v40 }
 0x18c   :  { %v2204_v37 = vpop.eup %2203  ;;  %1417 = vst.msk [vmem:[#allocation2 + $0x8] sm:$0xff] %vm1415_vm0, %v1406_v17  ;;  %v375_v55 = vmul.f32 0.6931472, %v2202_v6  ;;  %v338_v25 = vsub.f32 1.0, %v326_v4  ;;  %v342_v2 = vsub.f32 1.0, %v330_v61  ;;  %v1101_v33 = vmul.f32 %v3384_v29, %v3384_v29  ;;  %v1084_v6 = vpop.permute.xlu1 %1083 }
 0x18d   :  { %1743 = vst.msk [vmem:[#allocation2 + $0x8] sm:$0xff] %vm1741_vm3, %v1732_v60  ;;  %v383_v5 = vmul.f32 0.6931472, %v2204_v37  ;;  %v399_v41 = vsub.f32 0.0, %v367_v27  ;;  %v346_v54 = vsub.f32 1.0, %v334_v36  ;;  %v1421_v20 = vadd.f32 %v3381_v52, %v1095_v31 }
 0x18e   :  { %v403_v30 = vsub.f32 0.0, %v375_v55  ;;  %v350_v26 = vmax.f32 %v338_v25, 1e-12  ;;  %v354_v45 = vmax.f32 %v342_v2, 1e-12  ;;  %v1751_v42 = vmul.f32 %v3383_v18, %v3383_v18 }
 0x18f   :  { %v407_v15 = vsub.f32 0.0, %v383_v5  ;;  %v411_v63 = vsel %vm387_vm12, %v399_v41, %v367_v27  ;;  %v358_v17 = vmax.f32 %v346_v54, 1e-12  ;;  %vm1851_vm7 = vcmask 252928  }
 0x190   :  { %v415_v43 = vsel %vm391_vm1, %v403_v30, %v375_v55  ;;  %v423_v44 = vmul.f32 %v411_v63, %v2802_v56  ;;  %2205 = vlog2.f32 %v350_v26 }
 0x191   :  { %v419_v9 = vsel %vm395_vm2, %v407_v15, %v383_v5  ;;  %v427_v24 = vmul.f32 %v415_v43, %v2811_v7  ;;  %2207 = vlog2.f32 %v354_v45  ;;  %v1425_v7 = vmul.f32 %v3381_v52, %v3381_v52 }
 0x192   :  { %v431_v19 = vmul.f32 %v419_v9, %v2818_v59  ;;  %2209 = vlog2.f32 %v358_v17  ;;  %v1747_v59 = vadd.f32 %v3383_v18, %v1421_v20  ;;  %v1753_v15 = vmul.f32 %v3142_v13, %v3142_v13 }
 0x193   :  { %v435_v56 = vadd.f32 %v427_v24, %v423_v44  ;;  %v1429_v35 = vadd.f32 %v1425_v7, %v1103_v10  ;;  %v756_v24 = vpop.permute.xlu0 %755  ;;  %v1752_v18 = vmul.f32 %v3174_v58, %v3174_v58  ;;  %2211 = vlog2.f32 %v3239_v39 }
 0x194   :  { %v1843_v46 = vld [vmem:[#allocation2 + $0x8] sm:$0xff]  ;;  %v1759_v37 = vmul.f32 0.2, %v1747_v59 }
 0x195   :  { %v439_v22 = vadd.f32 %v435_v56, %v431_v19  ;;  %v2066_v3 = vpack.c.bf16 %v1843_v46, %v1842_v0  ;;  %v1755_v2 = vadd.f32 %v1751_v42, %v1429_v35  ;;  %v3385_v19 = vld [vmem:[#allocation17_spill] sm:$0xff]  ;;  %v3386_v56 = vld [vmem:[#allocation19_spill] sm:$0xff] }
 0x196   :  { %v1763_v54 = vmul.f32 %v1759_v37, %v1747_v59  ;;  %v774_v34 = vmul.f32 %v3385_v19, %v3385_v19  ;;  %v1100_v46 = vmul.f32 %v3386_v56, %v3386_v56 }
 0x197   :  { %v443_v28 = vadd.f32 %v2805_v51, %v439_v22  ;;  %v452_v57 = vmul.f32 %v439_v22, %v439_v22  ;;  %v771_v60 = vadd.f32 %v3382_v21, %v439_v22  ;;  %2067 = vmatpush3.bf16.msra.mxu0 %v2066_v3 }
 0x198   :  { %2068 = vmatprep.subr.bf16.mxu0 %v2271_v1  ;;  %v1427_v1 = vmul.f32 %v3069_v47, %v3069_v47  ;;  %v1767_v40 = vsub.f32 %v1755_v2, %v1763_v54 }
 0x199   :  { %448 = vst.msk [vmem:[#allocation2 + $0x18] sm:$0xff] %vm444_vm13, %v443_v28  ;;  %v779_v27 = vadd.f32 %v775_v11, %v452_v57  ;;  %v1097_v4 = vadd.f32 %v3384_v29, %v771_v60  ;;  %v1779_v60 = vadd.f32 %v3378_v53, %v1759_v37 }
 0x19a   :  { %767 = vst.msk [vmem:[#allocation2 + $0x18] sm:$0xff] %vm763_vm14, %v758_v12  ;;  %v2206_v55 = vpop.eup %2205  ;;  %v1771_v0 = vmul.f32 0.25, %v1767_v40 }
 0x19b   :  { %1093 = vst.msk [vmem:[#allocation2 + $0x18] sm:$0xff] %vm1089_vm15, %v1084_v6  ;;  %v1423_v61 = vadd.f32 %v3069_v47, %v1097_v4  ;;  %v2208_v36 = vpop.eup %2207  ;;  %v365_v23 = vmul.f32 0.6931472, %v2206_v55  ;;  %v1105_v49 = vadd.f32 %v1101_v33, %v779_v27  ;;  %v1787_v55 = vmul.f32 %v1779_v60, %v1779_v60 }
 0x19c   :  { %v2210_v5 = vpop.eup %2209  ;;  %v373_v41 = vmul.f32 0.6931472, %v2208_v36  ;;  %v1082_v22 = vpop.permute.xlu0 %1081  ;;  %v1775_v10 = vmax.f32 %v1771_v0, 0.0 }
 0x19d   :  { %v1749_v25 = vadd.f32 %v3142_v13, %v1423_v61  ;;  %v381_v31 = vmul.f32 0.6931472, %v2210_v5  ;;  %v398_v30 = vsub.f32 0.0, %v365_v23  ;;  %v1431_v43 = vadd.f32 %v1427_v1, %v1105_v49 }
 0x19e   :  { %v402_v47 = vsub.f32 0.0, %v373_v41  ;;  %v1783_v6 = vadd.f32 1e-20, %v1775_v10  ;;  %v1794_v49 = vsel %vm444_vm13, %v3250_v48, 0.0 }
 0x19f   :  { %v406_v63 = vsub.f32 0.0, %v381_v31  ;;  %v410_v26 = vsel %vm386_vm4, %v398_v30, %v365_v23  ;;  %v1761_v44 = vmul.f32 0.2, %v1749_v25  ;;  %v1757_v20 = vadd.f32 %v1753_v15, %v1431_v43  ;;  %v2212_v30 = vpop.eup %2211 }
 0x1a0   :  { %v414_v45 = vsel %vm390_vm5, %v402_v47, %v373_v41  ;;  %v422_v50 = vmul.f32 %v410_v26, %v2899_v38  ;;  %2213 = vlog2.f32 %v1783_v6  ;;  %v1791_v37 = vadd.f32 %v1787_v55, %v1783_v6 }
 0x1a1   :  { %v418_v8 = vsel %vm394_vm6, %v406_v63, %v381_v31  ;;  %v426_v17 = vmul.f32 %v414_v45, %v2933_v62  ;;  %v1765_v13 = vmul.f32 %v1761_v44, %v1749_v25  ;;  %v1811_v47 = vmul.f32 0.6931472, %v2212_v30 }
 0x1a2   :  { %v430_v9 = vmul.f32 %v418_v8, %v2943_v16  ;;  %v1426_v16 = vmul.f32 %v3107_v14, %v3107_v14  ;;  %v1795_v25 = vsel %vm444_vm13, %v1791_v37, 0.0 }
 0x1a3   :  { %v434_v52 = vadd.f32 %v426_v17, %v422_v50  ;;  %v1769_v11 = vsub.f32 %v1757_v20, %v1765_v13  ;;  %v1796_v2 = vadd.f32 %v1795_v25, %v1794_v49  ;;  %v1818_v45 = vsel %vm444_vm13, %v1811_v47, 0.0 }
 0x1a5   :  { %v438_v12 = vadd.f32 %v434_v52, %v430_v9  ;;  %v1773_v57 = vmul.f32 0.25, %v1769_v11 }
 0x1a7   :  { %v442_v38 = vadd.f32 %v2880_v32, %v438_v12  ;;  %v451_v21 = vmul.f32 %v438_v12, %v438_v12  ;;  %v770_v62 = vadd.f32 %v3385_v19, %v438_v12  ;;  %v1777_v35 = vmax.f32 %v1773_v57, 0.0 }
 0x1a9   :  { %447 = vst.msk [vmem:[#allocation2 + $0x10] sm:$0xff] %vm444_vm13, %v442_v38  ;;  %v778_v3 = vadd.f32 %v774_v34, %v451_v21  ;;  %v1096_v7 = vadd.f32 %v3386_v56, %v770_v62  ;;  %v1785_v1 = vadd.f32 1e-20, %v1777_v35 }
 0x1aa   :  { %766 = vst.msk [vmem:[#allocation2 + $0x10] sm:$0xff] %vm763_vm14, %v756_v24  ;;  %vm1855_vm14 = vcmask 1046528  }
 0x1ab   :  { %1092 = vst.msk [vmem:[#allocation2 + $0x10] sm:$0xff] %vm1089_vm15, %v1082_v22  ;;  %v1104_v59 = vadd.f32 %v1100_v46, %v778_v3  ;;  %v1422_v28 = vadd.f32 %v3107_v14, %v1096_v7  ;;  %v1781_v14 = vadd.f32 %v2805_v51, %v1761_v44  ;;  %2215 = vlog2.f32 %v1785_v1  ;;  %v2214_v51 = vpop.eup %2213  ;;  %v1841_v46 = vld [vmem:[%s3347_s1] sm:$0xff] }
 0x1ac   :  { %v1813_v63 = vmul.f32 0.6931472, %v2214_v51  ;;  %vm2274_vm15 = vmmov 1  }
 0x1ad   :  { %v1430_v29 = vadd.f32 %v1426_v16, %v1104_v59  ;;  %v1748_v33 = vadd.f32 %v3174_v58, %v1422_v28  ;;  %v1789_v23 = vmul.f32 %v1781_v14, %v1781_v14 }
 0x1ae   :  { %v1819_v50 = vsel %vm444_vm13, %v1813_v63, 0.0 }
 0x1af   :  { %v1756_v4 = vadd.f32 %v1752_v18, %v1430_v29  ;;  %v1760_v42 = vmul.f32 0.2, %v1748_v33  ;;  %v1793_v31 = vadd.f32 %v1789_v23, %v1785_v1  ;;  %v1820_v40 = vadd.f32 %v1819_v50, %v1818_v45 }
 0x1b1   :  { %v1410_v27 = vpop.permute.xlu1 %1409  ;;  %v1764_v61 = vmul.f32 %v1760_v42, %v1748_v33  ;;  %v1780_v53 = vadd.f32 %v2880_v32, %v1760_v42  ;;  %v1799_v15 = vsel %vm444_vm13, %v1793_v31, 0.0 }
 0x1b2   :  { %1419 = vst.msk [vmem:[#allocation2 + $0x18] sm:$0xff] %vm1415_vm0, %v1410_v27 }
 0x1b3   :  { %v1768_v36 = vsub.f32 %v1756_v4, %v1764_v61  ;;  %v1788_v41 = vmul.f32 %v1780_v53, %v1780_v53 }
 0x1b5   :  { %v1772_v58 = vmul.f32 0.25, %v1768_v36  ;;  %v2216_v44 = vpop.eup %2215 }
 0x1b6   :  { %v1817_v8 = vmul.f32 0.6931472, %v2216_v44 }
 0x1b7   :  { %v1776_v5 = vmax.f32 %v1772_v58, 0.0 }
 0x1b8   :  { %v1823_v52 = vsel %vm444_vm13, %v1817_v8, 0.0 }
 0x1b9   :  { %v1784_v39 = vadd.f32 1e-20, %v1776_v5 }
 0x1bb   :  { %2217 = vlog2.f32 %v1784_v39  ;;  %v1792_v54 = vadd.f32 %v1788_v41, %v1784_v39 }
 0x1bd   :  { %v1797_v32 = vsel %vm444_vm13, %v1792_v54, 0.0 }
 0x1be   :  { %v1798_v26 = vadd.f32 %v1797_v32, %v1796_v2 }
 0x1c0   :  { %v1800_v43 = vadd.f32 %v1799_v15, %v1798_v26 }
 0x1c2   :  { %v1408_v48 = vpop.permute.xlu0 %1407  ;;  %1801 = vadd.xlane.f32.xlu0 %v1800_v43 }
 0x1c3   :  { %1418 = vst.msk [vmem:[#allocation2 + $0x10] sm:$0xff] %vm1415_vm0, %v1408_v48  ;;  %vm2070_vm0 = vmpackc.low %vm1855_vm14, %vm2274_vm15 }
 0x1c5   :  { %v2218_v17 = vpop.eup %2217 }
 0x1c6   :  { %v1815_v9 = vmul.f32 0.6931472, %v2218_v17 }
 0x1c8   :  { %v1821_v24 = vsel %vm444_vm13, %v1815_v9, 0.0 }
 0x1c9   :  { %v1822_v20 = vadd.f32 %v1821_v24, %v1820_v40 }
 0x1cb   :  { %v1824_v13 = vadd.f32 %v1823_v52, %v1822_v20 }
 0x1cd   :  { %1825 = vadd.xlane.f32.xlu1 %v1824_v13 }
 0x1d1   :  { %v1736_v19 = vpop.permute.xlu1 %1735 }
 0x1d2   :  { %1745 = vst.msk [vmem:[#allocation2 + $0x18] sm:$0xff] %vm1741_vm3, %v1736_v19 }
 0x1d9   :  { %v1845_v12 = vld [vmem:[#allocation2 + $0x18] sm:$0x7f] }
 0x1e4   :  { %v1734_v34 = vpop.permute.xlu0 %1733 }
 0x1e5   :  { %1744 = vst.msk [vmem:[#allocation2 + $0x10] sm:$0xff] %vm1741_vm3, %v1734_v34 }
 0x1ec   :  { %v1844_v0 = vld [vmem:[#allocation2 + $0x10] sm:$0xff] }
 0x1ed   :  { %v2069_v56 = vpack.c.bf16 %v1845_v12, %v1844_v0 }
 0x1ef   :  { %2071 = vmatpush3.bf16.msk.msra.mxu0 %vm2070_vm0, %v2069_v56 }
 0x1f2   :  { %2063 = vmatmul.mubr.msk.f32.vlgmr.msra.gmra.mrb[0].mxu0 %vm1851_vm7, %v1841_v46 }
 0x24f   :  { %v1802_v38 = vpop.xlane.xlu0 %1801 }
 0x250   :  { %v1803_v21 = vrot.slane %v1802_v38, 4 }
 0x252   :  { %v1804_v62 = vadd.f32 %v1803_v21, %v1802_v38 }
 0x254   :  { %v1805_v11 = vrot.slane %v1804_v62, 2 }
 0x256   :  { %v1806_v22 = vadd.f32 %v1805_v11, %v1804_v62 }
 0x258   :  { %v1807_v16 = vrot.slane %v1806_v22, 1 }
 0x25a   :  { %v1826_v3 = vpop.xlane.xlu1 %1825  ;;  %v1808_v7 = vadd.f32 %v1807_v16, %v1806_v22 }
 0x25b   :  { %v1827_v10 = vrot.slane %v1826_v3, 4 }
 0x25c   :  { %2072 = vpush %v1808_v7 }
 0x25d   :  { %v1828_v18 = vadd.f32 %v1827_v10, %v1826_v3 }
 0x25f   :  { %v1829_v59 = vrot.slane %v1828_v18, 2 }
 0x261   :  { %v1830_v28 = vadd.f32 %v1829_v59, %v1828_v18 }
 0x263   :  { %v1831_v57 = vrot.slane %v1830_v28, 1 }
 0x265   :  { %v1832_v60 = vadd.f32 %v1831_v57, %v1830_v28 }
 0x267   :  { %2074 = vpush %v1832_v60 }
 0x28d   :  { %s2073_s5 = spop %2072 }
 0x28e   :  { %s1837_s8 = smul.f32 50.0, %s2073_s5 }
 0x298   :  { %s2075_s1 = spop %2074 }
 0x299   :  { %s1834_s6 = ssub.f32 -2357.8472, %s2075_s1 }
 0x29b   :  { %s1835_s7 = smul.f32 0.5, %s1834_s6 }
 0x29d   :  { %s2045_s9 = sadd.f32 -256.0, %s1835_s7 }
 0x29f   :  { %s1838_s10 = sadd.f32 %s2045_s9, %s1837_s8 }
 0x2a1   :  { %v1839_v29 = vstv %s1838_s10 }
 0x2a2   :  { %1840 = vst [vmem:[#allocation7] sm:$0xff] %v1839_v29 }
 0x2a3   :  { %2230 = shalt.err (!%p2227_p4)
}
 0x2a4   :  { %s2231_s16 = scalar_lea.hbm %s3350_s4, 128 }
 0x2a5   :  { %p2232_p5 = scmp.ne.s32.totalorder %s3350_s4, %s2231_s16  ;;  %p2235_p6 = scmp.lt.u32.totalorder %s2231_s16, %s3350_s4 }
 0x2a7   :  { %p2237_p7 = pnand %p2235_p6, %p2232_p5 }
 0x2a9   :  { %2240 = shalt.err (!%p2237_p7)
}
 0x2aa   :  { %1972 = dma.vmem_to_hbm [thread:$0]  %s1970_s12, 128, %s3350_s4, [#allocation8]   ;;  %v2046_v33 = vld [vmem:[#allocation2 + $0x1f] ss:$0 sm:$0xff] }
 0x2ab   :  { %s2276_s22 = smov 96   ;;  %s2277_s23 = smov 112  }
 0x2ac   :  { %s2278_s24 = smov 80   ;;  %s2279_s25 = smov [#allocation5]  }
 0x2ad   :  { %s1956_s26 = sshll.u32 %s2279_s25, 4  ;;  %s1957_s26 = int_to_ptr.vmem [resolvable:$true] %s1956_s26 }
 0x2ae   :  { %s2241_s4 = scalar_lea.vmem %s1957_s26, 640  ;;  %p2246_p9 = scmp.lt.s32.totalorder %s1957_s26, %s1957_s26 }
 0x2af   :  { %p2242_p8 = scmp.ne.s32.totalorder %s1957_s26, %s2241_s4  ;;  %p2247_p10 = scmp.lt.s32.totalorder %s2241_s4, %s2241_s4 }
 0x2b1   :  { %p2248_p11 = por %p2247_p10, %p2246_p9 }
 0x2b3   :  { %p2249_p12 = pnand %p2248_p11, %p2242_p8 }
 0x2c5   :  { %v1925_v6 = vpop.f32.mrb[0].mxu0 }
 0x2c6   :  { %v1926_v27 = vadd.f32 %v2046_v33, %v1925_v6  ;;  %v2064_v4 = vpop.f32.mrb[1].mxu0 }
 0x2c8   :  { %1929 = vst.msk [vmem:[#allocation5] sm:$0xff] %vm444_vm13, %v1926_v27  ;;  %1936 = vrot.lane.b32.xlu1 %v1926_v27, %s2276_s22  ;;  %1931 = vrot.lane.b32.xlu0 %v1926_v27, %s2277_s23 }
 0x2cc   :  { %1946 = vrot.lane.b32.xlu1 %v1926_v27, %s2270_s2  ;;  %1941 = vrot.lane.b32.xlu0 %v1926_v27, %s2278_s24 }
 0x33a   :  { %v1937_v42 = vpop.permute.xlu1 %1936  ;;  %v1932_v35 = vpop.permute.xlu0 %1931 }
 0x33b   :  { %1940 = vst.msk [vmem:[#allocation5 + $0x10] sm:$0xff] %vm444_vm13, %v1937_v42  ;;  %1935 = vst.msk [vmem:[#allocation5 + $0x8] sm:$0xff] %vm444_vm13, %v1932_v35 }
 0x33e   :  { %v1947_v55 = vpop.permute.xlu1 %1946  ;;  %v1942_v61 = vpop.permute.xlu0 %1941 }
 0x33f   :  { %1950 = vst.msk [vmem:[#allocation5 + $0x20] sm:$0xff] %vm444_vm13, %v1947_v55  ;;  %1945 = vst.msk [vmem:[#allocation5 + $0x18] sm:$0xff] %vm444_vm13, %v1942_v61 }
 0x340   :  { %2252 = shalt.err (!%p2249_p12)
}
 0x341   :  { %s2253_s2 = scalar_lea.hbm %s3349_s3, 640 }
 0x342   :  { %p2254_p13 = scmp.ne.s32.totalorder %s3349_s3, %s2253_s2  ;;  %p2257_p0 = scmp.lt.u32.totalorder %s2253_s2, %s3349_s3 }
 0x344   :  { %p2259_p1 = pnand %p2257_p0, %p2254_p13 }
 0x346   :  { %2262 = shalt.err (!%p2259_p1)
}
 0x347   :  { %s2280_s6 = smov 128   ;;  %s2281_s7 = smov 8  }
 0x348   :  { %1962 = dma.vmem_to_hbm [thread:$0]  %s1957_s26, 640, %s3349_s3, [#allocation6], %s2280_s6, %s2280_s6, %s2281_s7  }
 0x349   :  { %2263 = dma.done.wait [#allocation6], 640  }
 0x34a   :  { %2264 = vsyncadd [#allocation6], 4294966656 }
 0x34b   :  { %2265 = dma.done.wait [#allocation8], 128  }
 0x34c   :  { %2266 = vsyncadd [#allocation8], 4294967168 }
 0x34d   :  { %1979 = vsyncpa [#allocation6], 1 }
 0x34e   :  { %1980 = vsyncpa [#allocation8], 1 }

</bundles_post_ra>
